<compile_context>
chip_gen: v5e
topology: v5e:2x2
jax: 0.10.0
libtpu: 0.0.40
codegen_flags: <defaults>
</compile_context>

<pallas_src>
import functools

import jax
import jax.numpy as jnp
from jax.experimental import pallas as pl
from jax.experimental.pallas import tpu as pltpu

_BN_EPS = 1e-5
_VMEM_LIMIT = 32 * 1024 * 1024  # explicit, v7x-safe scoped VMEM budget


# --------------------------------------------------------------------------
# Kernel 1: (optional fused BN+ReLU of previous stage) -> conv3x3 -> partial
#           BN statistics.
# --------------------------------------------------------------------------
def _conv_bn_stats_kernel(x_ref, prev_ref, next_ref, w_ref, scale_ref, shift_ref,
                          out_ref, stats_ref, *, fuse_preop):
    """
    x_ref     : (1, tile_h, W, Cin)   main row tile of the input activation
    prev_ref  : (1, 1, W, Cin)        row just above the tile (masked at t==0)
    next_ref  : (1, 1, W, Cin)        row just below the tile (masked at t==T-1)
    w_ref     : (9*Cin, Cout)         conv taps, rows ordered (ky, kx, cin)
    scale_ref : (1, Cin)              fused BN scale of the *previous* stage
    shift_ref : (1, Cin)              fused BN shift of the *previous* stage
    out_ref   : (1, tile_h, W, Cout)  raw conv output tile
    stats_ref : (1, 1, 2, Cout)       per-tile [sum, sum_sq] per output channel
    """
    _, tile_h, W, cin = x_ref.shape
    cout = w_ref.shape[1]
    t = pl.program_id(1)
    num_t = pl.num_programs(1)
    f32 = jnp.float32

    x_main = x_ref[...]            # (1, tile_h, W, cin)
    x_prev = prev_ref[...]         # (1, 1, W, cin)
    x_next = next_ref[...]         # (1, 1, W, cin)

    if fuse_preop:
        # BN + ReLU of the previous stage, fused into this conv's input read.
        sc = scale_ref[...].reshape(1, 1, 1, cin).astype(f32)
        sh = shift_ref[...].reshape(1, 1, 1, cin).astype(f32)

        def pre(v):
            return jnp.maximum(v.astype(f32) * sc + sh, 0.0).astype(v.dtype)

        x_main = pre(x_main)
        x_prev = pre(x_prev)
        x_next = pre(x_next)

    # Zero the halo rows that fall outside the image (conv padding=1).
    x_prev = x_prev * jnp.where(t > 0, 1.0, 0.0).astype(x_prev.dtype)
    x_next = x_next * jnp.where(t < num_t - 1, 1.0, 0.0).astype(x_next.dtype)

    # (1, tile_h+2, W, cin) window, then zero-pad the W dimension.
    xwin = jnp.concatenate([x_prev, x_main, x_next], axis=1)
    zcol = jnp.zeros((1, tile_h + 2, 1, cin), xwin.dtype)
    xwin = jnp.concatenate([zcol, xwin, zcol], axis=2)   # (1, tile_h+2, W+2, cin)

    # im2col: one (tile_h*W, 9*cin) patch -> single MXU matmul, f32 accumulation.
    taps = [xwin[:, ky:ky + tile_h, kx:kx + W, :]
            for ky in range(3) for kx in range(3)]
    patch = jnp.concatenate(taps, axis=-1).reshape(tile_h * W, 9 * cin)

    acc = jnp.dot(patch, w_ref[...], preferred_element_type=f32)  # (tile_h*W, cout)

    # Partial batch-norm statistics for this tile.
    s = jnp.sum(acc, axis=0, keepdims=True)            # (1, cout)
    ss = jnp.sum(acc * acc, axis=0, keepdims=True)     # (1, cout)
    stats_ref[...] = jnp.concatenate([s, ss], axis=0).reshape(1, 1, 2, cout)

    out_ref[...] = acc.reshape(1, tile_h, W, cout).astype(out_ref.dtype)


# --------------------------------------------------------------------------
# Kernel 2: final BN + ReLU (only needed for the last stage).
# --------------------------------------------------------------------------
def _bn_relu_kernel(x_ref, scale_ref, shift_ref, o_ref):
    x = x_ref[...].astype(jnp.float32)
    y = jnp.maximum(x * scale_ref[...] + shift_ref[...], 0.0)
    o_ref[...] = y.astype(o_ref.dtype)


# --------------------------------------------------------------------------
# Wrappers
# --------------------------------------------------------------------------
def _pick_tile_h(H, tile_h=None):
    if tile_h is not None:
        if H % tile_h != 0:
            raise ValueError(f"tile_h={tile_h} must divide H={H}")
        return tile_h
    for cand in range(min(H, 64), 0, -1):   # largest divisor of H <= 64 rows
        if H % cand == 0:
            return cand
    return H


def _conv_taps(w_oihw):
    """OIHW (Cout,Cin,3,3) -> (9*Cin, Cout), rows ordered (ky, kx, cin)."""
    cout, cin = w_oihw.shape[0], w_oihw.shape[1]
    return jnp.transpose(w_oihw, (2, 3, 1, 0)).reshape(9 * cin, cout)


def _conv_stage(x_nhwc, w_taps, scale_in, shift_in, *, tile_h, fuse_preop,
                out_dtype):
    """One conv3x3 (+ optional fused BN+ReLU of the previous stage) + stats."""
    N, H, W, Cin = x_nhwc.shape
    Cout = w_taps.shape[1]
    T = H // tile_h

    kern = functools.partial(_conv_bn_stats_kernel, fuse_preop=fuse_preop)

    in_specs = [
        # main row tile
        pl.BlockSpec((1, tile_h, W, Cin), lambda n, t: (n, t, 0, 0)),
        # one-row halo above (clamped; masked inside the kernel at t==0)
        pl.BlockSpec((1, 1, W, Cin),
                     lambda n, t: (n, jnp.maximum(t * tile_h - 1, 0), 0, 0)),
        # one-row halo below (clamped; masked inside the kernel at t==T-1)
        pl.BlockSpec((1, 1, W, Cin),
                     lambda n, t: (n, jnp.minimum((t + 1) * tile_h, H - 1), 0, 0)),
        # weights + fused BN scale/shift of the previous stage (resident)
        pl.BlockSpec((9 * Cin, Cout), lambda n, t: (0, 0)),
        pl.BlockSpec((1, Cin), lambda n, t: (0, 0)),
        pl.BlockSpec((1, Cin), lambda n, t: (0, 0)),
    ]
    out_specs = (
        pl.BlockSpec((1, tile_h, W, Cout), lambda n, t: (n, t, 0, 0)),
        pl.BlockSpec((1, 1, 2, Cout), lambda n, t: (n, t, 0, 0)),
    )
    out_shape = (
        jax.ShapeDtypeStruct((N, H, W, Cout), out_dtype),
        jax.ShapeDtypeStruct((N, T, 2, Cout), jnp.float32),
    )

    conv_raw, stats = pl.pallas_call(
        kern,
        grid=(N, T),
        out_shape=out_shape,
        in_specs=in_specs,
        out_specs=out_specs,
        compiler_params=pltpu.CompilerParams(
            dimension_semantics=("parallel", "parallel"),
            vmem_limit_bytes=_VMEM_LIMIT),
    )(x_nhwc, x_nhwc, x_nhwc, w_taps,
      scale_in.astype(jnp.float32), shift_in.astype(jnp.float32))
    return conv_raw, stats


def _bn_affine(stats, gamma, beta, count):
    """Fold partial (sum, sum_sq) + BN affine params into per-channel scale/shift."""
    tot = jnp.sum(stats, axis=(0, 1))                      # (2, C) f32
    mean = tot[0] / count
    var = jnp.maximum(tot[1] / count - mean * mean, 0.0)   # biased variance
    inv_std = jax.lax.rsqrt(var + _BN_EPS)
    scale = gamma.astype(jnp.float32) * inv_std
    shift = beta.astype(jnp.float32) - mean * scale
    return scale, shift


def _bn_relu(x, scale_c, shift_c, *, tile_h):
    """Elementwise y = relu(x * scale + shift), tiled over (N, row-tiles)."""
    N, H, W, C = x.shape
    T = H // tile_h
    scale4 = scale_c.reshape(1, 1, 1, C).astype(jnp.float32)
    shift4 = shift_c.reshape(1, 1, 1, C).astype(jnp.float32)
    return pl.pallas_call(
        _bn_relu_kernel,
        grid=(N, T),
        out_shape=jax.ShapeDtypeStruct((N, H, W, C), jnp.float32),
        in_specs=[pl.BlockSpec((1, tile_h, W, C), lambda n, t: (n, t, 0, 0)),
                  pl.BlockSpec((1, 1, 1, C), lambda n, t: (0, 0, 0, 0)),
                  pl.BlockSpec((1, 1, 1, C), lambda n, t: (0, 0, 0, 0))],
        out_specs=pl.BlockSpec((1, tile_h, W, C), lambda n, t: (n, t, 0, 0)),
        compiler_params=pltpu.CompilerParams(
            dimension_semantics=("parallel", "parallel"),
            vmem_limit_bytes=_VMEM_LIMIT),
    )(x, scale4, shift4)


def double_conv_pallas(x_nchw, params, *, tile_h=None,
                       compute_dtype=jnp.float32):
    """double_conv forward. Input/output in PyTorch NCHW convention."""
    N, Cin, H, W = x_nchw.shape
    C1 = params["w1"].shape[0]
    C2 = params["w2"].shape[0]
    th = _pick_tile_h(H, tile_h)

    # layout glue: NCHW -> NHWC (channels-last = lane dim)
    x = jnp.transpose(x_nchw, (0, 2, 3, 1)).astype(compute_dtype)

    w1 = _conv_taps(params["w1"]).astype(compute_dtype)
    w2 = _conv_taps(params["w2"]).astype(compute_dtype)

    # NOTE: conv biases b1/b2 are intentionally NOT applied: train-mode BN
    # subtracts the per-channel mean, which cancels them exactly.
    one_in = jnp.ones((1, Cin), jnp.float32)
    zero_in = jnp.zeros((1, Cin), jnp.float32)

    # stage 1: conv1 + partial BN1 stats
    conv1, stats1 = _conv_stage(x, w1, one_in, zero_in, tile_h=th,
                                fuse_preop=False, out_dtype=compute_dtype)
    scale1, shift1 = _bn_affine(stats1, params["g1"], params["be1"], N * H * W)

    # stage 2: BN1+ReLU fused into the conv2 input read, conv2 + BN2 stats
    conv2, stats2 = _conv_stage(conv1, w2,
                                scale1.reshape(1, C1), shift1.reshape(1, C1),
                                tile_h=th, fuse_preop=True,
                                out_dtype=compute_dtype)
    scale2, shift2 = _bn_affine(stats2, params["g2"], params["be2"], N * H * W)

    # final BN2 + ReLU
    y = _bn_relu(conv2, scale2, shift2, tile_h=th)        # (N, H, W, C2) f32

    return jnp.transpose(y, (0, 3, 1, 2))                 # NHWC -> NCHW


# ----------------------------- reference ---------------------------------
def _ref_stage(x_nchw, w_oihw, b, gamma, beta):
    y = jax.lax.conv_general_dilated(
        x_nchw.astype(jnp.float32), w_oihw.astype(jnp.float32),
        window_strides=(1, 1), padding="SAME",
        dimension_numbers=("NCHW", "OIHW", "NCHW"),
    ) + b.reshape(1, -1, 1, 1)
    mean = jnp.mean(y, axis=(0, 2, 3), keepdims=True)
    var = jnp.mean((y - mean) ** 2, axis=(0, 2, 3), keepdims=True)
    y = (y - mean) * jax.lax.rsqrt(var + _BN_EPS)
    y = y * gamma.reshape(1, -1, 1, 1) + beta.reshape(1, -1, 1, 1)
    return jnp.maximum(y, 0.0)


def double_conv_ref(x_nchw, params):
    y = _ref_stage(x_nchw, params["w1"], params["b1"], params["g1"], params["be1"])
    y = _ref_stage(y, params["w2"], params["b2"], params["g2"], params["be2"])
    return y


# ----------------------------- params ------------------------------------
def init_params(key, in_ch, out_ch):
    k1, k2, k3, k4 = jax.random.split(key, 4)
    return {
        # conv weights in PyTorch OIHW layout, deterministic synthetic init
        "w1": 0.1 * jax.random.normal(k1, (out_ch, in_ch, 3, 3), jnp.float32),
        "b1": 0.1 * jax.random.normal(k2, (out_ch,), jnp.float32),
        "g1": jnp.ones((out_ch,), jnp.float32),    # BN default init
        "be1": jnp.zeros((out_ch,), jnp.float32),
        "w2": 0.1 * jax.random.normal(k3, (out_ch, out_ch, 3, 3), jnp.float32),
        "b2": 0.1 * jax.random.normal(k4, (out_ch,), jnp.float32),
        "g2": jnp.ones((out_ch,), jnp.float32),
        "be2": jnp.zeros((out_ch,), jnp.float32),
    }


if __name__ == "__main__":
    key = jax.random.PRNGKey(0)
    kx, kp = jax.random.split(key)

    N, in_ch, H, W = 2, 4, 16, 16
    out_ch = 8

    x = jax.random.normal(kx, (N, in_ch, H, W), jnp.float32)  # NCHW like PyTorch
    params = init_params(kp, in_ch, out_ch)

    ref = jax.block_until_ready(double_conv_ref(x, params))

    # f32, 2 row-tiles per image (exercises the halo path)
    f32_fn = jax.jit(functools.partial(double_conv_pallas, tile_h=8,
                                       compute_dtype=jnp.float32))
    out = jax.block_until_ready(f32_fn(x, params))
    assert out.shape == (N, out_ch, H, W), out.shape
    assert jnp.allclose(out, ref, rtol=2e-3, atol=2e-3), float(
        jnp.max(jnp.abs(out - ref)))

    # f32, single tile per image (T == 1 path)
    out1 = jax.block_until_ready(
        jax.jit(functools.partial(double_conv_pallas, tile_h=16,
                                  compute_dtype=jnp.float32))(x, params))
    assert jnp.allclose(out1, ref, rtol=2e-3, atol=2e-3), float(
        jnp.max(jnp.abs(out1 - ref)))

    # bf16 activations/weights, f32 accumulation + f32 BN stats (loose check)
    bf16_fn = jax.jit(functools.partial(double_conv_pallas, tile_h=8,
                                        compute_dtype=jnp.bfloat16))
    out_bf16 = jax.block_until_ready(bf16_fn(x, params))
    assert jnp.allclose(out_bf16, ref, rtol=1e-1, atol=1e-1), float(
        jnp.max(jnp.abs(out_bf16 - ref)))

    print("KERNEL_OK")
</pallas_src>

<mosaic_0001>
module attributes {stable_mosaic.version = 11 : i64} {
  func.func @_conv_bn_stats_kernel(%arg0: i32, %arg1: i32, %arg2: memref<1x8x16x4xf32, #tpu.memory_space<vmem>>, %arg3: memref<1x1x16x4xf32, #tpu.memory_space<vmem>>, %arg4: memref<1x1x16x4xf32, #tpu.memory_space<vmem>>, %arg5: memref<36x8xf32, #tpu.memory_space<vmem>>, %arg6: memref<1x4xf32, #tpu.memory_space<vmem>>, %arg7: memref<1x4xf32, #tpu.memory_space<vmem>>, %arg8: memref<1x8x16x8xf32, #tpu.memory_space<vmem>>, %arg9: memref<1x1x2x8xf32, #tpu.memory_space<vmem>>) attributes {dimension_semantics = [#tpu.dimension_semantics<parallel>, #tpu.dimension_semantics<parallel>], iteration_bounds = array<i64: 2, 2>, scalar_prefetch = 0 : i64, scratch_operands = 0 : i64, tpu.core_type = #tpu.core_type<tc>, window_params = [{transform_indices = @transform_0, window_bounds = array<i64: 1, 8, 16, 4>}, {transform_indices = @transform_1, window_bounds = array<i64: 1, 1, 16, 4>}, {transform_indices = @transform_2, window_bounds = array<i64: 1, 1, 16, 4>}, {pipeline_mode = #tpu.pipeline_mode<synchronous>, transform_indices = @transform_3, window_bounds = array<i64: 36, 8>}, {pipeline_mode = #tpu.pipeline_mode<synchronous>, transform_indices = @transform_4, window_bounds = array<i64: 1, 4>}, {pipeline_mode = #tpu.pipeline_mode<synchronous>, transform_indices = @transform_5, window_bounds = array<i64: 1, 4>}, {transform_indices = @transform_6, window_bounds = array<i64: 1, 8, 16, 8>}, {transform_indices = @transform_7, window_bounds = array<i64: 1, 1, 2, 8>}]} {
    %c0 = arith.constant 0 : index
    %c0_0 = arith.constant 0 : index
    %c0_1 = arith.constant 0 : index
    %c0_2 = arith.constant 0 : index
    %0 = vector.load %arg2[%c0, %c0_0, %c0_1, %c0_2] : memref<1x8x16x4xf32, #tpu.memory_space<vmem>>, vector<1x8x16x4xf32>
    %c0_3 = arith.constant 0 : index
    %c0_4 = arith.constant 0 : index
    %c0_5 = arith.constant 0 : index
    %c0_6 = arith.constant 0 : index
    %1 = vector.load %arg3[%c0_3, %c0_4, %c0_5, %c0_6] : memref<1x1x16x4xf32, #tpu.memory_space<vmem>>, vector<1x1x16x4xf32>
    %c0_7 = arith.constant 0 : index
    %c0_8 = arith.constant 0 : index
    %c0_9 = arith.constant 0 : index
    %c0_10 = arith.constant 0 : index
    %2 = vector.load %arg4[%c0_7, %c0_8, %c0_9, %c0_10] : memref<1x1x16x4xf32, #tpu.memory_space<vmem>>, vector<1x1x16x4xf32>
    %c0_i32 = arith.constant 0 : i32
    %3 = arith.cmpi sgt, %arg1, %c0_i32 : i32
    %cst = arith.constant 1.000000e+00 : f32
    %cst_11 = arith.constant 0.000000e+00 : f32
    %4 = arith.select %3, %cst, %cst_11 : f32
    %5 = vector.broadcast %4 : f32 to vector<1x1x16x4xf32>
    %6 = arith.mulf %1, %5 : vector<1x1x16x4xf32>
    %c1_i32 = arith.constant 1 : i32
    %7 = arith.cmpi slt, %arg1, %c1_i32 : i32
    %cst_12 = arith.constant 1.000000e+00 : f32
    %cst_13 = arith.constant 0.000000e+00 : f32
    %8 = arith.select %7, %cst_12, %cst_13 : f32
    %9 = vector.broadcast %8 : f32 to vector<1x1x16x4xf32>
    %10 = arith.mulf %2, %9 : vector<1x1x16x4xf32>
    %11 = tpu.concatenate %6, %0, %10 in 1 : vector<1x1x16x4xf32>, vector<1x8x16x4xf32>, vector<1x1x16x4xf32> -> vector<1x10x16x4xf32>
    %cst_14 = arith.constant 0.000000e+00 : f32
    %12 = vector.broadcast %cst_14 : f32 to vector<1x10x1x4xf32>
    %13 = tpu.concatenate %12, %11, %12 in 2 : vector<1x10x1x4xf32>, vector<1x10x16x4xf32>, vector<1x10x1x4xf32> -> vector<1x10x18x4xf32>
    %14 = vector.extract_strided_slice %13 {offsets = [0, 0, 0, 0], sizes = [1, 8, 16, 4], strides = [1, 1, 1, 1]} : vector<1x10x18x4xf32> to vector<1x8x16x4xf32>
    %15 = vector.extract_strided_slice %13 {offsets = [0, 0, 1, 0], sizes = [1, 8, 16, 4], strides = [1, 1, 1, 1]} : vector<1x10x18x4xf32> to vector<1x8x16x4xf32>
    %16 = vector.extract_strided_slice %13 {offsets = [0, 0, 2, 0], sizes = [1, 8, 16, 4], strides = [1, 1, 1, 1]} : vector<1x10x18x4xf32> to vector<1x8x16x4xf32>
    %17 = vector.extract_strided_slice %13 {offsets = [0, 1, 0, 0], sizes = [1, 8, 16, 4], strides = [1, 1, 1, 1]} : vector<1x10x18x4xf32> to vector<1x8x16x4xf32>
    %18 = vector.extract_strided_slice %13 {offsets = [0, 1, 1, 0], sizes = [1, 8, 16, 4], strides = [1, 1, 1, 1]} : vector<1x10x18x4xf32> to vector<1x8x16x4xf32>
    %19 = vector.extract_strided_slice %13 {offsets = [0, 1, 2, 0], sizes = [1, 8, 16, 4], strides = [1, 1, 1, 1]} : vector<1x10x18x4xf32> to vector<1x8x16x4xf32>
    %20 = vector.extract_strided_slice %13 {offsets = [0, 2, 0, 0], sizes = [1, 8, 16, 4], strides = [1, 1, 1, 1]} : vector<1x10x18x4xf32> to vector<1x8x16x4xf32>
    %21 = vector.extract_strided_slice %13 {offsets = [0, 2, 1, 0], sizes = [1, 8, 16, 4], strides = [1, 1, 1, 1]} : vector<1x10x18x4xf32> to vector<1x8x16x4xf32>
    %22 = vector.extract_strided_slice %13 {offsets = [0, 2, 2, 0], sizes = [1, 8, 16, 4], strides = [1, 1, 1, 1]} : vector<1x10x18x4xf32> to vector<1x8x16x4xf32>
    %23 = tpu.concatenate %14, %15, %16, %17, %18, %19, %20, %21, %22 in 3 : vector<1x8x16x4xf32>, vector<1x8x16x4xf32>, vector<1x8x16x4xf32>, vector<1x8x16x4xf32>, vector<1x8x16x4xf32>, vector<1x8x16x4xf32>, vector<1x8x16x4xf32>, vector<1x8x16x4xf32>, vector<1x8x16x4xf32> -> vector<1x8x16x36xf32>
    %24 = vector.shape_cast %23 : vector<1x8x16x36xf32> to vector<128x36xf32>
    %c0_15 = arith.constant 0 : index
    %c0_16 = arith.constant 0 : index
    %25 = vector.load %arg5[%c0_15, %c0_16] : memref<36x8xf32, #tpu.memory_space<vmem>>, vector<36x8xf32>
    %cst_17 = arith.constant dense<0.000000e+00> : vector<128x8xf32>
    %26 = tpu.matmul %24, %25, %cst_17 {dimension_numbers = #tpu.dot_dimension_numbers<[1], [0], [0], [1], [0, 0, 1, 1], [], []>} : vector<128x36xf32>, vector<36x8xf32>, vector<128x8xf32> -> vector<128x8xf32>
    %cst_18 = arith.constant dense<0.000000e+00> : vector<8xf32>
    %27 = vector.multi_reduction <add>, %26, %cst_18 [0] : vector<128x8xf32> to vector<8xf32>
    %28 = vector.shape_cast %27 : vector<8xf32> to vector<1x8xf32>
    %29 = arith.mulf %26, %26 : vector<128x8xf32>
    %cst_19 = arith.constant dense<0.000000e+00> : vector<8xf32>
    %30 = vector.multi_reduction <add>, %29, %cst_19 [0] : vector<128x8xf32> to vector<8xf32>
    %31 = vector.shape_cast %30 : vector<8xf32> to vector<1x8xf32>
    %32 = tpu.concatenate %28, %31 in 0 : vector<1x8xf32>, vector<1x8xf32> -> vector<2x8xf32>
    %33 = vector.shape_cast %32 : vector<2x8xf32> to vector<1x1x2x8xf32>
    %c0_20 = arith.constant 0 : index
    %c0_21 = arith.constant 0 : index
    %c0_22 = arith.constant 0 : index
    %c0_23 = arith.constant 0 : index
    %34 = vector.load %arg9[%c0_20, %c0_21, %c0_22, %c0_23] : memref<1x1x2x8xf32, #tpu.memory_space<vmem>>, vector<1x1x2x8xf32>
    tpu.vector_store %arg9[%c0_20, %c0_21, %c0_22, %c0_23], %33 {strides = array<i32>} : memref<1x1x2x8xf32, #tpu.memory_space<vmem>>, vector<1x1x2x8xf32>,
    %35 = vector.shape_cast %26 : vector<128x8xf32> to vector<1x8x16x8xf32>
    %c0_24 = arith.constant 0 : index
    %c0_25 = arith.constant 0 : index
    %c0_26 = arith.constant 0 : index
    %c0_27 = arith.constant 0 : index
    %36 = vector.load %arg8[%c0_24, %c0_25, %c0_26, %c0_27] : memref<1x8x16x8xf32, #tpu.memory_space<vmem>>, vector<1x8x16x8xf32>
    tpu.vector_store %arg8[%c0_24, %c0_25, %c0_26, %c0_27], %35 {strides = array<i32>} : memref<1x8x16x8xf32, #tpu.memory_space<vmem>>, vector<1x8x16x8xf32>,
    return
  }
  func.func @transform_0(%arg0: i32, %arg1: i32) -> (i32, i32, i32, i32) {
    %c0_i32 = arith.constant 0 : i32
    %c0_i32_0 = arith.constant 0 : i32
    %c0_i32_1 = arith.constant 0 : i32
    return %arg0, %arg1, %c0_i32, %c0_i32_0 : i32, i32, i32, i32
  }
  func.func @transform_1(%arg0: i32, %arg1: i32) -> (i32, i32, i32, i32) {
    %c8_i32 = arith.constant 8 : i32
    %0 = arith.muli %arg1, %c8_i32 : i32
    %c1_i32 = arith.constant 1 : i32
    %1 = arith.subi %0, %c1_i32 : i32
    %c0_i32 = arith.constant 0 : i32
    %2 = arith.maxsi %1, %c0_i32 : i32
    %c0_i32_0 = arith.constant 0 : i32
    %c0_i32_1 = arith.constant 0 : i32
    %c0_i32_2 = arith.constant 0 : i32
    return %arg0, %2, %c0_i32_0, %c0_i32_1 : i32, i32, i32, i32
  }
  func.func @transform_2(%arg0: i32, %arg1: i32) -> (i32, i32, i32, i32) {
    %c1_i32 = arith.constant 1 : i32
    %0 = arith.addi %arg1, %c1_i32 : i32
    %c8_i32 = arith.constant 8 : i32
    %1 = arith.muli %0, %c8_i32 : i32
    %c15_i32 = arith.constant 15 : i32
    %2 = arith.minsi %1, %c15_i32 : i32
    %c0_i32 = arith.constant 0 : i32
    %c0_i32_0 = arith.constant 0 : i32
    %c0_i32_1 = arith.constant 0 : i32
    return %arg0, %2, %c0_i32, %c0_i32_0 : i32, i32, i32, i32
  }
  func.func @transform_3(%arg0: i32, %arg1: i32) -> (i32, i32) {
    %c0_i32 = arith.constant 0 : i32
    %c0_i32_0 = arith.constant 0 : i32
    %c0_i32_1 = arith.constant 0 : i32
    return %c0_i32, %c0_i32_0 : i32, i32
  }
  func.func @transform_4(%arg0: i32, %arg1: i32) -> (i32, i32) {
    %c0_i32 = arith.constant 0 : i32
    %c0_i32_0 = arith.constant 0 : i32
    %c0_i32_1 = arith.constant 0 : i32
    return %c0_i32, %c0_i32_0 : i32, i32
  }
  func.func @transform_5(%arg0: i32, %arg1: i32) -> (i32, i32) {
    %c0_i32 = arith.constant 0 : i32
    %c0_i32_0 = arith.constant 0 : i32
    %c0_i32_1 = arith.constant 0 : i32
    return %c0_i32, %c0_i32_0 : i32, i32
  }
  func.func @transform_6(%arg0: i32, %arg1: i32) -> (i32, i32, i32, i32) {
    %c0_i32 = arith.constant 0 : i32
    %c0_i32_0 = arith.constant 0 : i32
    %c0_i32_1 = arith.constant 0 : i32
    return %arg0, %arg1, %c0_i32, %c0_i32_0 : i32, i32, i32, i32
  }
  func.func @transform_7(%arg0: i32, %arg1: i32) -> (i32, i32, i32, i32) {
    %c0_i32 = arith.constant 0 : i32
    %c0_i32_0 = arith.constant 0 : i32
    %c0_i32_1 = arith.constant 0 : i32
    return %arg0, %arg1, %c0_i32, %c0_i32_0 : i32, i32, i32, i32
  }
}

module attributes {stable_mosaic.version = 11 : i64} {
  func.func @_bn_relu_kernel(%arg0: i32, %arg1: i32, %arg2: memref<1x8x16x8xf32, #tpu.memory_space<vmem>>, %arg3: memref<1x1x1x8xf32, #tpu.memory_space<vmem>>, %arg4: memref<1x1x1x8xf32, #tpu.memory_space<vmem>>, %arg5: memref<1x8x16x8xf32, #tpu.memory_space<vmem>>) attributes {dimension_semantics = [#tpu.dimension_semantics<parallel>, #tpu.dimension_semantics<parallel>], iteration_bounds = array<i64: 2, 2>, scalar_prefetch = 0 : i64, scratch_operands = 0 : i64, tpu.core_type = #tpu.core_type<tc>, window_params = [{transform_indices = @transform_0, window_bounds = array<i64: 1, 8, 16, 8>}, {pipeline_mode = #tpu.pipeline_mode<synchronous>, transform_indices = @transform_1, window_bounds = array<i64: 1, 1, 1, 8>}, {pipeline_mode = #tpu.pipeline_mode<synchronous>, transform_indices = @transform_2, window_bounds = array<i64: 1, 1, 1, 8>}, {transform_indices = @transform_3, window_bounds = array<i64: 1, 8, 16, 8>}]} {
    %c0 = arith.constant 0 : index
    %c0_0 = arith.constant 0 : index
    %c0_1 = arith.constant 0 : index
    %c0_2 = arith.constant 0 : index
    %0 = vector.load %arg2[%c0, %c0_0, %c0_1, %c0_2] : memref<1x8x16x8xf32, #tpu.memory_space<vmem>>, vector<1x8x16x8xf32>
    %c0_3 = arith.constant 0 : index
    %c0_4 = arith.constant 0 : index
    %c0_5 = arith.constant 0 : index
    %c0_6 = arith.constant 0 : index
    %1 = vector.load %arg3[%c0_3, %c0_4, %c0_5, %c0_6] : memref<1x1x1x8xf32, #tpu.memory_space<vmem>>, vector<1x1x1x8xf32>
    %2 = vector.broadcast %1 : vector<1x1x1x8xf32> to vector<1x8x16x8xf32>
    %3 = arith.mulf %0, %2 : vector<1x8x16x8xf32>
    %c0_7 = arith.constant 0 : index
    %c0_8 = arith.constant 0 : index
    %c0_9 = arith.constant 0 : index
    %c0_10 = arith.constant 0 : index
    %4 = vector.load %arg4[%c0_7, %c0_8, %c0_9, %c0_10] : memref<1x1x1x8xf32, #tpu.memory_space<vmem>>, vector<1x1x1x8xf32>
    %5 = vector.broadcast %4 : vector<1x1x1x8xf32> to vector<1x8x16x8xf32>
    %6 = arith.addf %3, %5 : vector<1x8x16x8xf32>
    %cst = arith.constant 0.000000e+00 : f32
    %7 = vector.broadcast %cst : f32 to vector<1x8x16x8xf32>
    %8 = arith.maximumf %6, %7 : vector<1x8x16x8xf32>
    %c0_11 = arith.constant 0 : index
    %c0_12 = arith.constant 0 : index
    %c0_13 = arith.constant 0 : index
    %c0_14 = arith.constant 0 : index
    %9 = vector.load %arg5[%c0_11, %c0_12, %c0_13, %c0_14] : memref<1x8x16x8xf32, #tpu.memory_space<vmem>>, vector<1x8x16x8xf32>
    tpu.vector_store %arg5[%c0_11, %c0_12, %c0_13, %c0_14], %8 {strides = array<i32>} : memref<1x8x16x8xf32, #tpu.memory_space<vmem>>, vector<1x8x16x8xf32>,
    return
  }
  func.func @transform_0(%arg0: i32, %arg1: i32) -> (i32, i32, i32, i32) {
    %c0_i32 = arith.constant 0 : i32
    %c0_i32_0 = arith.constant 0 : i32
    %c0_i32_1 = arith.constant 0 : i32
    return %arg0, %arg1, %c0_i32, %c0_i32_0 : i32, i32, i32, i32
  }
  func.func @transform_1(%arg0: i32, %arg1: i32) -> (i32, i32, i32, i32) {
    %c0_i32 = arith.constant 0 : i32
    %c0_i32_0 = arith.constant 0 : i32
    %c0_i32_1 = arith.constant 0 : i32
    %c0_i32_2 = arith.constant 0 : i32
    %c0_i32_3 = arith.constant 0 : i32
    return %c0_i32, %c0_i32_0, %c0_i32_1, %c0_i32_2 : i32, i32, i32, i32
  }
  func.func @transform_2(%arg0: i32, %arg1: i32) -> (i32, i32, i32, i32) {
    %c0_i32 = arith.constant 0 : i32
    %c0_i32_0 = arith.constant 0 : i32
    %c0_i32_1 = arith.constant 0 : i32
    %c0_i32_2 = arith.constant 0 : i32
    %c0_i32_3 = arith.constant 0 : i32
    return %c0_i32, %c0_i32_0, %c0_i32_1, %c0_i32_2 : i32, i32, i32, i32
  }
  func.func @transform_3(%arg0: i32, %arg1: i32) -> (i32, i32, i32, i32) {
    %c0_i32 = arith.constant 0 : i32
    %c0_i32_0 = arith.constant 0 : i32
    %c0_i32_1 = arith.constant 0 : i32
    return %arg0, %arg1, %c0_i32, %c0_i32_0 : i32, i32, i32, i32
  }
}

module attributes {stable_mosaic.version = 11 : i64} {
  func.func @_conv_bn_stats_kernel(%arg0: i32, %arg1: i32, %arg2: memref<1x8x16x8xf32, #tpu.memory_space<vmem>>, %arg3: memref<1x1x16x8xf32, #tpu.memory_space<vmem>>, %arg4: memref<1x1x16x8xf32, #tpu.memory_space<vmem>>, %arg5: memref<72x8xf32, #tpu.memory_space<vmem>>, %arg6: memref<1x8xf32, #tpu.memory_space<vmem>>, %arg7: memref<1x8xf32, #tpu.memory_space<vmem>>, %arg8: memref<1x8x16x8xf32, #tpu.memory_space<vmem>>, %arg9: memref<1x1x2x8xf32, #tpu.memory_space<vmem>>) attributes {dimension_semantics = [#tpu.dimension_semantics<parallel>, #tpu.dimension_semantics<parallel>], iteration_bounds = array<i64: 2, 2>, scalar_prefetch = 0 : i64, scratch_operands = 0 : i64, tpu.core_type = #tpu.core_type<tc>, window_params = [{transform_indices = @transform_0, window_bounds = array<i64: 1, 8, 16, 8>}, {transform_indices = @transform_1, window_bounds = array<i64: 1, 1, 16, 8>}, {transform_indices = @transform_2, window_bounds = array<i64: 1, 1, 16, 8>}, {pipeline_mode = #tpu.pipeline_mode<synchronous>, transform_indices = @transform_3, window_bounds = array<i64: 72, 8>}, {pipeline_mode = #tpu.pipeline_mode<synchronous>, transform_indices = @transform_4, window_bounds = array<i64: 1, 8>}, {pipeline_mode = #tpu.pipeline_mode<synchronous>, transform_indices = @transform_5, window_bounds = array<i64: 1, 8>}, {transform_indices = @transform_6, window_bounds = array<i64: 1, 8, 16, 8>}, {transform_indices = @transform_7, window_bounds = array<i64: 1, 1, 2, 8>}]} {
    %c0 = arith.constant 0 : index
    %c0_0 = arith.constant 0 : index
    %c0_1 = arith.constant 0 : index
    %c0_2 = arith.constant 0 : index
    %0 = vector.load %arg2[%c0, %c0_0, %c0_1, %c0_2] : memref<1x8x16x8xf32, #tpu.memory_space<vmem>>, vector<1x8x16x8xf32>
    %c0_3 = arith.constant 0 : index
    %c0_4 = arith.constant 0 : index
    %c0_5 = arith.constant 0 : index
    %c0_6 = arith.constant 0 : index
    %1 = vector.load %arg3[%c0_3, %c0_4, %c0_5, %c0_6] : memref<1x1x16x8xf32, #tpu.memory_space<vmem>>, vector<1x1x16x8xf32>
    %c0_7 = arith.constant 0 : index
    %c0_8 = arith.constant 0 : index
    %c0_9 = arith.constant 0 : index
    %c0_10 = arith.constant 0 : index
    %2 = vector.load %arg4[%c0_7, %c0_8, %c0_9, %c0_10] : memref<1x1x16x8xf32, #tpu.memory_space<vmem>>, vector<1x1x16x8xf32>
    %c0_11 = arith.constant 0 : index
    %c0_12 = arith.constant 0 : index
    %3 = vector.load %arg6[%c0_11, %c0_12] : memref<1x8xf32, #tpu.memory_space<vmem>>, vector<1x8xf32>
    %4 = vector.shape_cast %3 : vector<1x8xf32> to vector<1x1x1x8xf32>
    %c0_13 = arith.constant 0 : index
    %c0_14 = arith.constant 0 : index
    %5 = vector.load %arg7[%c0_13, %c0_14] : memref<1x8xf32, #tpu.memory_space<vmem>>, vector<1x8xf32>
    %6 = vector.shape_cast %5 : vector<1x8xf32> to vector<1x1x1x8xf32>
    %7 = vector.broadcast %4 : vector<1x1x1x8xf32> to vector<1x8x16x8xf32>
    %8 = arith.mulf %0, %7 : vector<1x8x16x8xf32>
    %9 = vector.broadcast %6 : vector<1x1x1x8xf32> to vector<1x8x16x8xf32>
    %10 = arith.addf %8, %9 : vector<1x8x16x8xf32>
    %cst = arith.constant 0.000000e+00 : f32
    %11 = vector.broadcast %cst : f32 to vector<1x8x16x8xf32>
    %12 = arith.maximumf %10, %11 : vector<1x8x16x8xf32>
    %13 = vector.broadcast %4 : vector<1x1x1x8xf32> to vector<1x1x16x8xf32>
    %14 = arith.mulf %1, %13 : vector<1x1x16x8xf32>
    %15 = vector.broadcast %6 : vector<1x1x1x8xf32> to vector<1x1x16x8xf32>
    %16 = arith.addf %14, %15 : vector<1x1x16x8xf32>
    %cst_15 = arith.constant 0.000000e+00 : f32
    %17 = vector.broadcast %cst_15 : f32 to vector<1x1x16x8xf32>
    %18 = arith.maximumf %16, %17 : vector<1x1x16x8xf32>
    %19 = vector.broadcast %4 : vector<1x1x1x8xf32> to vector<1x1x16x8xf32>
    %20 = arith.mulf %2, %19 : vector<1x1x16x8xf32>
    %21 = vector.broadcast %6 : vector<1x1x1x8xf32> to vector<1x1x16x8xf32>
    %22 = arith.addf %20, %21 : vector<1x1x16x8xf32>
    %cst_16 = arith.constant 0.000000e+00 : f32
    %23 = vector.broadcast %cst_16 : f32 to vector<1x1x16x8xf32>
    %24 = arith.maximumf %22, %23 : vector<1x1x16x8xf32>
    %c0_i32 = arith.constant 0 : i32
    %25 = arith.cmpi sgt, %arg1, %c0_i32 : i32
    %cst_17 = arith.constant 1.000000e+00 : f32
    %cst_18 = arith.constant 0.000000e+00 : f32
    %26 = arith.select %25, %cst_17, %cst_18 : f32
    %27 = vector.broadcast %26 : f32 to vector<1x1x16x8xf32>
    %28 = arith.mulf %18, %27 : vector<1x1x16x8xf32>
    %c1_i32 = arith.constant 1 : i32
    %29 = arith.cmpi slt, %arg1, %c1_i32 : i32
    %cst_19 = arith.constant 1.000000e+00 : f32
    %cst_20 = arith.constant 0.000000e+00 : f32
    %30 = arith.select %29, %cst_19, %cst_20 : f32
    %31 = vector.broadcast %30 : f32 to vector<1x1x16x8xf32>
    %32 = arith.mulf %24, %31 : vector<1x1x16x8xf32>
    %33 = tpu.concatenate %28, %12, %32 in 1 : vector<1x1x16x8xf32>, vector<1x8x16x8xf32>, vector<1x1x16x8xf32> -> vector<1x10x16x8xf32>
    %cst_21 = arith.constant 0.000000e+00 : f32
    %34 = vector.broadcast %cst_21 : f32 to vector<1x10x1x8xf32>
    %35 = tpu.concatenate %34, %33, %34 in 2 : vector<1x10x1x8xf32>, vector<1x10x16x8xf32>, vector<1x10x1x8xf32> -> vector<1x10x18x8xf32>
    %36 = vector.extract_strided_slice %35 {offsets = [0, 0, 0, 0], sizes = [1, 8, 16, 8], strides = [1, 1, 1, 1]} : vector<1x10x18x8xf32> to vector<1x8x16x8xf32>
    %37 = vector.extract_strided_slice %35 {offsets = [0, 0, 1, 0], sizes = [1, 8, 16, 8], strides = [1, 1, 1, 1]} : vector<1x10x18x8xf32> to vector<1x8x16x8xf32>
    %38 = vector.extract_strided_slice %35 {offsets = [0, 0, 2, 0], sizes = [1, 8, 16, 8], strides = [1, 1, 1, 1]} : vector<1x10x18x8xf32> to vector<1x8x16x8xf32>
    %39 = vector.extract_strided_slice %35 {offsets = [0, 1, 0, 0], sizes = [1, 8, 16, 8], strides = [1, 1, 1, 1]} : vector<1x10x18x8xf32> to vector<1x8x16x8xf32>
    %40 = vector.extract_strided_slice %35 {offsets = [0, 1, 1, 0], sizes = [1, 8, 16, 8], strides = [1, 1, 1, 1]} : vector<1x10x18x8xf32> to vector<1x8x16x8xf32>
    %41 = vector.extract_strided_slice %35 {offsets = [0, 1, 2, 0], sizes = [1, 8, 16, 8], strides = [1, 1, 1, 1]} : vector<1x10x18x8xf32> to vector<1x8x16x8xf32>
    %42 = vector.extract_strided_slice %35 {offsets = [0, 2, 0, 0], sizes = [1, 8, 16, 8], strides = [1, 1, 1, 1]} : vector<1x10x18x8xf32> to vector<1x8x16x8xf32>
    %43 = vector.extract_strided_slice %35 {offsets = [0, 2, 1, 0], sizes = [1, 8, 16, 8], strides = [1, 1, 1, 1]} : vector<1x10x18x8xf32> to vector<1x8x16x8xf32>
    %44 = vector.extract_strided_slice %35 {offsets = [0, 2, 2, 0], sizes = [1, 8, 16, 8], strides = [1, 1, 1, 1]} : vector<1x10x18x8xf32> to vector<1x8x16x8xf32>
    %45 = tpu.concatenate %36, %37, %38, %39, %40, %41, %42, %43, %44 in 3 : vector<1x8x16x8xf32>, vector<1x8x16x8xf32>, vector<1x8x16x8xf32>, vector<1x8x16x8xf32>, vector<1x8x16x8xf32>, vector<1x8x16x8xf32>, vector<1x8x16x8xf32>, vector<1x8x16x8xf32>, vector<1x8x16x8xf32> -> vector<1x8x16x72xf32>
    %46 = vector.shape_cast %45 : vector<1x8x16x72xf32> to vector<128x72xf32>
    %c0_22 = arith.constant 0 : index
    %c0_23 = arith.constant 0 : index
    %47 = vector.load %arg5[%c0_22, %c0_23] : memref<72x8xf32, #tpu.memory_space<vmem>>, vector<72x8xf32>
    %cst_24 = arith.constant dense<0.000000e+00> : vector<128x8xf32>
    %48 = tpu.matmul %46, %47, %cst_24 {dimension_numbers = #tpu.dot_dimension_numbers<[1], [0], [0], [1], [0, 0, 1, 1], [], []>} : vector<128x72xf32>, vector<72x8xf32>, vector<128x8xf32> -> vector<128x8xf32>
    %cst_25 = arith.constant dense<0.000000e+00> : vector<8xf32>
    %49 = vector.multi_reduction <add>, %48, %cst_25 [0] : vector<128x8xf32> to vector<8xf32>
    %50 = vector.shape_cast %49 : vector<8xf32> to vector<1x8xf32>
    %51 = arith.mulf %48, %48 : vector<128x8xf32>
    %cst_26 = arith.constant dense<0.000000e+00> : vector<8xf32>
    %52 = vector.multi_reduction <add>, %51, %cst_26 [0] : vector<128x8xf32> to vector<8xf32>
    %53 = vector.shape_cast %52 : vector<8xf32> to vector<1x8xf32>
    %54 = tpu.concatenate %50, %53 in 0 : vector<1x8xf32>, vector<1x8xf32> -> vector<2x8xf32>
    %55 = vector.shape_cast %54 : vector<2x8xf32> to vector<1x1x2x8xf32>
    %c0_27 = arith.constant 0 : index
    %c0_28 = arith.constant 0 : index
    %c0_29 = arith.constant 0 : index
    %c0_30 = arith.constant 0 : index
    %56 = vector.load %arg9[%c0_27, %c0_28, %c0_29, %c0_30] : memref<1x1x2x8xf32, #tpu.memory_space<vmem>>, vector<1x1x2x8xf32>
    tpu.vector_store %arg9[%c0_27, %c0_28, %c0_29, %c0_30], %55 {strides = array<i32>} : memref<1x1x2x8xf32, #tpu.memory_space<vmem>>, vector<1x1x2x8xf32>,
    %57 = vector.shape_cast %48 : vector<128x8xf32> to vector<1x8x16x8xf32>
    %c0_31 = arith.constant 0 : index
    %c0_32 = arith.constant 0 : index
    %c0_33 = arith.constant 0 : index
    %c0_34 = arith.constant 0 : index
    %58 = vector.load %arg8[%c0_31, %c0_32, %c0_33, %c0_34] : memref<1x8x16x8xf32, #tpu.memory_space<vmem>>, vector<1x8x16x8xf32>
    tpu.vector_store %arg8[%c0_31, %c0_32, %c0_33, %c0_34], %57 {strides = array<i32>} : memref<1x8x16x8xf32, #tpu.memory_space<vmem>>, vector<1x8x16x8xf32>,
    return
  }
  func.func @transform_0(%arg0: i32, %arg1: i32) -> (i32, i32, i32, i32) {
    %c0_i32 = arith.constant 0 : i32
    %c0_i32_0 = arith.constant 0 : i32
    %c0_i32_1 = arith.constant 0 : i32
    return %arg0, %arg1, %c0_i32, %c0_i32_0 : i32, i32, i32, i32
  }
  func.func @transform_1(%arg0: i32, %arg1: i32) -> (i32, i32, i32, i32) {
    %c8_i32 = arith.constant 8 : i32
    %0 = arith.muli %arg1, %c8_i32 : i32
    %c1_i32 = arith.constant 1 : i32
    %1 = arith.subi %0, %c1_i32 : i32
    %c0_i32 = arith.constant 0 : i32
    %2 = arith.maxsi %1, %c0_i32 : i32
    %c0_i32_0 = arith.constant 0 : i32
    %c0_i32_1 = arith.constant 0 : i32
    %c0_i32_2 = arith.constant 0 : i32
    return %arg0, %2, %c0_i32_0, %c0_i32_1 : i32, i32, i32, i32
  }
  func.func @transform_2(%arg0: i32, %arg1: i32) -> (i32, i32, i32, i32) {
    %c1_i32 = arith.constant 1 : i32
    %0 = arith.addi %arg1, %c1_i32 : i32
    %c8_i32 = arith.constant 8 : i32
    %1 = arith.muli %0, %c8_i32 : i32
    %c15_i32 = arith.constant 15 : i32
    %2 = arith.minsi %1, %c15_i32 : i32
    %c0_i32 = arith.constant 0 : i32
    %c0_i32_0 = arith.constant 0 : i32
    %c0_i32_1 = arith.constant 0 : i32
    return %arg0, %2, %c0_i32, %c0_i32_0 : i32, i32, i32, i32
  }
  func.func @transform_3(%arg0: i32, %arg1: i32) -> (i32, i32) {
    %c0_i32 = arith.constant 0 : i32
    %c0_i32_0 = arith.constant 0 : i32
    %c0_i32_1 = arith.constant 0 : i32
    return %c0_i32, %c0_i32_0 : i32, i32
  }
  func.func @transform_4(%arg0: i32, %arg1: i32) -> (i32, i32) {
    %c0_i32 = arith.constant 0 : i32
    %c0_i32_0 = arith.constant 0 : i32
    %c0_i32_1 = arith.constant 0 : i32
    return %c0_i32, %c0_i32_0 : i32, i32
  }
  func.func @transform_5(%arg0: i32, %arg1: i32) -> (i32, i32) {
    %c0_i32 = arith.constant 0 : i32
    %c0_i32_0 = arith.constant 0 : i32
    %c0_i32_1 = arith.constant 0 : i32
    return %c0_i32, %c0_i32_0 : i32, i32
  }
  func.func @transform_6(%arg0: i32, %arg1: i32) -> (i32, i32, i32, i32) {
    %c0_i32 = arith.constant 0 : i32
    %c0_i32_0 = arith.constant 0 : i32
    %c0_i32_1 = arith.constant 0 : i32
    return %arg0, %arg1, %c0_i32, %c0_i32_0 : i32, i32, i32, i32
  }
  func.func @transform_7(%arg0: i32, %arg1: i32) -> (i32, i32, i32, i32) {
    %c0_i32 = arith.constant 0 : i32
    %c0_i32_0 = arith.constant 0 : i32
    %c0_i32_1 = arith.constant 0 : i32
    return %arg0, %arg1, %c0_i32, %c0_i32_0 : i32, i32, i32, i32
  }
}

</mosaic_0001>

<bundles_post_ra>
// kernel: double_conv_pallas.5
= control target key start
LH: loop header
LB: loop body
LE: loop exit
PB: predicated region body
PF: predicated region fallthrough
CT: control target
= control target key end

     0   :  { %s520_s12 = smov 0   ;;  %s522_s13 = smov 0   ;;  %s647_s0 = inlined_call_operand.vmem [shape: f32[2,16,16,8], index: 0, kind: input, shape index: {}]   ;;  %s648_s1 = inlined_call_operand.vmem [shape: f32[1,1,1,8], index: 1, kind: input, shape index: {}]   ;;  %s649_s2 = inlined_call_operand.vmem [shape: f32[1,1,1,8], index: 2, kind: input, shape index: {}]   ;;  %s650_s3 = inlined_call_operand.vmem [shape: f32[2,16,16,8], index: 3, kind: output, shape index: {}]  }
   0x1   :  { %s524_s14 = smov 0   ;;  %s526_s15 = smov 0  }
   0x2   :  { %s528_s16 = smov 0  }
   0x3 LB: > { %s22_s17 = sadd.s32 1, %s490_s14  ;;  %s25_s18 = sadd.s32 1, %s494_s15  ;;  %s498_s16 = sphi %s528_s16, %s13_s16   ;;  %s494_s15 = sphi %s526_s15, %s654_s15   ;;  %s490_s14 = sphi %s524_s14, %s653_s14   ;;  %s486_s13 = sphi %s522_s13, %s652_s13   ;;  %s482_s12 = sphi %s520_s12, %s651_s12  }
   0x4   : > { %p23_p0 = scmp.ge.s32.totalorder %s22_s17, 2  ;;  %p407_p1 = scmp.ge.s32.totalorder %s498_s16, 1 }
   0x5   : > { %p159_p2 = scmp.lt.s32.totalorder %s498_s16, 5 }
   0x6   : > { %s656_s17 = smov (%p23_p0, %s22_s17), 0  ;;  %s658_s18 = smov (!%p23_p0, %s25_s18), %s494_s15 }
   0x7   : > { %p160_p3 = pnand %p407_p1, %p159_p2  ;;  %p27_p4 = scmp.ge.s32.totalorder %s658_s18, 2 }
   0x8   : > { %s408_s19 = sshll.u32 (!%p160_p3), %s482_s12, 3  ;;  %p194_p5 = scmp.lt.s32.totalorder (!%p160_p3), %s486_s13, 1 }
   0x9   : > { %s660_s18 = smov (%p27_p4, %s658_s18), 0  ;;  %163 = sbr.rel (%p160_p3) target bundleno = 42 (0x2a), region = 32 }
   0xa   : > { %p196_p6 = scmp.lt.s32.totalorder (!%p160_p3), %s408_s19, 15 }
   0xe   : > { %s662_s13 = smov (!%p194_p5, %s486_s13), 1  ;;  %s664_s19 = smov (!%p196_p6, %s408_s19), 15  ;;  %v458_v0 = vld [vmem:[%s648_s1] ss:$0 sm:$0xff]  ;;  %vm287_vm0 = vcmask 64512  }
   0xf   : > { %s410_s20 = sshll.u32 %s662_s13, 5  ;;  %s409_s21 = sshll.u32 %s664_s19, 1  ;;  %v561_v1 = vld [vmem:[%s649_s2] ss:$0 sm:$0xff] }
  0x10   : > { %s200_s22 = sadd.s32 %s410_s20, %s409_s21 }
  0x11   : > { %s411_s25 = sshll.u32 %s200_s22, 3 }
  0x12   : > { %s556_s28 = scalar_lea.vmem %s647_s0, %s411_s25  ;;  %s577_s6 = scalar_lea.vmem %s650_s3, %s411_s25 }
  0x13   : > { %v215_v2 = vld [vmem:[%s556_s28] sm:$0xff]  ;;  %v216_v3 = vld [vmem:[%s556_s28 + $0x8] sm:$0xff]  ;;  %v217_v4 = vld [vmem:[%s556_s28 + $0x10] sm:$0xff] }
  0x14   : > { %v235_v5 = vmul.f32 %v458_v0, %v215_v2  ;;  %v236_v6 = vmul.f32 %v458_v0, %v216_v3  ;;  %v237_v7 = vmul.f32 %v458_v0, %v217_v4  ;;  %v218_v8 = vld [vmem:[%s556_s28 + $0x18] sm:$0xff]  ;;  %v219_v9 = vld [vmem:[%s556_s28 + $0x20] sm:$0xff]  ;;  %v220_v10 = vld [vmem:[%s556_s28 + $0x28] sm:$0xff] }
  0x15   : > { %v238_v11 = vmul.f32 %v458_v0, %v218_v8  ;;  %v239_v12 = vmul.f32 %v458_v0, %v219_v9  ;;  %v240_v13 = vmul.f32 %v458_v0, %v220_v10  ;;  %v221_v14 = vld [vmem:[%s556_s28 + $0x30] sm:$0xff]  ;;  %v222_v15 = vld [vmem:[%s556_s28 + $0x38] sm:$0xff]  ;;  %v223_v24 = vld [vmem:[%s556_s28 + $0x40] sm:$0xff] }
  0x16   : > { %v255_v16 = vadd.f32 %v561_v1, %v235_v5  ;;  %v256_v17 = vadd.f32 %v561_v1, %v236_v6  ;;  %v257_v18 = vadd.f32 %v561_v1, %v237_v7  ;;  %v241_v19 = vmul.f32 %v458_v0, %v221_v14  ;;  %v224_v25 = vld [vmem:[%s556_s28 + $0x48] sm:$0xff]  ;;  %v225_v26 = vld [vmem:[%s556_s28 + $0x50] sm:$0xff]  ;;  %v226_v31 = vld [vmem:[%s556_s28 + $0x58] sm:$0xff] }
  0x17   : > { %v258_v20 = vadd.f32 %v561_v1, %v238_v11  ;;  %v259_v21 = vadd.f32 %v561_v1, %v239_v12  ;;  %v260_v22 = vadd.f32 %v561_v1, %v240_v13  ;;  %v242_v23 = vmul.f32 %v458_v0, %v222_v15  ;;  %v227_v32 = vld [vmem:[%s556_s28 + $0x60] sm:$0xff]  ;;  %v228_v33 = vld [vmem:[%s556_s28 + $0x68] sm:$0xff]  ;;  %v229_v37 = vld [vmem:[%s556_s28 + $0x70] sm:$0xff] }
  0x18   : > { %v271_v27 = vmax.f32 %v255_v16, 0.0  ;;  %v272_v28 = vmax.f32 %v256_v17, 0.0  ;;  %v273_v29 = vmax.f32 %v257_v18, 0.0  ;;  %v261_v30 = vadd.f32 %v561_v1, %v241_v19  ;;  %v230_v42 = vld [vmem:[%s556_s28 + $0x78] sm:$0xff] }
  0x19   : > { %v274_v34 = vmax.f32 %v258_v20, 0.0  ;;  %v275_v35 = vmax.f32 %v259_v21, 0.0  ;;  %v262_v36 = vadd.f32 %v561_v1, %v242_v23  ;;  %v276_v38 = vmax.f32 %v260_v22, 0.0 }
  0x1a   : > { %288 = vst.msk [vmem:[%s577_s6] sm:$0xff] %vm287_vm0, %v271_v27  ;;  %v243_v39 = vmul.f32 %v458_v0, %v223_v24  ;;  %v244_v40 = vmul.f32 %v458_v0, %v224_v25  ;;  %v245_v41 = vmul.f32 %v458_v0, %v225_v26  ;;  %v277_v43 = vmax.f32 %v261_v30, 0.0 }
  0x1b   : > { %289 = vst.msk [vmem:[%s577_s6 + $0x8] sm:$0xff] %vm287_vm0, %v272_v28  ;;  %v246_v44 = vmul.f32 %v458_v0, %v226_v31  ;;  %v247_v45 = vmul.f32 %v458_v0, %v227_v32  ;;  %v248_v46 = vmul.f32 %v458_v0, %v228_v33  ;;  %v249_v50 = vmul.f32 %v458_v0, %v229_v37 }
  0x1c   : > { %290 = vst.msk [vmem:[%s577_s6 + $0x10] sm:$0xff] %vm287_vm0, %v273_v29  ;;  %v263_v47 = vadd.f32 %v561_v1, %v243_v39  ;;  %v264_v48 = vadd.f32 %v561_v1, %v244_v40  ;;  %v265_v49 = vadd.f32 %v561_v1, %v245_v41  ;;  %v278_v51 = vmax.f32 %v262_v36, 0.0 }
  0x1d   : > { %291 = vst.msk [vmem:[%s577_s6 + $0x18] sm:$0xff] %vm287_vm0, %v274_v34  ;;  %v266_v52 = vadd.f32 %v561_v1, %v246_v44  ;;  %v250_v53 = vmul.f32 %v458_v0, %v230_v42  ;;  %v267_v55 = vadd.f32 %v561_v1, %v247_v45  ;;  %v268_v57 = vadd.f32 %v561_v1, %v248_v46 }
  0x1e   : > { %292 = vst.msk [vmem:[%s577_s6 + $0x20] sm:$0xff] %vm287_vm0, %v275_v35  ;;  %v279_v54 = vmax.f32 %v263_v47, 0.0  ;;  %v280_v56 = vmax.f32 %v264_v48, 0.0  ;;  %v281_v58 = vmax.f32 %v265_v49, 0.0  ;;  %v269_v59 = vadd.f32 %v561_v1, %v249_v50 }
  0x1f   : > { %293 = vst.msk [vmem:[%s577_s6 + $0x28] sm:$0xff] %vm287_vm0, %v276_v38  ;;  %v282_v60 = vmax.f32 %v266_v52, 0.0  ;;  %v270_v61 = vadd.f32 %v561_v1, %v250_v53  ;;  %v283_v62 = vmax.f32 %v267_v55, 0.0  ;;  %v284_v63 = vmax.f32 %v268_v57, 0.0 }
  0x20   : > { %294 = vst.msk [vmem:[%s577_s6 + $0x30] sm:$0xff] %vm287_vm0, %v277_v43  ;;  %v285_v0 = vmax.f32 %v269_v59, 0.0 }
  0x21   : > { %295 = vst.msk [vmem:[%s577_s6 + $0x38] sm:$0xff] %vm287_vm0, %v278_v51  ;;  %v286_v2 = vmax.f32 %v270_v61, 0.0 }
  0x22   : > { %296 = vst.msk [vmem:[%s577_s6 + $0x40] sm:$0xff] %vm287_vm0, %v279_v54 }
  0x23   : > { %297 = vst.msk [vmem:[%s577_s6 + $0x48] sm:$0xff] %vm287_vm0, %v280_v56 }
  0x24   : > { %298 = vst.msk [vmem:[%s577_s6 + $0x50] sm:$0xff] %vm287_vm0, %v281_v58 }
  0x25   : > { %299 = vst.msk [vmem:[%s577_s6 + $0x58] sm:$0xff] %vm287_vm0, %v282_v60 }
  0x26   : > { %300 = vst.msk [vmem:[%s577_s6 + $0x60] sm:$0xff] %vm287_vm0, %v283_v62 }
  0x27   : > { %301 = vst.msk [vmem:[%s577_s6 + $0x68] sm:$0xff] %vm287_vm0, %v284_v63 }
  0x28   : > { %302 = vst.msk [vmem:[%s577_s6 + $0x70] sm:$0xff] %vm287_vm0, %v285_v0 }
  0x29   : > { %303 = vst.msk [vmem:[%s577_s6 + $0x78] sm:$0xff] %vm287_vm0, %v286_v2 }
  0x2a PF: > { %s13_s16 = sadd.s32 1, %s498_s16   ;;  %s651_s12 = smov %s490_s14 }
  0x2b   : > { %p10_p7 = scmp.ge.s32.totalorder %s13_s16, 6   ;;  %s652_s13 = smov %s494_s15 }
  0x2c   : > { %s653_s14 = smov %s656_s17  ;;  %s654_s15 = smov %s660_s18 }
  0x2d   :  { %12 = sbr.rel (!%p10_p7) target bundleno = 3 (0x3), region = 62 }

// kernel: double_conv_pallas.3
= control target key start
LH: loop header
LB: loop body
LE: loop exit
PB: predicated region body
PF: predicated region fallthrough
CT: control target
= control target key end

     0   :  { %s1875_s24 = smov 0   ;;  %s1877_s25 = smov 0   ;;  %s2838_s0 = inlined_call_operand.vmem [shape: f32[2,16,16,4], index: 0, kind: input, shape index: {}, may-alias: {0,1,2}]   ;;  %s2839_s1 = inlined_call_operand.vmem [shape: f32[2,16,16,4], index: 1, kind: input, shape index: {}, may-alias: {0,1,2}]   ;;  %s2840_s2 = inlined_call_operand.vmem [shape: f32[2,16,16,4], index: 2, kind: input, shape index: {}, may-alias: {0,1,2}]   ;;  %s2841_s3 = inlined_call_operand.vmem [shape: f32[36,8], index: 3, kind: input, shape index: {}]   ;;  %s2842_s4 = inlined_call_operand.vmem [shape: f32[1,4], index: 4, kind: input, shape index: {}]   ;;  %s2843_s5 = inlined_call_operand.vmem [shape: f32[1,4], index: 5, kind: input, shape index: {}]   ;;  %s2844_s6 = inlined_call_operand.vmem [shape: f32[2,16,16,8], index: 6, kind: output, shape index: {0}]   ;;  %s2845_s7 = inlined_call_operand.vmem [shape: f32[2,2,2,8], index: 7, kind: output, shape index: {1}]  }
   0x1   :  { %s1879_s26 = smov 0   ;;  %s1881_s27 = smov 0  }
   0x2   :  { %s1883_s28 = smov 0  }
   0x3 LB: > { %s27_s4 = sadd.s32 1, %s1817_s26  ;;  %s30_s5 = sadd.s32 1, %s1821_s27  ;;  %s1825_s28 = sphi %s1883_s28, %s18_s28   ;;  %s1821_s27 = sphi %s1881_s27, %s2855_s27   ;;  %s1817_s26 = sphi %s1879_s26, %s2854_s26   ;;  %s1813_s25 = sphi %s1877_s25, %s2853_s25   ;;  %s1809_s24 = sphi %s1875_s24, %s2852_s24  }
   0x4   : > { %p28_p0 = scmp.ge.s32.totalorder %s27_s4, 2  ;;  %p1669_p1 = scmp.ge.s32.totalorder %s1825_s28, 1 }
   0x5   : > { %p328_p2 = scmp.lt.s32.totalorder %s1825_s28, 5 }
   0x6   : > { %s2857_s4 = smov (%p28_p0, %s27_s4), 0  ;;  %s2859_s5 = smov (!%p28_p0, %s30_s5), %s1821_s27 }
   0x7   : > { %p329_p3 = pnand %p1669_p1, %p328_p2  ;;  %p32_p4 = scmp.ge.s32.totalorder %s2859_s5, 2 }
   0x9   : > { %s2861_s5 = smov (%p32_p4, %s2859_s5), 0  ;;  %332 = sbr.rel (%p329_p3) target bundleno = 636 (0x27c), region = 44 }
   0xe   : > { %s1908_s29 = sshll.u32 %s1809_s24, 3  ;;  %p405_p5 = scmp.lt.s32.totalorder %s1813_s25, 1  ;;  %vm518_vm0 = vcmask 1040384   ;;  %vm613_vm1 = vcmask 1046528   ;;  %vm702_vm2 = vcmask 1045504   ;;  %vm1120_vm3 = vcmask 64512  }
   0xf   : > { %p407_p6 = scmp.lt.s32.totalorder %s1908_s29, 15  ;;  %s1675_s9 = sadd.s32 4294967295, %s1908_s29  ;;  %vm1103_vm4 = vcmask 31744   ;;  %vm1137_vm5 = vcmask 97280   ;;  %vm1293_vm6 = vcmask 1043456   ;;  %vm1154_vm7 = vcmask 130048  }
  0x10   : > { %s2863_s25 = smov (!%p405_p5, %s1813_s25), 1  ;;  %p417_p7 = scmp.gt.s32.totalorder %s1675_s9, 0  ;;  %vm1171_vm8 = vcmask 162816   ;;  %vm1188_vm9 = vcmask 195584   ;;  %vm1205_vm10 = vcmask 228352   ;;  %vm1222_vm11 = vcmask 261120  }
  0x11   : > { %s408_s30 = scalar_select %p407_p6, %s1908_s29, 15  ;;  %vm1244_vm12 = vcmask 293888   ;;  %vm1453_vm13 = vcmask 58368  }
  0x12   : > { %s1915_s8 = sshll.u32 %s2863_s25, 5  ;;  %p1676_p8 = scmp.lt.s32.totalorder %s1675_s9, 15 }
  0x13   : > { %s1671_s10 = sshll.u32 %s408_s30, 1  ;;  %p488_p9 = scmp.gt.s32.totalorder %s1809_s24, 0 }
  0x14   : > { %s1919_s11 = sadd.s32 %s1915_s8, %s1671_s10  ;;  %s1827_s21 = smov 4  }
  0x15   : > { %s1673_s12 = sshll.u32 %s1919_s11, 3  ;;  %s1829_s10 = smov 12  }
  0x16   : > { %s1927_s15 = scalar_lea.vmem %s2838_s0, %s1673_s12  ;;  %s1830_s13 = smov 20  }
  0x17   : > { %v472_v0 = vld [vmem:[%s1927_s15 + $0x20] sm:$0xff]  ;;  %v1932_v1 = vld [vmem:[%s1927_s15 + $0x28] sm:$0xff]  ;;  %v470_v2 = vld [vmem:[%s1927_s15 + $0x10] sm:$0xff]  ;;  %s418_s16 = scalar_select %p417_p7, %s1675_s9, 0 }
  0x18   : > { %v528_v3 = vrot.slane %v472_v0, 7  ;;  %v529_v4 = vrot.slane %v1932_v1, 7  ;;  %v471_v5 = vld [vmem:[%s1927_s15 + $0x18] sm:$0xff]  ;;  %v525_v6 = vrot.slane %v470_v2, 7  ;;  %v468_v7 = vld [vmem:[%s1927_s15] sm:$0xff]  ;;  %v469_v8 = vld [vmem:[%s1927_s15 + $0x8] sm:$0xff] }
  0x19   : > { %v526_v9 = vrot.slane %v471_v5, 7  ;;  %v522_v10 = vrot.slane %v468_v7, 7  ;;  %v523_v11 = vrot.slane %v469_v8, 7  ;;  %s2865_s16 = smov (!%p1676_p8, %s418_s16), 15  ;;  %v474_v27 = vld [vmem:[%s1927_s15 + $0x30] sm:$0xff]  ;;  %v475_v30 = vld [vmem:[%s1927_s15 + $0x38] sm:$0xff] }
  0x1a   : > { %v1941_v12 = vsel %vm518_vm0, %v528_v3, %v529_v4  ;;  %v1944_v13 = vsel %vm518_vm0, 0.0, %v528_v3  ;;  %v1947_v14 = vsel %vm518_vm0, 0.0, %v525_v6  ;;  %s489_s17 = scalar_select %p488_p9, 1.0, 0.0  ;;  %v531_v37 = vrot.slane %v474_v27, 7  ;;  %v476_v52 = vld [vmem:[%s1927_s15 + $0x40] sm:$0xff] }
  0x1b   : > { %v629_v15 = vrot.slane %v1944_v13, 1  ;;  %v630_v16 = vrot.slane %v1941_v12, 1  ;;  %v1954_v17 = vsel %vm518_vm0, %v525_v6, %v526_v9  ;;  %v624_v18 = vrot.slane %v1947_v14, 1  ;;  %s1681_s18 = sshll.u32 %s2865_s16, 1  ;;  %v477_v53 = vld [vmem:[%s1927_s15 + $0x48] sm:$0xff]  ;;  %v478_v6 = vld [vmem:[%s1927_s15 + $0x50] sm:$0xff] }
  0x1c   : > { %v625_v19 = vrot.slane %v1954_v17, 1  ;;  %v1959_v20 = vsel %vm518_vm0, %v522_v10, %v523_v11  ;;  %v1962_v21 = vsel %vm518_vm0, 0.0, %v522_v10  ;;  %s425_s19 = sadd.s32 %s1681_s18, %s1915_s8  ;;  %v490_v22 = vstv %s489_s17  ;;  %v481_v5 = vld [vmem:[%s1927_s15 + $0x68] sm:$0xff]  ;;  %v479_v7 = vld [vmem:[%s1927_s15 + $0x58] sm:$0xff]  ;;  %s1828_s9 = smov 8  }
  0x1d   : > { %v1966_v23 = vsel %vm613_vm1, %v629_v15, %v630_v16  ;;  %v619_v24 = vrot.slane %v1962_v21, 1  ;;  %v620_v25 = vrot.slane %v1959_v20, 1  ;;  %s1683_s20 = sshll.u32 %s425_s19, 3  ;;  %v1971_v26 = vsel %vm518_vm0, %v526_v9, 0.0  ;;  %s1831_s14 = smov 16  }
  0x1e   : > { %666 = vrot.lane.b32.xlu0 %v1966_v23, %s1827_s21  ;;  %v1977_v28 = vsel %vm613_vm1, %v624_v18, %v625_v19  ;;  %s427_s30 = scalar_lea.vmem %s2839_s1, %s1683_s20  ;;  %v1983_v29 = vsel %vm518_vm0, %v523_v11, 0.0  ;;  %v627_v36 = vrot.slane %v1971_v26, 1  ;;  %v532_v39 = vrot.slane %v475_v30, 7  ;;  %s1833_s16 = smov 24  }
  0x1f   : > { %662 = vrot.lane.b32.xlu2 %v1977_v28, %s1827_s21  ;;  %v1989_v31 = vsel %vm613_vm1, %v619_v24, %v620_v25  ;;  %v484_v32 = vld [vmem:[%s427_s30] sm:$0xff]  ;;  %v485_v33 = vld [vmem:[%s427_s30 + $0x8] sm:$0xff]  ;;  %v622_v38 = vrot.slane %v1983_v29, 1  ;;  %v2005_v45 = vsel %vm518_vm0, 0.0, %v531_v37  ;;  %v2019_v51 = vsel %vm518_vm0, %v529_v4, 0.0  ;;  %s1834_s17 = smov 28  }
  0x20   : > { %658 = vrot.lane.b32.xlu1 %v1989_v31, %s1827_s21  ;;  %v491_v34 = vmul.f32 %v490_v22, %v484_v32  ;;  %v492_v35 = vmul.f32 %v490_v22, %v485_v33  ;;  %v2002_v44 = vsel %vm613_vm1, %v625_v19, %v627_v36  ;;  %v2013_v49 = vsel %vm518_vm0, %v531_v37, %v532_v39  ;;  %v480_v4 = vld [vmem:[%s1927_s15 + $0x60] sm:$0xff]  ;;  %s1723_s19 = sadd.s32 8, %s1908_s29  ;;  %p462_p11 = scmp.lt.s32.totalorder %s1809_s24, 1 }
  0x21   : > { %v2010_v48 = vsel %vm613_vm1, %v620_v25, %v622_v38  ;;  %v634_v55 = vrot.slane %v2005_v45, 1  ;;  %v635_v56 = vrot.slane %v2013_v49, 1  ;;  %v632_v58 = vrot.slane %v2019_v51, 1  ;;  %p2551_p10 = scmp.lt.s32.totalorder %s1723_s19, 15  ;;  %s1695_s11 = sshll.u32 %s2863_s25, 1 }
  0x22   : > { %v519_v40 = vrot.slane %v491_v34, 7  ;;  %v520_v41 = vrot.slane %v492_v35, 7  ;;  %v534_v59 = vrot.slane %v476_v52, 7  ;;  %v535_v60 = vrot.slane %v477_v53, 7  ;;  %s494_s23 = scalar_select %p462_p11, 1.0, 0.0 }
  0x23   : > { %v2034_v61 = vsel %vm613_vm1, %v634_v55, %v635_v56  ;;  %v2038_v63 = vsel %vm613_vm1, %v630_v16, %v632_v58  ;;  %v2047_v2 = vsel %vm518_vm0, %v532_v39, 0.0  ;;  %v540_v15 = vrot.slane %v480_v4, 7  ;;  %s2867_s19 = smov (!%p2551_p10, %s1723_s19), 15  ;;  %s2871_s24 = smov (!%p462_p11, %s1809_s24), 1 }
  0x24   : > { %v1996_v42 = vsel %vm518_vm0, %v519_v40, %v520_v41  ;;  %v1999_v43 = vsel %vm518_vm0, 0.0, %v519_v40  ;;  %v2016_v50 = vsel %vm518_vm0, %v520_v41, 0.0  ;;  %v2041_v0 = vsel %vm518_vm0, %v534_v59, %v535_v60  ;;  %s2869_s19 = smov (!%p2551_p10, %s2867_s19), 15 }
  0x25   : > { %v614_v46 = vrot.slane %v1999_v43, 1  ;;  %v615_v47 = vrot.slane %v1996_v42, 1  ;;  %v617_v57 = vrot.slane %v2016_v50, 1  ;;  %v2044_v1 = vsel %vm518_vm0, %v535_v60, 0.0  ;;  %s1688_s29 = sshll.u32 %s2869_s19, 1 }
  0x26   : > { %v2050_v3 = vsel %vm518_vm0, 0.0, %v534_v59  ;;  %v640_v8 = vrot.slane %v2041_v0, 1  ;;  %v642_v9 = vrot.slane %v2044_v1, 1  ;;  %v637_v10 = vrot.slane %v2047_v2, 1 }
  0x27   : > { %v616_v54 = vsel %vm613_vm1, %v614_v46, %v615_v47  ;;  %664 = vrot.lane.b32.xlu2 %v2002_v44, %s1827_s21  ;;  %v618_v62 = vsel %vm613_vm1, %v615_v47, %v617_v57  ;;  %v639_v11 = vrot.slane %v2050_v3, 1  ;;  %v541_v16 = vrot.slane %v481_v5, 7 }
  0x28   : > { %654 = vrot.lane.b32.xlu0 %v616_v54, %s1827_s21  ;;  %660 = vrot.lane.b32.xlu1 %v2010_v48, %s1827_s21  ;;  %v537_v18 = vrot.slane %v478_v6, 7  ;;  %v538_v19 = vrot.slane %v479_v7, 7  ;;  %v2066_v22 = vsel %vm613_vm1, %v640_v8, %v642_v9  ;;  %v2069_v24 = vsel %vm613_vm1, %v635_v56, %v637_v10 }
  0x29   : > { %v2072_v25 = vsel %vm613_vm1, %v639_v11, %v640_v8  ;;  %v2075_v27 = vsel %vm518_vm0, %v540_v15, %v541_v16  ;;  %v2078_v30 = vsel %vm518_vm0, 0.0, %v540_v15  ;;  %v2110_v47 = vsel %vm518_vm0, %v541_v16, 0.0 }
  0x2a   : > { %v2081_v32 = vsel %vm518_vm0, %v537_v18, %v538_v19  ;;  %v2084_v33 = vsel %vm518_vm0, 0.0, %v537_v18  ;;  %v2087_v34 = vsel %vm518_vm0, %v538_v19, 0.0  ;;  %v649_v35 = vrot.slane %v2078_v30, 1 }
  0x2b   : > { %v650_v36 = vrot.slane %v2075_v27, 1  ;;  %v644_v37 = vrot.slane %v2084_v33, 1  ;;  %v645_v38 = vrot.slane %v2081_v32, 1  ;;  %v647_v39 = vrot.slane %v2087_v34, 1 }
  0x2c   : > { %v704_v52 = vrot.slane %v1996_v42, 2  ;;  %v706_v53 = vrot.slane %v2016_v50, 2  ;;  %v652_v54 = vrot.slane %v2110_v47, 1  ;;  %v703_v55 = vrot.slane %v1999_v43, 2 }
  0x2d   : > { %v2101_v40 = vsel %vm613_vm1, %v649_v35, %v650_v36  ;;  %v2104_v41 = vsel %vm613_vm1, %v644_v37, %v645_v38  ;;  %v2107_v46 = vsel %vm613_vm1, %v645_v38, %v647_v39  ;;  %v713_v50 = vrot.slane %v1947_v14, 2 }
  0x2e   : > { %v707_v56 = vsel %vm702_vm2, %v704_v52, %v706_v53  ;;  %v2124_v57 = vsel %vm613_vm1, %v650_v36, %v652_v54  ;;  %v705_v58 = vsel %vm702_vm2, %v703_v55, %v704_v52  ;;  %v714_v59 = vrot.slane %v1954_v17, 2 }
  0x2f   : > { %670 = vrot.lane.b32.xlu2 %v2034_v61, %s1827_s21  ;;  %v708_v60 = vrot.slane %v1962_v21, 2  ;;  %v711_v4 = vrot.slane %v1983_v29, 2  ;;  %v719_v29 = vrot.slane %v1941_v12, 2  ;;  %v721_v8 = vrot.slane %v2019_v51, 2 }
  0x30   : > { %656 = vrot.lane.b32.xlu0 %v618_v62, %s1827_s21  ;;  %668 = vrot.lane.b32.xlu1 %v2038_v63, %s1827_s21  ;;  %v709_v62 = vrot.slane %v1959_v20, 2  ;;  %v2137_v5 = vsel %vm702_vm2, %v713_v50, %v714_v59  ;;  %v716_v9 = vrot.slane %v1971_v26, 2  ;;  %v718_v10 = vrot.slane %v1944_v13, 2 }
  0x31   : > { %v2156_v11 = vsel %vm702_vm2, %v719_v29, %v721_v8  ;;  %v728_v26 = vrot.slane %v2050_v3, 2  ;;  %v729_v51 = vrot.slane %v2041_v0, 2  ;;  %v723_v18 = vrot.slane %v2005_v45, 2 }
  0x32   : > { %v2140_v6 = vsel %vm702_vm2, %v708_v60, %v709_v62  ;;  %v2143_v7 = vsel %vm702_vm2, %v709_v62, %v711_v4  ;;  %v2159_v15 = vsel %vm702_vm2, %v714_v59, %v716_v9  ;;  %v2162_v16 = vsel %vm702_vm2, %v718_v10, %v719_v29  ;;  %v482_v4 = vld [vmem:[%s1927_s15 + $0x70] sm:$0xff]  ;;  %v2238_v29 = vld [vmem:[%s1927_s15 + $0x78] sm:$0xff]  ;;  %s1832_s15 = smov 32  }
  0x33   : > { %v724_v19 = vrot.slane %v2013_v49, 2  ;;  %v726_v35 = vrot.slane %v2047_v2, 2  ;;  %v2176_v36 = vsel %vm702_vm2, %v728_v26, %v729_v51  ;;  %v734_v2 = vrot.slane %v2081_v32, 2 }
  0x34   : > { %2848 = vst [vmem:[#allocation2_spill] sm:$0xff] %v2176_v36  ;;  %v736_v39 = vrot.slane %v2087_v34, 2  ;;  %v731_v52 = vrot.slane %v2044_v1, 2  ;;  %v733_v53 = vrot.slane %v2084_v33, 2  ;;  %v738_v1 = vrot.slane %v2078_v30, 2 }
  0x35   : > { %v2179_v37 = vsel %vm702_vm2, %v723_v18, %v724_v19  ;;  %v2182_v38 = vsel %vm702_vm2, %v724_v19, %v726_v35  ;;  %v739_v34 = vrot.slane %v2075_v27, 2  ;;  %v543_v9 = vrot.slane %v482_v4, 7 }
  0x36   : > { %v2195_v54 = vsel %vm702_vm2, %v734_v2, %v736_v39  ;;  %v2198_v55 = vsel %vm702_vm2, %v729_v51, %v731_v52  ;;  %v2846_v10 = vrot.slane %v2238_v29, 7 }
  0x37   : > { %676 = vrot.lane.b32.xlu2 %v2066_v22, %s1827_s21  ;;  %v2213_v50 = vsel %vm702_vm2, %v738_v1, %v739_v34  ;;  %v2254_v19 = vsel %vm518_vm0, 0.0, %v543_v9 }
  0x38   : > { %672 = vrot.lane.b32.xlu0 %v2069_v24, %s1827_s21  ;;  %674 = vrot.lane.b32.xlu1 %v2072_v25, %s1827_s21  ;;  %v2251_v18 = vsel %vm518_vm0, %v543_v9, %v2846_v10 }
  0x3f   : > { %682 = vrot.lane.b32.xlu2 %v2101_v40, %s1827_s21 }
  0x40   : > { %678 = vrot.lane.b32.xlu0 %v2104_v41, %s1827_s21  ;;  %680 = vrot.lane.b32.xlu1 %v2107_v46, %s1827_s21 }
  0x47   : > { %745 = vrot.lane.b32.xlu2 %v707_v56, %s1828_s9  ;;  %v2201_v56 = vsel %vm702_vm2, %v733_v53, %v734_v2 }
  0x48   : > { %684 = vrot.lane.b32.xlu0 %v2124_v57, %s1827_s21  ;;  %743 = vrot.lane.b32.xlu1 %v705_v58, %s1828_s9  ;;  %v741_v58 = vrot.slane %v2110_v47, 2  ;;  %s442_s21 = sadd.s32 %s1688_s29, %s1915_s8 }
  0x49   : > { %s1690_s22 = sshll.u32 %s442_s21, 3 }
  0x4a   : > { %v2216_v59 = vsel %vm702_vm2, %v739_v34, %v741_v58  ;;  %s444_s8 = scalar_lea.vmem %s2840_s2, %s1690_s22 }
  0x4f   : > { %751 = vrot.lane.b32.xlu2 %v2137_v5, %s1828_s9 }
  0x50   : > { %747 = vrot.lane.b32.xlu0 %v2140_v6, %s1828_s9  ;;  %749 = vrot.lane.b32.xlu1 %v2143_v7, %s1828_s9 }
  0x57   : > { %757 = vrot.lane.b32.xlu2 %v2156_v11, %s1828_s9 }
  0x58   : > { %753 = vrot.lane.b32.xlu0 %v2159_v15, %s1828_s9  ;;  %755 = vrot.lane.b32.xlu1 %v2162_v16, %s1828_s9 }
  0x5f   : > { %763 = vrot.lane.b32.xlu2 %v2176_v36, %s1828_s9 }
  0x60   : > { %759 = vrot.lane.b32.xlu0 %v2179_v37, %s1828_s9  ;;  %761 = vrot.lane.b32.xlu1 %v2182_v38, %s1828_s9 }
  0x67   : > { %769 = vrot.lane.b32.xlu2 %v2195_v54, %s1828_s9 }
  0x68   : > { %765 = vrot.lane.b32.xlu0 %v2198_v55, %s1828_s9  ;;  %767 = vrot.lane.b32.xlu1 %v2201_v56, %s1828_s9 }
  0x6f   : > { %792 = vrot.lane.b32.xlu2 %v1962_v21, %s1829_s10 }
  0x70   : > { %771 = vrot.lane.b32.xlu0 %v2213_v50, %s1828_s9  ;;  %773 = vrot.lane.b32.xlu1 %v2216_v59, %s1828_s9 }
  0x77   : > { %798 = vrot.lane.b32.xlu2 %v1954_v17, %s1829_s10 }
  0x78   : > { %794 = vrot.lane.b32.xlu0 %v1959_v20, %s1829_s10  ;;  %796 = vrot.lane.b32.xlu1 %v1947_v14, %s1829_s10 }
  0x79   : > { %v663_v47 = vpop.permute.xlu2 %662 }
  0x7f   : > { %804 = vrot.lane.b32.xlu2 %v2005_v45, %s1829_s10 }
  0x80   : > { %800 = vrot.lane.b32.xlu0 %v1944_v13, %s1829_s10  ;;  %802 = vrot.lane.b32.xlu1 %v1941_v12, %s1829_s10 }
  0x81   : > { %v2229_v60 = vpop.permute.xlu2 %664 }
  0x87   : > { %810 = vrot.lane.b32.xlu2 %v2041_v0, %s1829_s10 }
  0x88   : > { %806 = vrot.lane.b32.xlu0 %v2013_v49, %s1829_s10  ;;  %808 = vrot.lane.b32.xlu1 %v2050_v3, %s1829_s10 }
  0x89   : > { %v2234_v62 = vpop.permute.xlu2 %670 }
  0x8f   : > { %816 = vrot.lane.b32.xlu2 %v2078_v30, %s1829_s10 }
  0x90   : > { %812 = vrot.lane.b32.xlu0 %v2084_v33, %s1829_s10  ;;  %814 = vrot.lane.b32.xlu1 %v2081_v32, %s1829_s10  ;;  %v2243_v8 = vpop.permute.xlu0 %666 }
  0x91   : > { %v2246_v26 = vpop.permute.xlu2 %676 }
  0x92   : > { %v659_v51 = vpop.permute.xlu1 %658 }
  0x97   : > { %822 = vrot.lane.b32.xlu2 %v2251_v18, %s1829_s10 }
  0x98   : > { %818 = vrot.lane.b32.xlu0 %v2075_v27, %s1829_s10  ;;  %820 = vrot.lane.b32.xlu1 %v2254_v19, %s1829_s10 }
  0x99   : > { %v2259_v35 = vpop.permute.xlu2 %682 }
  0x9a   : > { %v655_v2 = vpop.permute.xlu0 %654  ;;  %v661_v39 = vpop.permute.xlu1 %660 }
  0x9f   : > { %899 = vrot.lane.b32.xlu2 %v2140_v6, %s1830_s13 }
  0xa0   : > { %846 = vrot.lane.b32.xlu0 %v1989_v31, %s1831_s14  ;;  %848 = vrot.lane.b32.xlu1 %v2010_v48, %s1831_s14  ;;  %v1108_v31 = vsel %vm1103_vm4, %v1947_v14, %v663_v47 }
  0xa1   : > { %v746_v52 = vpop.permute.xlu2 %745 }
  0xa2   : > { %v657_v53 = vpop.permute.xlu0 %656  ;;  %v669_v1 = vpop.permute.xlu1 %668 }
  0xa3   : > { %v1105_v34 = vsel %vm1103_vm4, %v1996_v42, %v657_v53  ;;  %v1111_v9 = vsel %vm1103_vm4, %v1941_v12, %v669_v1  ;;  %v1104_v1 = vsel %vm1103_vm4, %v1999_v43, %v655_v2  ;;  %v1106_v2 = vsel %vm1103_vm4, %v1962_v21, %v659_v51 }
  0xa4   : > { %v2270_v58 = vsel %vm1120_vm3, %v1105_v34, %v746_v52  ;;  %v1109_v21 = vsel %vm1103_vm4, %v1954_v17, %v2229_v60  ;;  %v1110_v51 = vsel %vm1103_vm4, %v1944_v13, %v2243_v8  ;;  %v1112_v60 = vsel %vm1103_vm4, %v2005_v45, %v2234_v62 }
  0xa7   : > { %1055 = vrot.lane.b32.xlu2 %v2137_v5, %s1832_s15 }
  0xa8   : > { %948 = vrot.lane.b32.xlu0 %v1947_v14, %s1833_s16  ;;  %1002 = vrot.lane.b32.xlu1 %v1977_v28, %s1834_s17 }
  0xa9   : > { %v752_v48 = vpop.permute.xlu2 %751 }
  0xaa   : > { %v673_v42 = vpop.permute.xlu0 %672  ;;  %v2281_v6 = vsel %vm1120_vm3, %v1108_v31, %v752_v48  ;;  %v675_v4 = vpop.permute.xlu1 %674 }
  0xab   : > { %v1113_v8 = vsel %vm1103_vm4, %v2013_v49, %v673_v42 }
  0xaf   : > { %907 = vrot.lane.b32.xlu2 %v2162_v16, %s1830_s13 }
  0xb0   : > { %854 = vrot.lane.b32.xlu0 %v1966_v23, %s1831_s14  ;;  %901 = vrot.lane.b32.xlu1 %v2143_v7, %s1830_s13  ;;  %v1114_v7 = vsel %vm1103_vm4, %v2050_v3, %v675_v4 }
  0xb1   : > { %v758_v52 = vpop.permute.xlu2 %757 }
  0xb2   : > { %v679_v14 = vpop.permute.xlu0 %678  ;;  %v2292_v47 = vsel %vm1120_vm3, %v1111_v9, %v758_v52  ;;  %v681_v53 = vpop.permute.xlu1 %680 }
  0xb3   : > { %v1117_v4 = vsel %vm1103_vm4, %v2081_v32, %v681_v53  ;;  %v1116_v62 = vsel %vm1103_vm4, %v2084_v33, %v679_v14 }
  0xb7   : > { %956 = vrot.lane.b32.xlu2 %v2005_v45, %s1833_s16 }
  0xb8   : > { %862 = vrot.lane.b32.xlu0 %v2072_v25, %s1831_s14  ;;  %950 = vrot.lane.b32.xlu1 %v1954_v17, %s1833_s16 }
  0xb9   : > { %v764_v34 = vpop.permute.xlu2 %763 }
  0xba   : > { %v685_v31 = vpop.permute.xlu0 %684  ;;  %v2305_v48 = vsel %vm1120_vm3, %v1114_v7, %v764_v34  ;;  %v744_v9 = vpop.permute.xlu1 %743  ;;  %v1107_v7 = vsel %vm1103_vm4, %v1959_v20, %v661_v39 }
  0xbb   : > { %v1121_v52 = vsel %vm1120_vm3, %v1104_v1, %v744_v9 }
  0xbf   : > { %1010 = vrot.lane.b32.xlu2 %v2034_v61, %s1834_s17 }
  0xc0   : > { %915 = vrot.lane.b32.xlu0 %v2176_v36, %s1830_s13  ;;  %1004 = vrot.lane.b32.xlu1 %v2002_v44, %s1834_s17 }
  0xc1   : > { %v770_v43 = vpop.permute.xlu2 %769 }
  0xc2   : > { %v2321_v34 = vsel %vm1120_vm3, %v1117_v4, %v770_v43  ;;  %v748_v1 = vpop.permute.xlu0 %747  ;;  %v750_v9 = vpop.permute.xlu1 %749 }
  0xc3   : > { %v1123_v10 = vsel %vm1120_vm3, %v1106_v2, %v748_v1  ;;  %v1124_v36 = vsel %vm1120_vm3, %v1107_v7, %v750_v9 }
  0xc7   : > { %1063 = vrot.lane.b32.xlu2 %v2179_v37, %s1832_s15 }
  0xc8   : > { %964 = vrot.lane.b32.xlu0 %v2084_v33, %s1833_s16  ;;  %1057 = vrot.lane.b32.xlu1 %v2159_v15, %s1832_s15 }
  0xc9   : > { %v793_v20 = vpop.permute.xlu2 %792 }
  0xca   : > { %v2338_v39 = vsel %vm1137_vm5, %v1121_v52, %v793_v20  ;;  %v754_v53 = vpop.permute.xlu0 %753  ;;  %v756_v4 = vpop.permute.xlu1 %755 }
  0xcb   : > { %v1126_v43 = vsel %vm1120_vm3, %v1109_v21, %v754_v53  ;;  %v1127_v2 = vsel %vm1120_vm3, %v1110_v51, %v756_v4 }
  0xcf   : > { %850 = vrot.lane.b32.xlu2 %v1977_v28, %s1831_s14 }
  0xd0   : > { %1018 = vrot.lane.b32.xlu0 %v2104_v41, %s1834_s17  ;;  %1071 = vrot.lane.b32.xlu1 %v2201_v56, %s1832_s15 }
  0xd1   : > { %v799_v17 = vpop.permute.xlu2 %798 }
  0xd2   : > { %v2354_v52 = vsel %vm1137_vm5, %v1124_v36, %v799_v17  ;;  %v760_v7 = vpop.permute.xlu0 %759  ;;  %v762_v1 = vpop.permute.xlu1 %761  ;;  %v1115_v36 = vsel %vm1103_vm4, %v2041_v0, %v2246_v26  ;;  %v1119_v26 = vsel %vm1103_vm4, %v2075_v27, %v685_v31 }
  0xd3   : > { %v2357_v28 = vsel %vm1120_vm3, %v1112_v60, %v760_v7  ;;  %v1130_v9 = vsel %vm1120_vm3, %v1113_v8, %v762_v1 }
  0xd7   : > { %909 = vrot.lane.b32.xlu2 %v2156_v11, %s1830_s13 }
  0xd8   : > { %856 = vrot.lane.b32.xlu0 %v2038_v63, %s1831_s14  ;;  %903 = vrot.lane.b32.xlu1 %v2137_v5, %s1830_s13  ;;  %v1118_v5 = vsel %vm1103_vm4, %v2078_v30, %v2259_v35 }
  0xd9   : > { %v805_v45 = vpop.permute.xlu2 %804 }
  0xda   : > { %v2372_v42 = vsel %vm1137_vm5, %v1127_v2, %v805_v45  ;;  %v766_v20 = vpop.permute.xlu0 %765  ;;  %v768_v21 = vpop.permute.xlu1 %767 }
  0xdb   : > { %v2375_v51 = vsel %vm1120_vm3, %v1115_v36, %v766_v20  ;;  %v1133_v53 = vsel %vm1120_vm3, %v1116_v62, %v768_v21  ;;  %v841_v62 = vrot.slane %v2254_v19, 1  ;;  %v842_v20 = vrot.slane %v2251_v18, 1 }
  0xdf   : > { %952 = vrot.lane.b32.xlu2 %v1944_v13, %s1833_s16 }
  0xe0   : > { %864 = vrot.lane.b32.xlu0 %v2066_v22, %s1831_s14  ;;  %870 = vrot.lane.b32.xlu1 %v2101_v40, %s1831_s14 }
  0xe1   : > { %v811_v33 = vpop.permute.xlu2 %810 }
  0xe2   : > { %v2390_v14 = vsel %vm1137_vm5, %v1130_v9, %v811_v33  ;;  %v772_v4 = vpop.permute.xlu0 %771  ;;  %v774_v2 = vpop.permute.xlu1 %773  ;;  %v1240_v33 = vld [vmem:[%s2841_s3 + $0x8] sm:$0xff] }
  0xe3   : > { %v2393_v13 = vsel %vm1120_vm3, %v1118_v5, %v772_v4  ;;  %v1136_v17 = vsel %vm1120_vm3, %v1119_v26, %v774_v2  ;;  %v1239_v26 = vld [vmem:[%s2841_s3] sm:$0xff]  ;;  %v2460_v4 = vsel %vm613_vm1, %v841_v62, %v842_v20  ;;  %v895_v2 = vrot.slane %v2251_v18, 2 }
  0xe7   : > { %923 = vrot.lane.b32.xlu2 %v2213_v50, %s1830_s13 }
  0xe8   : > { %958 = vrot.lane.b32.xlu0 %v2013_v49, %s1833_s16  ;;  %917 = vrot.lane.b32.xlu1 %v2198_v55, %s1830_s13 }
  0xe9   : > { %v817_v35 = vpop.permute.xlu2 %816 }
  0xea   : > { %v2403_v31 = vsel %vm1137_vm5, %v1133_v53, %v817_v35  ;;  %v795_v60 = vpop.permute.xlu0 %794  ;;  %v797_v8 = vpop.permute.xlu1 %796 }
  0xeb   : > { %v2407_v7 = vsel %vm1137_vm5, %v2270_v58, %v795_v60  ;;  %v2410_v1 = vsel %vm1137_vm5, %v1123_v10, %v797_v8  ;;  %v1241_v10 = vld [vmem:[%s2841_s3 + $0x10] sm:$0xff] }
  0xef   : > { %966 = vrot.lane.b32.xlu2 %v2081_v32, %s1833_s16  ;;  %v1243_v32 = vld [vmem:[%s2841_s3 + $0x20] sm:$0xf] }
  0xf0   : > { %1006 = vrot.lane.b32.xlu0 %v1966_v23, %s1834_s17  ;;  %1012 = vrot.lane.b32.xlu1 %v2069_v24, %s1834_s17  ;;  %v1242_v23 = vld [vmem:[%s2841_s3 + $0x18] sm:$0xff] }
  0xf1   : > { %v823_v49 = vpop.permute.xlu2 %822  ;;  %1697 = vmatpush.msk.msra.mxu0 %vm1293_vm6, %v1243_v32  ;;  %1724 = vmatpush.msk.msra.mxu1 %vm1293_vm6, %v1243_v32 }
  0xf2   : > { %v2419_v9 = vsel %vm1137_vm5, %v1136_v17, %v823_v49  ;;  %v2421_v45 = vpop.permute.xlu0 %800  ;;  %v803_v58 = vpop.permute.xlu1 %802  ;;  %1725 = vmatpush.msk.msra.mxu2 %vm1293_vm6, %v1243_v32  ;;  %1726 = vmatpush.msk.msra.mxu3 %vm1293_vm6, %v1243_v32 }
  0xf3   : > { %v2424_v36 = vsel %vm1137_vm5, %v1126_v43, %v803_v58  ;;  %1309 = vmatpush.msra.mxu0 %v1242_v23  ;;  %1727 = vmatpush.msra.mxu1 %v1242_v23 }
  0xf4   : > { %1728 = vmatpush.msra.mxu2 %v1242_v23  ;;  %1729 = vmatpush.msra.mxu3 %v1242_v23 }
  0xf5   : > { %1310 = vmatpush.msra.mxu0 %v1241_v10  ;;  %1730 = vmatpush.msra.mxu1 %v1241_v10 }
  0xf6   : > { %1731 = vmatpush.msra.mxu2 %v1241_v10  ;;  %1732 = vmatpush.msra.mxu3 %v1241_v10 }
  0xf7   : > { %1065 = vrot.lane.b32.xlu2 %v2182_v38, %s1832_s15  ;;  %1311 = vmatpush.msra.mxu0 %v1240_v33 }
  0xf8   : > { %972 = vrot.lane.b32.xlu0 %v2254_v19, %s1833_s16  ;;  %1059 = vrot.lane.b32.xlu1 %v2162_v16, %s1832_s15 }
  0xf9   : > { %v900_v43 = vpop.permute.xlu2 %899  ;;  %1733 = vmatpush.msra.mxu1 %v1240_v33  ;;  %1734 = vmatpush.msra.mxu2 %v1240_v33 }
  0xfa   : > { %v807_v21 = vpop.permute.xlu0 %806  ;;  %v809_v53 = vpop.permute.xlu1 %808  ;;  %1312 = vmatpush.msra.mxu0 %v1239_v26  ;;  %1735 = vmatpush.msra.mxu3 %v1240_v33 }
  0xfb   : > { %v2448_v16 = vsel %vm1137_vm5, %v2292_v47, %v807_v21  ;;  %v2452_v5 = vsel %vm1137_vm5, %v2357_v28, %v809_v53  ;;  %1736 = vmatpush.msra.mxu1 %v1239_v26  ;;  %1737 = vmatpush.msra.mxu2 %v1239_v26  ;;  %v894_v28 = vrot.slane %v2254_v19, 2 }
  0xfc   : > { %1738 = vmatpush.msra.mxu3 %v1239_v26 }
  0xfd   : > { %v2481_v49 = vsel %vm702_vm2, %v894_v28, %v895_v2  ;;  %v2849_v28 = vrot.slane %v2238_v29, 7 }
  0xff   : > { %1073 = vrot.lane.b32.xlu2 %v2195_v54, %s1832_s15 }
 0x100   : > { %1020 = vrot.lane.b32.xlu0 %v2107_v46, %s1834_s17  ;;  %1026 = vrot.lane.b32.xlu1 %v2460_v4, %s1834_s17 }
 0x101   : > { %v1056_v47 = vpop.permute.xlu2 %1055 }
 0x102   : > { %v813_v17 = vpop.permute.xlu0 %812  ;;  %v815_v35 = vpop.permute.xlu1 %814 }
 0x103   : > { %v2472_v60 = vsel %vm1137_vm5, %v2305_v48, %v813_v17  ;;  %v2476_v8 = vsel %vm1137_vm5, %v2375_v51, %v815_v35  ;;  %v595_v17 = vsel %vm518_vm0, %v2849_v28, 0.0  ;;  %v2850_v35 = vld [vmem:[#allocation2_spill] sm:$0xff] }
 0x107   : > { %858 = vrot.lane.b32.xlu2 %v2034_v61, %s1831_s14 }
 0x108   : > { %1079 = vrot.lane.b32.xlu0 %v2481_v49, %s1832_s15  ;;  %852 = vrot.lane.b32.xlu1 %v2002_v44, %s1831_s14 }
 0x109   : > { %v908_v19 = vpop.permute.xlu2 %907 }
 0x10a   : > { %v819_v48 = vpop.permute.xlu0 %818  ;;  %v821_v58 = vpop.permute.xlu1 %820 }
 0x10b   : > { %v2491_v51 = vsel %vm1137_vm5, %v2321_v34, %v819_v48  ;;  %v2495_v32 = vsel %vm1137_vm5, %v2393_v13, %v821_v58 }
 0x10f   : > { %866 = vrot.lane.b32.xlu2 %v2104_v41, %s1831_s14 }
 0x110   : > { %905 = vrot.lane.b32.xlu0 %v2159_v15, %s1830_s13  ;;  %911 = vrot.lane.b32.xlu1 %v2179_v37, %s1830_s13 }
 0x111   : > { %v957_v44 = vpop.permute.xlu2 %956 }
 0x112   : > { %v847_v61 = vpop.permute.xlu0 %846  ;;  %v849_v23 = vpop.permute.xlu1 %848 }
 0x113   : > { %v1155_v34 = vsel %vm1154_vm7, %v2338_v39, %v847_v61  ;;  %v1156_v29 = vsel %vm1154_vm7, %v2407_v7, %v849_v23 }
 0x114   : > { %v1172_v37 = vsel %vm1171_vm8, %v1155_v34, %v900_v43  ;;  %v1142_v43 = vsel %vm1137_vm5, %v2281_v6, %v2421_v45 }
 0x117   : > { %960 = vrot.lane.b32.xlu2 %v2050_v3, %s1833_s16 }
 0x118   : > { %872 = vrot.lane.b32.xlu0 %v2124_v57, %s1831_s14  ;;  %954 = vrot.lane.b32.xlu1 %v1941_v12, %s1833_s16 }
 0x119   : > { %v1011_v41 = vpop.permute.xlu2 %1010 }
 0x11a   : > { %v949_v15 = vpop.permute.xlu0 %948  ;;  %v1003_v13 = vpop.permute.xlu1 %1002 }
 0x11b   : > { %v1189_v39 = vsel %vm1188_vm9, %v1172_v37, %v949_v15 }
 0x11c   : > { %v1206_v3 = vsel %vm1205_vm10, %v1189_v39, %v1003_v13 }
 0x11d   : > { %v1223_v10 = vsel %vm1222_vm11, %v1206_v3, %v1056_v47  ;;  %v486_v3 = vld [vmem:[%s444_s8] sm:$0xff] }
 0x11e   : > { %1698 = vmatmul.msk.f32.vlgmr.msra.gmra.mxu0 %vm1244_vm12, %v1223_v10  ;;  %v495_v10 = vstv %s494_s23 }
 0x11f   : > { %1008 = vrot.lane.b32.xlu2 %v2038_v63, %s1834_s17 }
 0x120   : > { %919 = vrot.lane.b32.xlu0 %v2201_v56, %s1830_s13  ;;  %925 = vrot.lane.b32.xlu1 %v2216_v59, %s1830_s13 }
 0x121   : > { %v1064_v12 = vpop.permute.xlu2 %1063 }
 0x122   : > { %v855_v62 = vpop.permute.xlu0 %854  ;;  %v902_v21 = vpop.permute.xlu1 %901 }
 0x123   : > { %v1159_v53 = vsel %vm1154_vm7, %v1142_v43, %v855_v62  ;;  %v496_v43 = vmul.f32 %v495_v10, %v486_v3 }
 0x124   : > { %v1176_v33 = vsel %vm1171_vm8, %v1159_v53, %v908_v19  ;;  %v844_v19 = vrot.slane %v595_v17, 1 }
 0x125   : > { %v1193_v63 = vsel %vm1188_vm9, %v1176_v33, %v957_v44  ;;  %v1173_v44 = vsel %vm1171_vm8, %v1156_v29, %v902_v21 }
 0x126   : > { %v1210_v26 = vsel %vm1205_vm10, %v1193_v63, %v1011_v41 }
 0x127   : > { %974 = vrot.lane.b32.xlu2 %v2251_v18, %s1833_s16  ;;  %v1227_v56 = vsel %vm1222_vm11, %v1210_v26, %v1064_v12  ;;  %v487_v12 = vld [vmem:[%s444_s8 + $0x8] sm:$0xff] }
 0x128   : > { %1014 = vrot.lane.b32.xlu0 %v2072_v25, %s1834_s17  ;;  %1702 = vmatmul.msk.f32.vlgmr.msra.gmra.mxu1 %vm1244_vm12, %v1227_v56  ;;  %v897_v25 = vrot.slane %v595_v17, 2  ;;  %v497_v62 = vmul.f32 %v495_v10, %v487_v12 }
 0x129   : > { %968 = vrot.lane.b32.xlu1 %v2078_v30, %s1833_s16  ;;  %v2537_v6 = vpop.permute.xlu2 %850 }
 0x12a   : > { %v863_v45 = vpop.permute.xlu0 %862  ;;  %v951_v47 = vpop.permute.xlu1 %950  ;;  %v547_v53 = vrot.slane %v497_v62, 7 }
 0x12f   : > { %1022 = vrot.lane.b32.xlu2 %v2101_v40, %s1834_s17  ;;  %v2558_v40 = vsel %vm702_vm2, %v895_v2, %v897_v25  ;;  %v1190_v2 = vsel %vm1188_vm9, %v1173_v44, %v951_v47  ;;  %v596_v44 = vsel %vm518_vm0, %v547_v53, 0.0 }
 0x130   : > { %1061 = vrot.lane.b32.xlu0 %v2156_v11, %s1832_s15  ;;  %v2563_v11 = vsel %vm613_vm1, %v842_v20, %v844_v19 }
 0x131   : > { %1067 = vrot.lane.b32.xlu1 %v2850_v35, %s1832_s15  ;;  %v2549_v30 = vpop.permute.xlu2 %909 }
 0x132   : > { %v916_v48 = vpop.permute.xlu0 %915  ;;  %v1005_v58 = vpop.permute.xlu1 %1004 }
 0x133   : > { %v1207_v20 = vsel %vm1205_vm10, %v1190_v2, %v1005_v58  ;;  %v1000_v2 = vrot.slane %v596_v44, 1 }
 0x137   : > { %1081 = vrot.lane.b32.xlu2 %v2558_v40, %s1832_s15 }
 0x138   : > { %1028 = vrot.lane.b32.xlu0 %v2563_v11, %s1834_s17 }
 0x139   : > { %1075 = vrot.lane.b32.xlu1 %v2213_v50, %s1832_s15  ;;  %v2577_v18 = vpop.permute.xlu2 %952  ;;  %v1163_v50 = vsel %vm1154_vm7, %v2452_v5, %v863_v45 }
 0x13a   : > { %v965_v61 = vpop.permute.xlu0 %964  ;;  %v1058_v7 = vpop.permute.xlu1 %1057  ;;  %v1180_v34 = vsel %vm1171_vm8, %v1163_v50, %v916_v48 }
 0x13b   : > { %v1224_v23 = vsel %vm1222_vm11, %v1207_v20, %v1058_v7  ;;  %v1197_v15 = vsel %vm1188_vm9, %v1180_v34, %v965_v61  ;;  %v1053_v61 = vrot.slane %v596_v44, 2 }
 0x13c   : > { %1699 = vmatmul.msk.f32.gmra.mxu0 %vm1244_vm12, %v1224_v23 }
 0x13f   : > { %868 = vrot.lane.b32.xlu2 %v2107_v46, %s1831_s14 }
 0x140   : > { %860 = vrot.lane.b32.xlu0 %v2069_v24, %s1831_s14 }
 0x141   : > { %913 = vrot.lane.b32.xlu1 %v2182_v38, %s1830_s13  ;;  %v2593_v41 = vpop.permute.xlu2 %923 }
 0x142   : > { %v1019_v37 = vpop.permute.xlu0 %1018  ;;  %v1072_v13 = vpop.permute.xlu1 %1071 }
 0x143   : > { %v1214_v46 = vsel %vm1205_vm10, %v1197_v15, %v1019_v37 }
 0x144   : > { %v1231_v5 = vsel %vm1222_vm11, %v1214_v46, %v1072_v13 }
 0x145   : > { %1706 = vmatmul.msk.f32.vlgmr.msra.gmra.mxu2 %vm1244_vm12, %v1231_v5 }
 0x147   : > { %921 = vrot.lane.b32.xlu2 %v2195_v54, %s1830_s13 }
 0x148   : > { %874 = vrot.lane.b32.xlu0 %v2460_v4, %s1831_s14 }
 0x149   : > { %962 = vrot.lane.b32.xlu1 %v2041_v0, %s1833_s16  ;;  %v2612_v24 = vpop.permute.xlu2 %966  ;;  %v546_v0 = vrot.slane %v496_v43, 7 }
 0x14a   : > { %v857_v38 = vpop.permute.xlu0 %856  ;;  %v904_v39 = vpop.permute.xlu1 %903 }
 0x14b   : > { %v586_v33 = vsel %vm518_vm0, 0.0, %v546_v0  ;;  %v548_v63 = vsel %vm518_vm0, %v546_v0, %v547_v53  ;;  %v1160_v25 = vsel %vm1154_vm7, %v2424_v36, %v857_v38  ;;  %v1157_v36 = vsel %vm1154_vm7, %v2410_v1, %v2537_v6 }
 0x14c   : > { %v1050_v26 = vrot.slane %v586_v33, 2  ;;  %v1051_v45 = vrot.slane %v548_v63, 2 }
 0x14e   : > { %v1052_v28 = vsel %vm702_vm2, %v1050_v26, %v1051_v45 }
 0x14f   : > { %970 = vrot.lane.b32.xlu2 %v2075_v27, %s1833_s16  ;;  %v997_v27 = vrot.slane %v586_v33, 1 }
 0x150   : > { %927 = vrot.lane.b32.xlu0 %v2481_v49, %s1830_s13 }
 0x151   : > { %1016 = vrot.lane.b32.xlu1 %v2066_v22, %s1834_s17  ;;  %v1066_v54 = vpop.permute.xlu2 %1065  ;;  %v998_v22 = vrot.slane %v548_v63, 1 }
 0x152   : > { %v865_v4 = vpop.permute.xlu0 %864  ;;  %v871_v21 = vpop.permute.xlu1 %870 }
 0x153   : > { %v999_v17 = vsel %vm613_vm1, %v997_v27, %v998_v22  ;;  %v1001_v23 = vsel %vm613_vm1, %v998_v22, %v1000_v2 }
 0x157   : > { %1024 = vrot.lane.b32.xlu2 %v2124_v57, %s1834_s17  ;;  %v1177_v57 = vsel %vm1171_vm8, %v1160_v25, %v2549_v30  ;;  %v1174_v30 = vsel %vm1171_vm8, %v1157_v36, %v904_v39 }
 0x158   : > { %976 = vrot.lane.b32.xlu0 %v586_v33, %s1833_s16 }
 0x159   : > { %1069 = vrot.lane.b32.xlu1 %v2198_v55, %s1832_s15  ;;  %v1074_v47 = vpop.permute.xlu2 %1073 }
 0x15a   : > { %v959_v49 = vpop.permute.xlu0 %958  ;;  %v918_v56 = vpop.permute.xlu1 %917 }
 0x15b   : > { %v1194_v55 = vsel %vm1188_vm9, %v1177_v57, %v959_v49 }
 0x15f   : > { %1083 = vrot.lane.b32.xlu2 %v1052_v28, %s1832_s15 }
 0x160   : > { %1030 = vrot.lane.b32.xlu0 %v999_v17, %s1834_s17 }
 0x161   : > { %1077 = vrot.lane.b32.xlu1 %v2216_v59, %s1832_s15  ;;  %v859_v29 = vpop.permute.xlu2 %858  ;;  %v1191_v59 = vsel %vm1188_vm9, %v1174_v30, %v2577_v18  ;;  %v1054_v18 = vsel %vm702_vm2, %v1051_v45, %v1053_v61 }
 0x162   : > { %v1007_v35 = vpop.permute.xlu0 %1006  ;;  %v1013_v19 = vpop.permute.xlu1 %1012  ;;  %v1161_v22 = vsel %vm1154_vm7, %v2372_v42, %v859_v29 }
 0x163   : > { %v1211_v48 = vsel %vm1205_vm10, %v1194_v55, %v1013_v19  ;;  %v1208_v1 = vsel %vm1205_vm10, %v1191_v59, %v1007_v35 }
 0x164   : > { %v1228_v58 = vsel %vm1222_vm11, %v1211_v48, %v1066_v54 }
 0x165   : > { %1703 = vmatmul.msk.f32.gmra.mxu1 %vm1244_vm12, %v1228_v58 }
 0x167   : > { %978 = vrot.lane.b32.xlu2 %v548_v63, %s1833_s16 }
 0x168   : > { %876 = vrot.lane.b32.xlu0 %v2563_v11, %s1831_s14  ;;  %v1164_v11 = vsel %vm1154_vm7, %v2390_v14, %v865_v4  ;;  %v1167_v14 = vsel %vm1154_vm7, %v2403_v31, %v871_v21 }
 0x169   : > { %929 = vrot.lane.b32.xlu1 %v2558_v40, %s1830_s13  ;;  %v1181_v50 = vsel %vm1171_vm8, %v1164_v11, %v918_v56  ;;  %v867_v40 = vpop.permute.xlu2 %866  ;;  %v1184_v5 = vsel %vm1171_vm8, %v1167_v14, %v2593_v41 }
 0x16a   : > { %v973_v6 = vpop.permute.xlu0 %972  ;;  %v1060_v20 = vpop.permute.xlu1 %1059  ;;  %v1198_v15 = vsel %vm1188_vm9, %v1181_v50, %v2612_v24  ;;  %v1165_v19 = vsel %vm1154_vm7, %v2472_v60, %v867_v40 }
 0x16b   : > { %v1225_v7 = vsel %vm1222_vm11, %v1208_v1, %v1060_v20  ;;  %v1201_v38 = vsel %vm1188_vm9, %v1184_v5, %v973_v6 }
 0x16c   : > { %1700 = vmatmul.msk.f32.gmra.mxu0 %vm1244_vm12, %v1225_v7 }
 0x170   : > { %1032 = vrot.lane.b32.xlu0 %v1001_v23, %s1834_s17 }
 0x171   : > { %1085 = vrot.lane.b32.xlu1 %v1054_v18, %s1832_s15  ;;  %v961_v39 = vpop.permute.xlu2 %960  ;;  %s2681_s15 = scalar_lea.vmem %s2844_s6, %s1673_s12  ;;  %s465_s12 = sadd.s32 %s1695_s11, %s2871_s24 }
 0x172   : > { %v1021_v34 = vpop.permute.xlu0 %1020  ;;  %v1027_v37 = vpop.permute.xlu1 %1026  ;;  %s1696_s16 = sshll.u32 %s465_s12, 1 }
 0x173   : > { %v1215_v13 = vsel %vm1205_vm10, %v1198_v15, %v1021_v34  ;;  %v1218_v3 = vsel %vm1205_vm10, %v1201_v38, %v1027_v37  ;;  %s467_s18 = scalar_lea.vmem %s2845_s7, %s1696_s16 }
 0x174   : > { %v1232_v46 = vsel %vm1222_vm11, %v1215_v13, %v1074_v47 }
 0x175   : > { %1707 = vmatmul.msk.f32.gmra.mxu2 %vm1244_vm12, %v1232_v46 }
 0x179   : > { %v1009_v31 = vpop.permute.xlu2 %1008 }
 0x17a   : > { %v1080_v24 = vpop.permute.xlu0 %1079  ;;  %v853_v10 = vpop.permute.xlu1 %852 }
 0x17b   : > { %v1235_v12 = vsel %vm1222_vm11, %v1218_v3, %v1080_v24  ;;  %v1158_v27 = vsel %vm1154_vm7, %v2354_v52, %v853_v10 }
 0x17c   : > { %1710 = vmatmul.msk.f32.vlgmr.msra.gmra.mxu3 %vm1244_vm12, %v1235_v12 }
 0x181   : > { %v975_v4 = vpop.permute.xlu2 %974 }
 0x182   : > { %v906_v43 = vpop.permute.xlu0 %905  ;;  %v912_v62 = vpop.permute.xlu1 %911 }
 0x183   : > { %v1175_v49 = vsel %vm1171_vm8, %v1158_v27, %v906_v43  ;;  %v1178_v56 = vsel %vm1171_vm8, %v1161_v22, %v912_v62 }
 0x184   : > { %v1195_v28 = vsel %vm1188_vm9, %v1178_v56, %v961_v39 }
 0x189   : > { %v1023_v53 = vpop.permute.xlu2 %1022 }
 0x18a   : > { %v873_v54 = vpop.permute.xlu0 %872  ;;  %v955_v0 = vpop.permute.xlu1 %954 }
 0x18b   : > { %v1192_v45 = vsel %vm1188_vm9, %v1175_v49, %v955_v0  ;;  %v1168_v48 = vsel %vm1154_vm7, %v2491_v51, %v873_v54 }
 0x18c   : > { %v1209_v25 = vsel %vm1205_vm10, %v1192_v45, %v1009_v31 }
 0x191   : > { %v1082_v47 = vpop.permute.xlu2 %1081 }
 0x192   : > { %v920_v21 = vpop.permute.xlu0 %919  ;;  %v926_v41 = vpop.permute.xlu1 %925 }
 0x193   : > { %v1182_v58 = vsel %vm1171_vm8, %v1165_v19, %v920_v21  ;;  %v1185_v36 = vsel %vm1171_vm8, %v1168_v48, %v926_v41 }
 0x194   : > { %v1202_v44 = vsel %vm1188_vm9, %v1185_v36, %v975_v4 }
 0x199   : > { %v869_v59 = vpop.permute.xlu2 %868 }
 0x19a   : > { %v1015_v33 = vpop.permute.xlu0 %1014 }
 0x19b   : > { %v969_v63 = vpop.permute.xlu1 %968  ;;  %v1314_v26 = vpop.f32.mrf.mxu0  ;;  %v1212_v57 = vsel %vm1205_vm10, %v1195_v28, %v1015_v33 }
 0x19c   : > { %1455 = vst.msk [vmem:[%s2681_s15] sm:$0xff] %vm1120_vm3, %v1314_v26  ;;  %v1199_v29 = vsel %vm1188_vm9, %v1182_v58, %v969_v63  ;;  %v1399_v23 = vmul.f32 %v1314_v26, %v1314_v26  ;;  %v1362_v18 = vsel %vm1120_vm3, %v1314_v26, 0.0 }
 0x19d   : > { %v1216_v1 = vsel %vm1205_vm10, %v1199_v29, %v1023_v53 }
 0x19e   : > { %v1415_v13 = vsel %vm1120_vm3, %v1399_v23, 0.0 }
 0x1a1   : > { %v922_v7 = vpop.permute.xlu2 %921 }
 0x1a2   : > { %v1062_v17 = vpop.permute.xlu0 %1061 }
 0x1a3   : > { %v1068_v55 = vpop.permute.xlu1 %1067  ;;  %v1226_v52 = vsel %vm1222_vm11, %v1209_v25, %v1062_v17 }
 0x1a4   : > { %1701 = vmatmul.msk.f32.gmra.mxu0 %vm1244_vm12, %v1226_v52  ;;  %v1229_v42 = vsel %vm1222_vm11, %v1212_v57, %v1068_v55 }
 0x1a5   : > { %1704 = vmatmul.msk.f32.gmra.mxu1 %vm1244_vm12, %v1229_v42  ;;  %v2699_v35 = vpop.f32.mrf.mxu1 }
 0x1a6   : > { %1459 = vst.msk [vmem:[%s2681_s15 + $0x20] sm:$0xff] %vm1120_vm3, %v2699_v35 }
 0x1a9   : > { %v971_v5 = vpop.permute.xlu2 %970 }
 0x1aa   : > { %v1029_v30 = vpop.permute.xlu0 %1028 }
 0x1ab   : > { %v1219_v2 = vsel %vm1205_vm10, %v1202_v44, %v1029_v30  ;;  %v1076_v60 = vpop.permute.xlu1 %1075 }
 0x1ac   : > { %v1233_v51 = vsel %vm1222_vm11, %v1216_v1, %v1076_v60  ;;  %v1236_v6 = vsel %vm1222_vm11, %v1219_v2, %v1082_v47  ;;  %v1403_v60 = vmul.f32 %v2699_v35, %v2699_v35 }
 0x1ad   : > { %1708 = vmatmul.msk.f32.gmra.mxu2 %vm1244_vm12, %v1233_v51  ;;  %1711 = vmatmul.msk.f32.gmra.mxu3 %vm1244_vm12, %v1236_v6 }
 0x1b1   : > { %v1025_v10 = vpop.permute.xlu2 %1024 }
 0x1b2   : > { %v861_v20 = vpop.permute.xlu0 %860 }
 0x1b3   : > { %v914_v61 = vpop.permute.xlu1 %913  ;;  %v1162_v3 = vsel %vm1154_vm7, %v2448_v16, %v861_v20  ;;  %v1166_v16 = vsel %vm1154_vm7, %v2476_v8, %v869_v59 }
 0x1b4   : > { %v1179_v12 = vsel %vm1171_vm8, %v1162_v3, %v914_v61  ;;  %v1183_v21 = vsel %vm1171_vm8, %v1166_v16, %v922_v7  ;;  %v1369_v61 = vsel %vm1120_vm3, %v2699_v35, 0.0 }
 0x1b5   : > { %v1200_v33 = vsel %vm1188_vm9, %v1183_v21, %v971_v5 }
 0x1b6   : > { %v1217_v27 = vsel %vm1205_vm10, %v1200_v33, %v1025_v10 }
 0x1b9   : > { %v1317_v11 = vpop.f32.mrf.mxu0  ;;  %v1084_v53 = vpop.permute.xlu2 %1083 }
 0x1ba   : > { %v1363_v50 = vsel %vm1120_vm3, %v1317_v11, 0.0  ;;  %v1400_v40 = vmul.f32 %v1317_v11, %v1317_v11  ;;  %1456 = vst.msk [vmem:[%s2681_s15 + $0x8] sm:$0xff] %vm1120_vm3, %v1317_v11  ;;  %v875_v34 = vpop.permute.xlu0 %874 }
 0x1bb   : > { %v1364_v15 = vadd.f32 %v1363_v50, %v1362_v18  ;;  %v963_v37 = vpop.permute.xlu1 %962  ;;  %v1169_v4 = vsel %vm1154_vm7, %v2495_v32, %v875_v34  ;;  %v1422_v50 = vsel %vm1120_vm3, %v1403_v60, 0.0 }
 0x1bc   : > { %v1416_v46 = vsel %vm1120_vm3, %v1400_v40, 0.0  ;;  %v1196_v43 = vsel %vm1188_vm9, %v1179_v12, %v963_v37 }
 0x1bd   : > { %v1417_v14 = vadd.f32 %v1416_v46, %v1415_v13 }
 0x1c1   : > { %v979_v17 = vpop.permute.xlu2 %978 }
 0x1c2   : > { %v928_v38 = vpop.permute.xlu0 %927 }
 0x1c3   : > { %v1017_v39 = vpop.permute.xlu1 %1016  ;;  %v1186_v41 = vsel %vm1171_vm8, %v1169_v4, %v928_v38 }
 0x1c4   : > { %v1213_v31 = vsel %vm1205_vm10, %v1196_v43, %v1017_v39 }
 0x1c8   : > { %v2726_v24 = vpop.f32.mrf.mxu2 }
 0x1c9   : > { %1463 = vst.msk [vmem:[%s2681_s15 + $0x40] sm:$0xff] %vm1120_vm3, %v2726_v24  ;;  %v1407_v3 = vmul.f32 %v2726_v24, %v2726_v24 }
 0x1ca   : > { %v977_v62 = vpop.permute.xlu0 %976 }
 0x1cb   : > { %v1070_v54 = vpop.permute.xlu1 %1069  ;;  %v1203_v63 = vsel %vm1188_vm9, %v1186_v41, %v977_v62  ;;  %v1430_v41 = vsel %vm1120_vm3, %v1407_v3, 0.0 }
 0x1cc   : > { %v1230_v0 = vsel %vm1222_vm11, %v1213_v31, %v1070_v54  ;;  %v1377_v54 = vsel %vm1120_vm3, %v2726_v24, 0.0 }
 0x1cd   : > { %1705 = vmatmul.msk.f32.gmra.mxu1 %vm1244_vm12, %v1230_v0 }
 0x1d2   : > { %v1031_v26 = vpop.permute.xlu0 %1030 }
 0x1d3   : > { %v1220_v22 = vsel %vm1205_vm10, %v1203_v63, %v1031_v26  ;;  %v1078_v49 = vpop.permute.xlu1 %1077 }
 0x1d4   : > { %v1234_v8 = vsel %vm1222_vm11, %v1217_v27, %v1078_v49  ;;  %v1237_v32 = vsel %vm1222_vm11, %v1220_v22, %v1084_v53 }
 0x1d5   : > { %1709 = vmatmul.msk.f32.gmra.mxu2 %vm1244_vm12, %v1234_v8  ;;  %1712 = vmatmul.msk.f32.gmra.mxu3 %vm1244_vm12, %v1237_v32 }
 0x1da   : > { %v877_v56 = vpop.permute.xlu0 %876 }
 0x1db   : > { %v930_v45 = vpop.permute.xlu1 %929  ;;  %v1170_v47 = vsel %vm1154_vm7, %v2419_v9, %v877_v56 }
 0x1dc   : > { %v1187_v28 = vsel %vm1171_vm8, %v1170_v47, %v930_v45 }
 0x1dd   : > { %v1204_v25 = vsel %vm1188_vm9, %v1187_v28, %v979_v17 }
 0x1e2   : > { %v1033_v57 = vpop.permute.xlu0 %1032  ;;  %v1329_v55 = vpop.f32.mrf.mxu1 }
 0x1e3   : > { %v1221_v52 = vsel %vm1205_vm10, %v1204_v25, %v1033_v57  ;;  %1460 = vst.msk [vmem:[%s2681_s15 + $0x28] sm:$0xff] %vm1120_vm3, %v1329_v55  ;;  %v1086_v42 = vpop.permute.xlu1 %1085  ;;  %v1404_v7 = vmul.f32 %v1329_v55, %v1329_v55  ;;  %v1371_v40 = vsel %vm1120_vm3, %v1329_v55, 0.0 }
 0x1e4   : > { %v1238_v19 = vsel %vm1222_vm11, %v1221_v52, %v1086_v42 }
 0x1e5   : > { %1713 = vmatmul.msk.f32.gmra.mxu3 %vm1244_vm12, %v1238_v19  ;;  %v1424_v37 = vsel %vm1120_vm3, %v1404_v7, 0.0 }
 0x1e9   : > { %v1320_v9 = vpop.f32.mrf.mxu0 }
 0x1ea   : > { %v1365_v48 = vsel %vm1120_vm3, %v1320_v9, 0.0  ;;  %v1401_v58 = vmul.f32 %v1320_v9, %v1320_v9  ;;  %1457 = vst.msk [vmem:[%s2681_s15 + $0x10] sm:$0xff] %vm1120_vm3, %v1320_v9 }
 0x1eb   : > { %v1366_v36 = vadd.f32 %v1365_v48, %v1364_v15 }
 0x1ec   : > { %v1418_v29 = vsel %vm1120_vm3, %v1401_v58, 0.0 }
 0x1ed   : > { %v1419_v30 = vadd.f32 %v1418_v29, %v1417_v14 }
 0x1f8   : > { %v1341_v44 = vpop.f32.mrf.mxu2 }
 0x1f9   : > { %1464 = vst.msk [vmem:[%s2681_s15 + $0x48] sm:$0xff] %vm1120_vm3, %v1341_v44  ;;  %v1408_v0 = vmul.f32 %v1341_v44, %v1341_v44  ;;  %v1379_v53 = vsel %vm1120_vm3, %v1341_v44, 0.0 }
 0x1fb   : > { %v1432_v26 = vsel %vm1120_vm3, %v1408_v0, 0.0 }
 0x1ff   : > { %v1350_v59 = vpop.f32.mrf.mxu3 }
 0x200   : > { %1467 = vst.msk [vmem:[%s2681_s15 + $0x60] sm:$0xff] %vm1120_vm3, %v1350_v59  ;;  %v1411_v56 = vmul.f32 %v1350_v59, %v1350_v59  ;;  %v1385_v57 = vsel %vm1120_vm3, %v1350_v59, 0.0 }
 0x202   : > { %v1438_v19 = vsel %vm1120_vm3, %v1411_v56, 0.0 }
 0x221   : > { %v1323_v2 = vpop.f32.mrf.mxu0 }
 0x222   : > { %v1367_v1 = vsel %vm1120_vm3, %v1323_v2, 0.0  ;;  %v1402_v51 = vmul.f32 %v1323_v2, %v1323_v2  ;;  %1458 = vst.msk [vmem:[%s2681_s15 + $0x18] sm:$0xff] %vm1120_vm3, %v1323_v2  ;;  %v1332_v6 = vpop.f32.mrf.mxu1 }
 0x223   : > { %v1368_v20 = vadd.f32 %v1367_v1, %v1366_v36  ;;  %1461 = vst.msk [vmem:[%s2681_s15 + $0x30] sm:$0xff] %vm1120_vm3, %v1332_v6  ;;  %v1405_v35 = vmul.f32 %v1332_v6, %v1332_v6  ;;  %v1373_v5 = vsel %vm1120_vm3, %v1332_v6, 0.0 }
 0x224   : > { %v1420_v23 = vsel %vm1120_vm3, %v1402_v51, 0.0 }
 0x225   : > { %v1370_v11 = vadd.f32 %v1369_v61, %v1368_v20  ;;  %v1421_v18 = vadd.f32 %v1420_v23, %v1419_v30  ;;  %v1426_v10 = vsel %vm1120_vm3, %v1405_v35, 0.0 }
 0x227   : > { %v1423_v34 = vadd.f32 %v1422_v50, %v1421_v18  ;;  %v1372_v15 = vadd.f32 %v1371_v40, %v1370_v11 }
 0x229   : > { %v1425_v13 = vadd.f32 %v1424_v37, %v1423_v34  ;;  %v1374_v38 = vadd.f32 %v1373_v5, %v1372_v15 }
 0x22b   : > { %v1427_v62 = vadd.f32 %v1426_v10, %v1425_v13 }
 0x230   : > { %v1344_v46 = vpop.f32.mrf.mxu2  ;;  %v1353_v14 = vpop.f32.mrf.mxu3 }
 0x231   : > { %1465 = vst.msk [vmem:[%s2681_s15 + $0x50] sm:$0xff] %vm1120_vm3, %v1344_v46  ;;  %v1409_v22 = vmul.f32 %v1344_v46, %v1344_v46  ;;  %v1381_v49 = vsel %vm1120_vm3, %v1344_v46, 0.0  ;;  %v1412_v48 = vmul.f32 %v1353_v14, %v1353_v14  ;;  %v1387_v58 = vsel %vm1120_vm3, %v1353_v14, 0.0 }
 0x232   : > { %1468 = vst.msk [vmem:[%s2681_s15 + $0x68] sm:$0xff] %vm1120_vm3, %v1353_v14 }
 0x233   : > { %v1434_v45 = vsel %vm1120_vm3, %v1409_v22, 0.0  ;;  %v1440_v29 = vsel %vm1120_vm3, %v1412_v48, 0.0 }
 0x24a   : > { %v1335_v39 = vpop.f32.mrf.mxu1 }
 0x24b   : > { %v1375_v12 = vsel %vm1120_vm3, %v1335_v39, 0.0  ;;  %v1406_v43 = vmul.f32 %v1335_v39, %v1335_v39  ;;  %1462 = vst.msk [vmem:[%s2681_s15 + $0x38] sm:$0xff] %vm1120_vm3, %v1335_v39 }
 0x24c   : > { %v1376_v31 = vadd.f32 %v1375_v12, %v1374_v38 }
 0x24d   : > { %v1428_v16 = vsel %vm1120_vm3, %v1406_v43, 0.0 }
 0x24e   : > { %v1378_v4 = vadd.f32 %v1377_v54, %v1376_v31  ;;  %v1429_v21 = vadd.f32 %v1428_v16, %v1427_v62 }
 0x250   : > { %v1431_v33 = vadd.f32 %v1430_v41, %v1429_v21  ;;  %v1380_v63 = vadd.f32 %v1379_v53, %v1378_v4 }
 0x252   : > { %v1433_v27 = vadd.f32 %v1432_v26, %v1431_v33  ;;  %v1382_v8 = vadd.f32 %v1381_v49, %v1380_v63 }
 0x254   : > { %v1435_v25 = vadd.f32 %v1434_v45, %v1433_v27 }
 0x258   : > { %v1347_v24 = vpop.f32.mrf.mxu2  ;;  %v1356_v32 = vpop.f32.mrf.mxu3 }
 0x259   : > { %v1383_v47 = vsel %vm1120_vm3, %v1347_v24, 0.0  ;;  %v1410_v28 = vmul.f32 %v1347_v24, %v1347_v24  ;;  %1466 = vst.msk [vmem:[%s2681_s15 + $0x58] sm:$0xff] %vm1120_vm3, %v1347_v24  ;;  %v1413_v30 = vmul.f32 %v1356_v32, %v1356_v32  ;;  %v1389_v59 = vsel %vm1120_vm3, %v1356_v32, 0.0 }
 0x25a   : > { %v1384_v17 = vadd.f32 %v1383_v47, %v1382_v8  ;;  %1469 = vst.msk [vmem:[%s2681_s15 + $0x70] sm:$0xff] %vm1120_vm3, %v1356_v32 }
 0x25b   : > { %v1436_v55 = vsel %vm1120_vm3, %v1410_v28, 0.0  ;;  %v1442_v1 = vsel %vm1120_vm3, %v1413_v30, 0.0 }
 0x25c   : > { %v1386_v52 = vadd.f32 %v1385_v57, %v1384_v17  ;;  %v1437_v42 = vadd.f32 %v1436_v55, %v1435_v25 }
 0x25e   : > { %v1439_v9 = vadd.f32 %v1438_v19, %v1437_v42  ;;  %v1388_v36 = vadd.f32 %v1387_v58, %v1386_v52 }
 0x260   : > { %v1441_v44 = vadd.f32 %v1440_v29, %v1439_v9  ;;  %v1390_v2 = vadd.f32 %v1389_v59, %v1388_v36 }
 0x262   : > { %v1443_v20 = vadd.f32 %v1442_v1, %v1441_v44 }
 0x268   : > { %v1359_v60 = vpop.f32.mrf.mxu3 }
 0x269   : > { %v1391_v51 = vsel %vm1120_vm3, %v1359_v60, 0.0  ;;  %v1414_v6 = vmul.f32 %v1359_v60, %v1359_v60  ;;  %1470 = vst.msk [vmem:[%s2681_s15 + $0x78] sm:$0xff] %vm1120_vm3, %v1359_v60 }
 0x26a   : > { %v1392_v61 = vadd.f32 %v1391_v51, %v1390_v2 }
 0x26b   : > { %v1444_v7 = vsel %vm1120_vm3, %v1414_v6, 0.0 }
 0x26c   : > { %v1393_v23 = vrot.slane %v1392_v61, 4  ;;  %v1445_v11 = vadd.f32 %v1444_v7, %v1443_v20 }
 0x26e   : > { %v1394_v18 = vadd.f32 %v1393_v23, %v1392_v61  ;;  %v1446_v50 = vrot.slane %v1445_v11, 4 }
 0x270   : > { %v1395_v40 = vrot.slane %v1394_v18, 2  ;;  %v1447_v34 = vadd.f32 %v1446_v50, %v1445_v11 }
 0x272   : > { %v1396_v15 = vadd.f32 %v1395_v40, %v1394_v18  ;;  %v1448_v37 = vrot.slane %v1447_v34, 2 }
 0x274   : > { %v1397_v13 = vrot.slane %v1396_v15, 1  ;;  %v1449_v46 = vadd.f32 %v1448_v37, %v1447_v34 }
 0x276   : > { %v1450_v14 = vrot.slane %v1449_v46, 1  ;;  %v1398_v35 = vadd.f32 %v1397_v13, %v1396_v15 }
 0x278   : > { %v1451_v5 = vadd.f32 %v1450_v14, %v1449_v46 }
 0x27a   : > { %v1452_v38 = vsel %vm518_vm0, %v1398_v35, %v1451_v5 }
 0x27b   : > { %1454 = vst.msk [vmem:[%s467_s18] sm:$0x3] %vm1453_vm13, %v1452_v38 }
 0x27c PF: > { %s18_s28 = sadd.s32 1, %s1825_s28   ;;  %s2852_s24 = smov %s1817_s26 }
 0x27d   : > { %p15_p12 = scmp.ge.s32.totalorder %s18_s28, 6   ;;  %s2853_s25 = smov %s1821_s27 }
 0x27e   : > { %s2854_s26 = smov %s2857_s4  ;;  %s2855_s27 = smov %s2861_s5 }
 0x27f   :  { %17 = sbr.rel (!%p15_p12) target bundleno = 3 (0x3), region = 92 }

// kernel: double_conv_pallas.4
= control target key start
LH: loop header
LB: loop body
LE: loop exit
PB: predicated region body
PF: predicated region fallthrough
CT: control target
= control target key end

     0   :  { %s1958_s24 = smov 0   ;;  %s1960_s25 = smov 0   ;;  %s3002_s0 = inlined_call_operand.vmem [shape: f32[2,16,16,8], index: 0, kind: input, shape index: {}, may-alias: {0,1,2}]   ;;  %s3003_s1 = inlined_call_operand.vmem [shape: f32[2,16,16,8], index: 1, kind: input, shape index: {}, may-alias: {0,1,2}]   ;;  %s3004_s2 = inlined_call_operand.vmem [shape: f32[2,16,16,8], index: 2, kind: input, shape index: {}, may-alias: {0,1,2}]   ;;  %s3005_s3 = inlined_call_operand.vmem [shape: f32[72,8], index: 3, kind: input, shape index: {}]   ;;  %s3006_s4 = inlined_call_operand.vmem [shape: f32[1,8], index: 4, kind: input, shape index: {}]   ;;  %s3007_s5 = inlined_call_operand.vmem [shape: f32[1,8], index: 5, kind: input, shape index: {}]   ;;  %s3008_s6 = inlined_call_operand.vmem [shape: f32[2,16,16,8], index: 6, kind: output, shape index: {0}]   ;;  %s3009_s7 = inlined_call_operand.vmem [shape: f32[2,2,2,8], index: 7, kind: output, shape index: {1}]  }
   0x1   :  { %s1962_s26 = smov 0   ;;  %s1964_s27 = smov 0  }
   0x2   :  { %s1966_s28 = smov 0  }
   0x3 LB: > { %s27_s29 = sadd.s32 1, %s1900_s26  ;;  %s30_s30 = sadd.s32 1, %s1904_s27  ;;  %s1908_s28 = sphi %s1966_s28, %s18_s28   ;;  %s1904_s27 = sphi %s1964_s27, %s3017_s27   ;;  %s1900_s26 = sphi %s1962_s26, %s3016_s26   ;;  %s1896_s25 = sphi %s1960_s25, %s3015_s25   ;;  %s1892_s24 = sphi %s1958_s24, %s3014_s24  }
   0x4   : > { %p28_p0 = scmp.ge.s32.totalorder %s27_s29, 2  ;;  %p1737_p1 = scmp.ge.s32.totalorder %s1908_s28, 1 }
   0x5   : > { %p328_p2 = scmp.lt.s32.totalorder %s1908_s28, 5 }
   0x6   : > { %s3019_s29 = smov (%p28_p0, %s27_s29), 0  ;;  %s3021_s30 = smov (!%p28_p0, %s30_s30), %s1904_s27 }
   0x7   : > { %p329_p3 = pnand %p1737_p1, %p328_p2  ;;  %p32_p4 = scmp.ge.s32.totalorder %s3021_s30, 2 }
   0x9   : > { %s3023_s30 = smov (%p32_p4, %s3021_s30), 0  ;;  %332 = sbr.rel (%p329_p3) target bundleno = 641 (0x281), region = 44 }
   0xe   : > { %s1991_s8 = sshll.u32 %s1892_s24, 3  ;;  %p405_p5 = scmp.lt.s32.totalorder %s1896_s25, 1  ;;  %v2007_v0 = vld [vmem:[%s3006_s4] ss:$0 sm:$0xff]  ;;  %vm586_vm0 = vcmask 1040384   ;;  %vm681_vm1 = vcmask 1046528  }
   0xf   : > { %p407_p6 = scmp.lt.s32.totalorder %s1991_s8, 15  ;;  %s1743_s12 = sadd.s32 4294967295, %s1991_s8  ;;  %v2020_v1 = vld [vmem:[%s3007_s5] ss:$0 sm:$0xff]  ;;  %vm770_vm2 = vcmask 1045504   ;;  %vm1188_vm3 = vcmask 130048  }
  0x10   : > { %s3025_s25 = smov (!%p405_p5, %s1896_s25), 1  ;;  %p417_p7 = scmp.gt.s32.totalorder %s1743_s12, 0  ;;  %vm1171_vm4 = vcmask 64512   ;;  %vm1205_vm5 = vcmask 195584   ;;  %vm1222_vm6 = vcmask 261120   ;;  %vm1239_vm7 = vcmask 326656  }
  0x11   : > { %s408_s9 = scalar_select %p407_p6, %s1991_s8, 15  ;;  %vm1256_vm8 = vcmask 392192   ;;  %vm1273_vm9 = vcmask 457728   ;;  %vm1290_vm10 = vcmask 523264   ;;  %vm1316_vm11 = vcmask 588800  }
  0x12   : > { %s1998_s10 = sshll.u32 %s3025_s25, 5  ;;  %p1744_p8 = scmp.lt.s32.totalorder %s1743_s12, 15  ;;  %vm1521_vm12 = vcmask 58368  }
  0x13   : > { %s1739_s11 = sshll.u32 %s408_s9, 1  ;;  %p556_p9 = scmp.gt.s32.totalorder %s1892_s24, 0 }
  0x14   : > { %s2002_s13 = sadd.s32 %s1998_s10, %s1739_s11  ;;  %s1910_s17 = smov 8  }
  0x15   : > { %s1741_s16 = sshll.u32 %s2002_s13, 3  ;;  %s1911_s20 = smov 16  }
  0x16   : > { %s2015_s19 = scalar_lea.vmem %s3002_s0, %s1741_s16  ;;  %s1912_s21 = smov 24  }
  0x17   : > { %v472_v2 = vld [vmem:[%s2015_s19 + $0x20] sm:$0xff]  ;;  %v473_v3 = vld [vmem:[%s2015_s19 + $0x28] sm:$0xff]  ;;  %v470_v4 = vld [vmem:[%s2015_s19 + $0x10] sm:$0xff]  ;;  %s418_s22 = scalar_select %p417_p7, %s1743_s12, 0 }
  0x18   : > { %v497_v5 = vmul.f32 %v2007_v0, %v472_v2  ;;  %v498_v6 = vmul.f32 %v2007_v0, %v473_v3  ;;  %v471_v7 = vld [vmem:[%s2015_s19 + $0x18] sm:$0xff]  ;;  %v495_v8 = vmul.f32 %v2007_v0, %v470_v4  ;;  %v468_v9 = vld [vmem:[%s2015_s19] sm:$0xff]  ;;  %v469_v10 = vld [vmem:[%s2015_s19 + $0x8] sm:$0xff]  ;;  %s557_s18 = scalar_select %p556_p9, 1.0, 0.0 }
  0x19   : > { %v496_v11 = vmul.f32 %v2007_v0, %v471_v7  ;;  %v493_v12 = vmul.f32 %v2007_v0, %v468_v9  ;;  %v494_v13 = vmul.f32 %v2007_v0, %v469_v10  ;;  %v474_v14 = vld [vmem:[%s2015_s19 + $0x30] sm:$0xff]  ;;  %v475_v15 = vld [vmem:[%s2015_s19 + $0x38] sm:$0xff]  ;;  %s3027_s22 = smov (!%p1744_p8, %s418_s22), 15  ;;  %v477_v7 = vld [vmem:[%s2015_s19 + $0x48] sm:$0xff]  ;;  %p462_p11 = scmp.lt.s32.totalorder %s1892_s24, 1 }
  0x1a   : > { %v516_v16 = vadd.f32 %v2020_v1, %v497_v5  ;;  %v517_v17 = vadd.f32 %v2020_v1, %v498_v6  ;;  %v514_v18 = vadd.f32 %v2020_v1, %v495_v8  ;;  %v499_v19 = vmul.f32 %v2007_v0, %v474_v14  ;;  %s1749_s23 = sshll.u32 %s3027_s22, 1  ;;  %v476_v6 = vld [vmem:[%s2015_s19 + $0x40] sm:$0xff]  ;;  %v478_v9 = vld [vmem:[%s2015_s19 + $0x50] sm:$0xff]  ;;  %v479_v10 = vld [vmem:[%s2015_s19 + $0x58] sm:$0xff]  ;;  %s1914_s22 = smov 40  }
  0x1b   : > { %v515_v20 = vadd.f32 %v2020_v1, %v496_v11  ;;  %v512_v21 = vadd.f32 %v2020_v1, %v493_v12  ;;  %v513_v22 = vadd.f32 %v2020_v1, %v494_v13  ;;  %v500_v23 = vmul.f32 %v2007_v0, %v475_v15  ;;  %s425_s9 = sadd.s32 %s1749_s23, %s1998_s10  ;;  %s1915_s23 = smov 48  }
  0x1c   : > { %v532_v24 = vmax.f32 %v516_v16, 0.0  ;;  %v533_v25 = vmax.f32 %v517_v17, 0.0  ;;  %v530_v26 = vmax.f32 %v514_v18, 0.0  ;;  %v518_v27 = vadd.f32 %v2020_v1, %v499_v19  ;;  %s1751_s11 = sshll.u32 %s425_s9, 3  ;;  %v480_v19 = vld [vmem:[%s2015_s19 + $0x60] sm:$0xff]  ;;  %s1916_s9 = smov 64  }
  0x1d   : > { %v531_v28 = vmax.f32 %v515_v20, 0.0  ;;  %v528_v29 = vmax.f32 %v512_v21, 0.0  ;;  %v529_v30 = vmax.f32 %v513_v22, 0.0  ;;  %v519_v31 = vadd.f32 %v2020_v1, %v500_v23  ;;  %s427_s15 = scalar_lea.vmem %s3003_s1, %s1751_s11  ;;  %s1917_s11 = smov 56  }
  0x1e   : > { %v596_v32 = vrot.slane %v532_v24, 7  ;;  %v2048_v33 = vrot.slane %v533_v25, 7  ;;  %v593_v34 = vrot.slane %v530_v26, 7  ;;  %v534_v35 = vmax.f32 %v518_v27, 0.0  ;;  %v484_v56 = vld [vmem:[%s427_s15] sm:$0xff]  ;;  %v485_v57 = vld [vmem:[%s427_s15 + $0x8] sm:$0xff] }
  0x1f   : > { %v594_v36 = vrot.slane %v531_v28, 7  ;;  %v590_v37 = vrot.slane %v528_v29, 7  ;;  %v591_v38 = vrot.slane %v529_v30, 7  ;;  %v535_v39 = vmax.f32 %v519_v31, 0.0  ;;  %v481_v24 = vld [vmem:[%s2015_s19 + $0x68] sm:$0xff]  ;;  %s3033_s24 = smov (!%p462_p11, %s1892_s24), 1 }
  0x20   : > { %v2052_v40 = vsel %vm586_vm0, %v596_v32, %v2048_v33  ;;  %v2055_v41 = vsel %vm586_vm0, 0.0, %v596_v32  ;;  %v2058_v42 = vsel %vm586_vm0, 0.0, %v593_v34  ;;  %v599_v43 = vrot.slane %v534_v35, 7  ;;  %s1763_s13 = sshll.u32 %s3025_s25, 1 }
  0x21   : > { %v697_v44 = vrot.slane %v2055_v41, 1  ;;  %v698_v45 = vrot.slane %v2052_v40, 1  ;;  %v2066_v46 = vsel %vm586_vm0, %v593_v34, %v594_v36  ;;  %v692_v47 = vrot.slane %v2058_v42, 1 }
  0x22   : > { %v693_v48 = vrot.slane %v2066_v46, 1  ;;  %v2072_v49 = vsel %vm586_vm0, %v590_v37, %v591_v38  ;;  %v2075_v50 = vsel %vm586_vm0, 0.0, %v590_v37  ;;  %v600_v51 = vrot.slane %v535_v39, 7 }
  0x23   : > { %v2080_v52 = vsel %vm681_vm1, %v697_v44, %v698_v45  ;;  %v687_v53 = vrot.slane %v2075_v50, 1  ;;  %v688_v54 = vrot.slane %v2072_v49, 1  ;;  %v2085_v55 = vsel %vm586_vm0, %v594_v36, 0.0 }
  0x24   : > { %734 = vrot.lane.b32.xlu0 %v2080_v52, %s1910_s17  ;;  %v2090_v58 = vsel %vm681_vm1, %v692_v47, %v693_v48  ;;  %v2093_v59 = vsel %vm586_vm0, %v599_v43, %v600_v51  ;;  %v2096_v60 = vsel %vm586_vm0, %v600_v51, 0.0  ;;  %v695_v61 = vrot.slane %v2085_v55, 1 }
  0x25   : > { %730 = vrot.lane.b32.xlu2 %v2090_v58, %s1910_s17  ;;  %v2102_v62 = vsel %vm681_vm1, %v687_v53, %v688_v54  ;;  %v703_v63 = vrot.slane %v2093_v59, 1  ;;  %v705_v2 = vrot.slane %v2096_v60, 1  ;;  %v2107_v3 = vsel %vm586_vm0, %v591_v38, 0.0 }
  0x26   : > { %726 = vrot.lane.b32.xlu1 %v2102_v62, %s1910_s17  ;;  %v544_v4 = vmul.f32 %v2007_v0, %v484_v56  ;;  %v545_v5 = vmul.f32 %v2007_v0, %v485_v57  ;;  %v690_v8 = vrot.slane %v2107_v3, 1  ;;  %v2124_v12 = vsel %vm681_vm1, %v693_v48, %v695_v61 }
  0x27   : > { %v2121_v11 = vsel %vm681_vm1, %v703_v63, %v705_v2  ;;  %v558_v15 = vstv %s557_s18  ;;  %v2129_v16 = vsel %vm586_vm0, 0.0, %v599_v43  ;;  %v501_v17 = vmul.f32 %v2007_v0, %v476_v6  ;;  %s1790_s18 = sadd.s32 8, %s1991_s8 }
  0x28   : > { %v546_v13 = vadd.f32 %v2020_v1, %v544_v4  ;;  %v547_v14 = vadd.f32 %v2020_v1, %v545_v5  ;;  %v502_v18 = vmul.f32 %v2007_v0, %v477_v7  ;;  %v503_v22 = vmul.f32 %v2007_v0, %v478_v9  ;;  %p2692_p10 = scmp.lt.s32.totalorder %s1790_s18, 15 }
  0x29   : > { %v504_v23 = vmul.f32 %v2007_v0, %v479_v10  ;;  %v2138_v25 = vsel %vm681_vm1, %v688_v54, %v690_v8  ;;  %v520_v26 = vadd.f32 %v2020_v1, %v501_v17  ;;  %v2146_v30 = vsel %vm586_vm0, %v2048_v33, 0.0 }
  0x2a   : > { %v548_v20 = vmax.f32 %v546_v13, 0.0  ;;  %v549_v21 = vmax.f32 %v547_v14, 0.0  ;;  %v521_v27 = vadd.f32 %v2020_v1, %v502_v18  ;;  %v505_v31 = vmul.f32 %v2007_v0, %v480_v19  ;;  %s3029_s18 = smov (!%p2692_p10, %s1790_s18), 15 }
  0x2b   : > { %v702_v32 = vrot.slane %v2129_v16, 1  ;;  %v536_v34 = vmax.f32 %v520_v26, 0.0  ;;  %v506_v36 = vmul.f32 %v2007_v0, %v481_v24  ;;  %v522_v39 = vadd.f32 %v2020_v1, %v503_v22  ;;  %s3031_s18 = smov (!%p2692_p10, %s3029_s18), 15 }
  0x2c   : > { %740 = vrot.lane.b32.xlu0 %v2121_v11, %s1910_s17  ;;  %v559_v28 = vmul.f32 %v558_v15, %v548_v20  ;;  %v560_v29 = vmul.f32 %v558_v15, %v549_v21  ;;  %v537_v35 = vmax.f32 %v521_v27, 0.0  ;;  %v523_v33 = vadd.f32 %v2020_v1, %v504_v23  ;;  %s1756_s8 = sshll.u32 %s3031_s18, 1 }
  0x2d   : > { %732 = vrot.lane.b32.xlu2 %v2124_v12, %s1910_s17  ;;  %v700_v43 = vrot.slane %v2146_v30, 1  ;;  %v602_v44 = vrot.slane %v536_v34, 7  ;;  %v524_v53 = vadd.f32 %v2020_v1, %v505_v31  ;;  %v525_v54 = vadd.f32 %v2020_v1, %v506_v36 }
  0x2e   : > { %728 = vrot.lane.b32.xlu1 %v2138_v25, %s1910_s17  ;;  %v587_v37 = vrot.slane %v559_v28, 7  ;;  %v588_v38 = vrot.slane %v560_v29, 7  ;;  %v603_v47 = vrot.slane %v537_v35, 7  ;;  %v2169_v61 = vsel %vm681_vm1, %v702_v32, %v703_v63 }
  0x2f   : > { %v538_v4 = vmax.f32 %v522_v39, 0.0  ;;  %v539_v5 = vmax.f32 %v523_v33, 0.0  ;;  %v2176_v7 = vsel %vm681_vm1, %v698_v45, %v700_v43  ;;  %v2186_v63 = vsel %vm586_vm0, 0.0, %v602_v44 }
  0x30   : > { %v2159_v48 = vsel %vm586_vm0, %v587_v37, %v588_v38  ;;  %v2162_v51 = vsel %vm586_vm0, 0.0, %v587_v37  ;;  %v655_v2 = vsel %vm586_vm0, %v588_v38, 0.0  ;;  %v2179_v8 = vsel %vm586_vm0, %v602_v44, %v603_v47 }
  0x31   : > { %v682_v56 = vrot.slane %v2162_v51, 1  ;;  %v683_v57 = vrot.slane %v2159_v48, 1  ;;  %v2182_v9 = vsel %vm586_vm0, %v603_v47, 0.0  ;;  %v540_v10 = vmax.f32 %v524_v53, 0.0 }
  0x32   : > { %v541_v13 = vmax.f32 %v525_v54, 0.0  ;;  %v685_v14 = vrot.slane %v655_v2, 1  ;;  %v708_v45 = vrot.slane %v2179_v8, 1  ;;  %v710_v15 = vrot.slane %v2182_v9, 1 }
  0x33   : > { %v684_v6 = vsel %vm681_vm1, %v682_v56, %v683_v57  ;;  %v605_v17 = vrot.slane %v538_v4, 7  ;;  %v606_v18 = vrot.slane %v539_v5, 7  ;;  %v707_v19 = vrot.slane %v2186_v63, 1 }
  0x34   : > { %722 = vrot.lane.b32.xlu0 %v684_v6, %s1910_s17  ;;  %v608_v20 = vrot.slane %v540_v10, 7  ;;  %v609_v21 = vrot.slane %v541_v13, 7  ;;  %v686_v22 = vsel %vm681_vm1, %v683_v57, %v685_v14  ;;  %v2197_v23 = vsel %vm681_vm1, %v708_v45, %v710_v15 }
  0x35   : > { %738 = vrot.lane.b32.xlu2 %v2169_v61, %s1910_s17  ;;  %v2200_v24 = vsel %vm586_vm0, %v605_v17, %v606_v18  ;;  %v2203_v26 = vsel %vm586_vm0, 0.0, %v605_v17  ;;  %v2206_v27 = vsel %vm681_vm1, %v707_v19, %v708_v45  ;;  %v2216_v31 = vsel %vm586_vm0, %v606_v18, 0.0 }
  0x36   : > { %736 = vrot.lane.b32.xlu1 %v2176_v7, %s1910_s17  ;;  %v2209_v28 = vsel %vm586_vm0, %v608_v20, %v609_v21  ;;  %v2212_v29 = vsel %vm586_vm0, 0.0, %v608_v20  ;;  %v712_v32 = vrot.slane %v2203_v26, 1  ;;  %v713_v34 = vrot.slane %v2200_v24, 1 }
  0x37   : > { %v717_v35 = vrot.slane %v2212_v29, 1  ;;  %v718_v36 = vrot.slane %v2209_v28, 1  ;;  %v715_v37 = vrot.slane %v2216_v31, 1  ;;  %v2234_v33 = vsel %vm586_vm0, %v609_v21, 0.0 }
  0x38   : > { %v2228_v38 = vsel %vm681_vm1, %v712_v32, %v713_v34  ;;  %v720_v44 = vrot.slane %v2234_v33, 1  ;;  %v772_v47 = vrot.slane %v2159_v48, 2  ;;  %v774_v53 = vrot.slane %v655_v2, 2 }
  0x39   : > { %v2231_v39 = vsel %vm681_vm1, %v717_v35, %v718_v36  ;;  %v2237_v43 = vsel %vm681_vm1, %v713_v34, %v715_v37  ;;  %v771_v54 = vrot.slane %v2162_v51, 2  ;;  %v776_v5 = vrot.slane %v2075_v50, 2 }
  0x3a   : > { %v2249_v56 = vsel %vm681_vm1, %v718_v36, %v720_v44  ;;  %v775_v57 = vsel %vm770_vm2, %v772_v47, %v774_v53  ;;  %v777_v2 = vrot.slane %v2072_v49, 2  ;;  %v781_v6 = vrot.slane %v2058_v42, 2 }
  0x3b   : > { %v773_v4 = vsel %vm770_vm2, %v771_v54, %v772_v47  ;;  %v782_v10 = vrot.slane %v2066_v46, 2  ;;  %v779_v13 = vrot.slane %v2107_v3, 2  ;;  %v784_v17 = vrot.slane %v2085_v55, 2 }
  0x3c   : > { %724 = vrot.lane.b32.xlu0 %v686_v22, %s1910_s17  ;;  %v2263_v14 = vsel %vm770_vm2, %v776_v5, %v777_v2  ;;  %v787_v3 = vrot.slane %v2052_v40, 2  ;;  %v789_v18 = vrot.slane %v2146_v30, 2  ;;  %v786_v19 = vrot.slane %v2055_v41, 2 }
  0x3d   : > { %744 = vrot.lane.b32.xlu2 %v2197_v23, %s1910_s17  ;;  %v2266_v45 = vsel %vm770_vm2, %v781_v6, %v782_v10  ;;  %v2269_v15 = vsel %vm770_vm2, %v777_v2, %v779_v13  ;;  %v2282_v20 = vsel %vm770_vm2, %v782_v10, %v784_v17  ;;  %v791_v55 = vrot.slane %v2129_v16, 2  ;;  %v482_v17 = vld [vmem:[%s2015_s19 + $0x70] sm:$0xff] }
  0x3e   : > { %742 = vrot.lane.b32.xlu1 %v2206_v27, %s1910_s17  ;;  %v2285_v21 = vsel %vm770_vm2, %v787_v3, %v789_v18  ;;  %v2288_v22 = vsel %vm770_vm2, %v786_v19, %v787_v3  ;;  %v792_v30 = vrot.slane %v2093_v59, 2  ;;  %v796_v32 = vrot.slane %v2186_v63, 2  ;;  %v483_v3 = vld [vmem:[%s2015_s19 + $0x78] sm:$0xff]  ;;  %s1913_s19 = smov 32  }
  0x3f   : > { %v797_v34 = vrot.slane %v2179_v8, 2  ;;  %v794_v35 = vrot.slane %v2096_v60, 2  ;;  %v799_v47 = vrot.slane %v2182_v9, 2  ;;  %v802_v60 = vrot.slane %v2200_v24, 2 }
  0x40   : > { %v2302_v36 = vsel %vm770_vm2, %v791_v55, %v792_v30  ;;  %v804_v53 = vrot.slane %v2216_v31, 2  ;;  %v801_v54 = vrot.slane %v2203_v26, 2  ;;  %v806_v9 = vrot.slane %v2212_v29, 2 }
  0x41   : > { %v2305_v37 = vsel %vm770_vm2, %v796_v32, %v797_v34  ;;  %v2308_v44 = vsel %vm770_vm2, %v792_v30, %v794_v35  ;;  %v807_v31 = vrot.slane %v2209_v28, 2  ;;  %v809_v2 = vrot.slane %v2234_v33, 2 }
  0x42   : > { %3011 = vst [vmem:[#allocation2_spill] sm:$0xff] %v2305_v37  ;;  %v2327_v5 = vsel %vm770_vm2, %v801_v54, %v802_v60  ;;  %v507_v18 = vmul.f32 %v2007_v0, %v482_v17  ;;  %v508_v19 = vmul.f32 %v2007_v0, %v483_v3 }
  0x43   : > { %v2339_v6 = vsel %vm770_vm2, %v806_v9, %v807_v31  ;;  %v2342_v10 = vsel %vm770_vm2, %v807_v31, %v809_v2 }
  0x44   : > { %746 = vrot.lane.b32.xlu0 %v2228_v38, %s1910_s17  ;;  %v526_v55 = vadd.f32 %v2020_v1, %v507_v18  ;;  %v527_v30 = vadd.f32 %v2020_v1, %v508_v19 }
  0x45   : > { %750 = vrot.lane.b32.xlu2 %v2231_v39, %s1910_s17 }
  0x46   : > { %748 = vrot.lane.b32.xlu1 %v2237_v43, %s1910_s17  ;;  %v543_v35 = vmax.f32 %v527_v30, 0.0 }
  0x4c   : > { %752 = vrot.lane.b32.xlu0 %v2249_v56, %s1910_s17 }
  0x4d   : > { %813 = vrot.lane.b32.xlu2 %v775_v57, %s1911_s20  ;;  %v2321_v57 = vsel %vm770_vm2, %v797_v34, %v799_v47  ;;  %v542_v34 = vmax.f32 %v526_v55, 0.0 }
  0x4e   : > { %811 = vrot.lane.b32.xlu1 %v773_v4, %s1911_s20  ;;  %v2324_v4 = vsel %vm770_vm2, %v802_v60, %v804_v53  ;;  %v2386_v60 = vrot.slane %v543_v35, 7 }
  0x4f   : > { %v611_v47 = vrot.slane %v542_v34, 7 }
  0x51   : > { %v2392_v54 = vsel %vm586_vm0, %v611_v47, %v2386_v60  ;;  %v2395_v9 = vsel %vm586_vm0, 0.0, %v611_v47 }
  0x54   : > { %815 = vrot.lane.b32.xlu0 %v2263_v14, %s1911_s20 }
  0x55   : > { %819 = vrot.lane.b32.xlu2 %v2266_v45, %s1911_s20 }
  0x56   : > { %817 = vrot.lane.b32.xlu1 %v2269_v15, %s1911_s20 }
  0x5c   : > { %821 = vrot.lane.b32.xlu0 %v2282_v20, %s1911_s20 }
  0x5d   : > { %825 = vrot.lane.b32.xlu2 %v2285_v21, %s1911_s20 }
  0x5e   : > { %823 = vrot.lane.b32.xlu1 %v2288_v22, %s1911_s20 }
  0x64   : > { %827 = vrot.lane.b32.xlu0 %v2302_v36, %s1911_s20 }
  0x65   : > { %831 = vrot.lane.b32.xlu2 %v2305_v37, %s1911_s20 }
  0x66   : > { %829 = vrot.lane.b32.xlu1 %v2308_v44, %s1911_s20 }
  0x6c   : > { %833 = vrot.lane.b32.xlu0 %v2321_v57, %s1911_s20 }
  0x6d   : > { %837 = vrot.lane.b32.xlu2 %v2324_v4, %s1911_s20 }
  0x6e   : > { %835 = vrot.lane.b32.xlu1 %v2327_v5, %s1911_s20 }
  0x74   : > { %839 = vrot.lane.b32.xlu0 %v2339_v6, %s1911_s20 }
  0x75   : > { %860 = vrot.lane.b32.xlu2 %v2075_v50, %s1912_s21 }
  0x76   : > { %841 = vrot.lane.b32.xlu1 %v2342_v10, %s1911_s20 }
  0x7c   : > { %862 = vrot.lane.b32.xlu0 %v2072_v49, %s1912_s21 }
  0x7d   : > { %866 = vrot.lane.b32.xlu2 %v2066_v46, %s1912_s21 }
  0x7e   : > { %864 = vrot.lane.b32.xlu1 %v2058_v42, %s1912_s21 }
  0x7f   : > { %v731_v33 = vpop.permute.xlu2 %730 }
  0x84   : > { %868 = vrot.lane.b32.xlu0 %v2055_v41, %s1912_s21 }
  0x85   : > { %872 = vrot.lane.b32.xlu2 %v2129_v16, %s1912_s21 }
  0x86   : > { %870 = vrot.lane.b32.xlu1 %v2052_v40, %s1912_s21 }
  0x87   : > { %v2362_v13 = vpop.permute.xlu2 %732 }
  0x8c   : > { %874 = vrot.lane.b32.xlu0 %v2093_v59, %s1912_s21 }
  0x8d   : > { %878 = vrot.lane.b32.xlu2 %v2179_v8, %s1912_s21 }
  0x8e   : > { %876 = vrot.lane.b32.xlu1 %v2186_v63, %s1912_s21 }
  0x8f   : > { %v2376_v32 = vpop.permute.xlu2 %738 }
  0x94   : > { %880 = vrot.lane.b32.xlu0 %v2203_v26, %s1912_s21 }
  0x95   : > { %884 = vrot.lane.b32.xlu2 %v2212_v29, %s1912_s21 }
  0x96   : > { %882 = vrot.lane.b32.xlu1 %v2200_v24, %s1912_s21  ;;  %v2384_v0 = vpop.permute.xlu0 %734 }
  0x97   : > { %v2388_v53 = vpop.permute.xlu2 %744 }
  0x98   : > { %v727_v1 = vpop.permute.xlu1 %726 }
  0x9c   : > { %886 = vrot.lane.b32.xlu0 %v2209_v28, %s1912_s21 }
  0x9d   : > { %890 = vrot.lane.b32.xlu2 %v2392_v54, %s1912_s21 }
  0x9e   : > { %888 = vrot.lane.b32.xlu1 %v2395_v9, %s1912_s21  ;;  %v2403_v31 = vpop.permute.xlu0 %740  ;;  %s442_s21 = sadd.s32 %s1756_s8, %s1998_s10 }
  0x9f   : > { %v2405_v2 = vpop.permute.xlu2 %750  ;;  %s1758_s12 = sshll.u32 %s442_s21, 3 }
  0xa0   : > { %v729_v17 = vpop.permute.xlu1 %728  ;;  %s444_s15 = scalar_lea.vmem %s3004_s2, %s1758_s12 }
  0xa1   : > { %s562_s21 = scalar_select %p462_p11, 1.0, 0.0 }
  0xa4   : > { %914 = vrot.lane.b32.xlu0 %v2102_v62, %s1913_s19 }
  0xa5   : > { %967 = vrot.lane.b32.xlu2 %v2263_v14, %s1914_s22 }
  0xa6   : > { %916 = vrot.lane.b32.xlu1 %v2138_v25, %s1913_s19  ;;  %v723_v3 = vpop.permute.xlu0 %722  ;;  %v1176_v25 = vsel %vm1171_vm4, %v2058_v42, %v731_v33 }
  0xa7   : > { %v814_v18 = vpop.permute.xlu2 %813 }
  0xa8   : > { %v737_v19 = vpop.permute.xlu1 %736 }
  0xac   : > { %1016 = vrot.lane.b32.xlu0 %v2058_v42, %s1915_s23 }
  0xad   : > { %1123 = vrot.lane.b32.xlu2 %v2266_v45, %s1916_s9 }
  0xae   : > { %1070 = vrot.lane.b32.xlu1 %v2090_v58, %s1917_s11  ;;  %v725_v62 = vpop.permute.xlu0 %724 }
  0xaf   : > { %v1173_v14 = vsel %vm1171_vm4, %v2159_v48, %v725_v62  ;;  %v820_v55 = vpop.permute.xlu2 %819  ;;  %v1179_v48 = vsel %vm1171_vm4, %v2052_v40, %v737_v19  ;;  %v1172_v19 = vsel %vm1171_vm4, %v2162_v51, %v723_v3 }
  0xb0   : > { %v2424_v30 = vsel %vm1188_vm3, %v1176_v25, %v820_v55  ;;  %v743_v34 = vpop.permute.xlu1 %742  ;;  %v2427_v35 = vsel %vm1188_vm3, %v1173_v14, %v814_v18 }
  0xb4   : > { %922 = vrot.lane.b32.xlu0 %v2080_v52, %s1913_s19 }
  0xb5   : > { %975 = vrot.lane.b32.xlu2 %v2288_v22, %s1914_s22 }
  0xb6   : > { %969 = vrot.lane.b32.xlu1 %v2269_v15, %s1914_s22  ;;  %v747_v42 = vpop.permute.xlu0 %746  ;;  %v1182_v15 = vsel %vm1171_vm4, %v2186_v63, %v743_v34 }
  0xb7   : > { %v826_v33 = vpop.permute.xlu2 %825 }
  0xb8   : > { %v2438_v47 = vsel %vm1188_vm3, %v1179_v48, %v826_v33  ;;  %v749_v62 = vpop.permute.xlu1 %748  ;;  %v1174_v33 = vsel %vm1171_vm4, %v2075_v50, %v727_v1  ;;  %v1177_v50 = vsel %vm1171_vm4, %v2066_v46, %v2362_v13 }
  0xb9   : > { %v1185_v51 = vsel %vm1171_vm4, %v2200_v24, %v749_v62  ;;  %v1178_v62 = vsel %vm1171_vm4, %v2055_v41, %v2384_v0 }
  0xbc   : > { %930 = vrot.lane.b32.xlu0 %v2206_v27, %s1913_s19 }
  0xbd   : > { %1024 = vrot.lane.b32.xlu2 %v2129_v16, %s1915_s23 }
  0xbe   : > { %1018 = vrot.lane.b32.xlu1 %v2066_v46, %s1915_s23  ;;  %v753_v18 = vpop.permute.xlu0 %752  ;;  %v1180_v46 = vsel %vm1171_vm4, %v2129_v16, %v2376_v32  ;;  %v1183_v16 = vsel %vm1171_vm4, %v2179_v8, %v2388_v53 }
  0xbf   : > { %v832_v25 = vpop.permute.xlu2 %831 }
  0xc0   : > { %v2451_v14 = vsel %vm1188_vm3, %v1182_v15, %v832_v25  ;;  %v812_v55 = vpop.permute.xlu1 %811  ;;  %v1175_v25 = vsel %vm1171_vm4, %v2072_v49, %v729_v17 }
  0xc1   : > { %v1189_v48 = vsel %vm1188_vm3, %v1172_v19, %v812_v55 }
  0xc4   : > { %983 = vrot.lane.b32.xlu0 %v2305_v37, %s1914_s22 }
  0xc5   : > { %1078 = vrot.lane.b32.xlu2 %v2169_v61, %s1917_s11 }
  0xc6   : > { %1072 = vrot.lane.b32.xlu1 %v2124_v12, %s1917_s11  ;;  %v816_v34 = vpop.permute.xlu0 %815 }
  0xc7   : > { %v838_v3 = vpop.permute.xlu2 %837  ;;  %v1191_v15 = vsel %vm1188_vm3, %v1174_v33, %v816_v34 }
  0xc8   : > { %v2468_v19 = vsel %vm1188_vm3, %v1185_v51, %v838_v3  ;;  %v818_v55 = vpop.permute.xlu1 %817  ;;  %v1181_v3 = vsel %vm1171_vm4, %v2093_v59, %v2403_v31 }
  0xc9   : > { %v1192_v37 = vsel %vm1188_vm3, %v1175_v25, %v818_v55 }
  0xcc   : > { %1032 = vrot.lane.b32.xlu0 %v2203_v26, %s1915_s23 }
  0xcd   : > { %1131 = vrot.lane.b32.xlu2 %v2302_v36, %s1916_s9 }
  0xce   : > { %1125 = vrot.lane.b32.xlu1 %v2282_v20, %s1916_s9  ;;  %v822_v49 = vpop.permute.xlu0 %821 }
  0xcf   : > { %v861_v1 = vpop.permute.xlu2 %860  ;;  %v2481_v17 = vsel %vm1188_vm3, %v1177_v50, %v822_v49  ;;  %v1184_v50 = vsel %vm1171_vm4, %v2203_v26, %v747_v42 }
  0xd0   : > { %v2487_v33 = vsel %vm1205_vm5, %v1189_v48, %v861_v1  ;;  %v824_v34 = vpop.permute.xlu1 %823 }
  0xd1   : > { %v1195_v51 = vsel %vm1188_vm3, %v1178_v62, %v824_v34  ;;  %v1187_v34 = vsel %vm1171_vm4, %v2209_v28, %v753_v18 }
  0xd4   : > { %1086 = vrot.lane.b32.xlu0 %v2228_v38, %s1917_s11 }
  0xd5   : > { %918 = vrot.lane.b32.xlu2 %v2090_v58, %s1913_s19 }
  0xd6   : > { %1139 = vrot.lane.b32.xlu1 %v2327_v5, %s1916_s9  ;;  %v828_v13 = vpop.permute.xlu0 %827 }
  0xd7   : > { %v867_v0 = vpop.permute.xlu2 %866  ;;  %v2500_v48 = vsel %vm1188_vm3, %v1180_v46, %v828_v13 }
  0xd8   : > { %v2506_v25 = vsel %vm1205_vm5, %v1192_v37, %v867_v0  ;;  %v830_v58 = vpop.permute.xlu1 %829 }
  0xd9   : > { %v1198_v55 = vsel %vm1188_vm3, %v1181_v3, %v830_v58 }
  0xdc   : > { %924 = vrot.lane.b32.xlu0 %v2176_v7, %s1913_s19 }
  0xdd   : > { %977 = vrot.lane.b32.xlu2 %v2285_v21, %s1914_s22 }
  0xde   : > { %971 = vrot.lane.b32.xlu1 %v2266_v45, %s1914_s22  ;;  %v834_v32 = vpop.permute.xlu0 %833  ;;  %v1186_v45 = vsel %vm1171_vm4, %v2212_v29, %v2405_v2 }
  0xdf   : > { %v873_v31 = vpop.permute.xlu2 %872  ;;  %v2519_v37 = vsel %vm1188_vm3, %v1183_v16, %v834_v32 }
  0xe0   : > { %v2524_v49 = vsel %vm1205_vm5, %v1195_v51, %v873_v31  ;;  %v836_v1 = vpop.permute.xlu1 %835 }
  0xe1   : > { %v1201_v62 = vsel %vm1188_vm3, %v1184_v50, %v836_v1  ;;  %v1311_v50 = vld [vmem:[%s3005_s3 + $0x20] sm:$0xff]  ;;  %v1310_v1 = vld [vmem:[%s3005_s3 + $0x18] sm:$0xff] }
  0xe4   : > { %932 = vrot.lane.b32.xlu0 %v2197_v23, %s1913_s19 }
  0xe5   : > { %1020 = vrot.lane.b32.xlu2 %v2055_v41, %s1915_s23 }
  0xe6   : > { %938 = vrot.lane.b32.xlu1 %v2231_v39, %s1913_s19  ;;  %v840_v26 = vpop.permute.xlu0 %839 }
  0xe7   : > { %v879_v53 = vpop.permute.xlu2 %878  ;;  %v2537_v42 = vsel %vm1188_vm3, %v1186_v45, %v840_v26 }
  0xe8   : > { %v2542_v51 = vsel %vm1205_vm5, %v1198_v55, %v879_v53  ;;  %v842_v46 = vpop.permute.xlu1 %841  ;;  %v1314_v55 = vld [vmem:[%s3005_s3 + $0x38] sm:$0xff]  ;;  %v909_v53 = vrot.slane %v2395_v9, 1 }
  0xe9   : > { %v1204_v41 = vsel %vm1188_vm3, %v1187_v34, %v842_v46  ;;  %v910_v34 = vrot.slane %v2392_v54, 1 }
  0xec   : > { %1026 = vrot.lane.b32.xlu0 %v2093_v59, %s1915_s23  ;;  %v1315_v59 = vld [vmem:[%s3005_s3 + $0x40] sm:$0xff] }
  0xed   : > { %991 = vrot.lane.b32.xlu2 %v2339_v6, %s1914_s22  ;;  %1372 = vmatpush.msra.mxu0 %v1315_v59 }
  0xee   : > { %985 = vrot.lane.b32.xlu1 %v2321_v57, %s1914_s22  ;;  %v863_v2 = vpop.permute.xlu0 %862  ;;  %1791 = vmatpush.msra.mxu1 %v1315_v59 }
  0xef   : > { %v885_v13 = vpop.permute.xlu2 %884  ;;  %v2553_v18 = vsel %vm1205_vm5, %v2427_v35, %v863_v2  ;;  %1792 = vmatpush.msra.mxu2 %v1315_v59  ;;  %1793 = vmatpush.msra.mxu3 %v1315_v59  ;;  %v2622_v2 = vsel %vm681_vm1, %v909_v53, %v910_v34 }
  0xf0   : > { %v2556_v0 = vsel %vm1205_vm5, %v1201_v62, %v885_v13  ;;  %v865_v3 = vpop.permute.xlu1 %864  ;;  %1373 = vmatpush.msra.mxu0 %v1314_v55  ;;  %1794 = vmatpush.msra.mxu1 %v1314_v55  ;;  %v1309_v62 = vld [vmem:[%s3005_s3 + $0x10] sm:$0xff]  ;;  %v963_v13 = vrot.slane %v2392_v54, 2 }
  0xf1   : > { %v2559_v58 = vsel %vm1205_vm5, %v1191_v15, %v865_v3  ;;  %v1313_v15 = vld [vmem:[%s3005_s3 + $0x30] sm:$0xff]  ;;  %1795 = vmatpush.msra.mxu2 %v1314_v55  ;;  %1796 = vmatpush.msra.mxu3 %v1314_v55 }
  0xf2   : > { %1374 = vmatpush.msra.mxu0 %v1313_v15  ;;  %1797 = vmatpush.msra.mxu1 %v1313_v15 }
  0xf3   : > { %1798 = vmatpush.msra.mxu2 %v1313_v15  ;;  %1799 = vmatpush.msra.mxu3 %v1313_v15 }
  0xf4   : > { %1074 = vrot.lane.b32.xlu0 %v2080_v52, %s1917_s11 }
  0xf5   : > { %1034 = vrot.lane.b32.xlu2 %v2200_v24, %s1915_s23  ;;  %v1312_v24 = vld [vmem:[%s3005_s3 + $0x28] sm:$0xff] }
  0xf6   : > { %1080 = vrot.lane.b32.xlu1 %v2121_v11, %s1917_s11  ;;  %v2573_v35 = vpop.permute.xlu0 %868  ;;  %1375 = vmatpush.msra.mxu0 %v1312_v24 }
  0xf7   : > { %v891_v16 = vpop.permute.xlu2 %890  ;;  %1800 = vmatpush.msra.mxu1 %v1312_v24  ;;  %1801 = vmatpush.msra.mxu2 %v1312_v24 }
  0xf8   : > { %v2579_v52 = vsel %vm1205_vm5, %v1204_v41, %v891_v16  ;;  %v871_v32 = vpop.permute.xlu1 %870  ;;  %1376 = vmatpush.msra.mxu0 %v1311_v50  ;;  %1802 = vmatpush.msra.mxu3 %v1312_v24 }
  0xf9   : > { %v2586_v31 = vsel %vm1205_vm5, %v2481_v17, %v871_v32  ;;  %1803 = vmatpush.msra.mxu1 %v1311_v50  ;;  %1804 = vmatpush.msra.mxu2 %v1311_v50 }
  0xfa   : > { %1377 = vmatpush.msra.mxu0 %v1310_v1  ;;  %1805 = vmatpush.msra.mxu3 %v1311_v50 }
  0xfb   : > { %1806 = vmatpush.msra.mxu1 %v1310_v1  ;;  %1807 = vmatpush.msra.mxu2 %v1310_v1 }
  0xfc   : > { %1040 = vrot.lane.b32.xlu0 %v2395_v9, %s1915_s23  ;;  %1378 = vmatpush.msra.mxu0 %v1309_v62 }
  0xfd   : > { %1133 = vrot.lane.b32.xlu2 %v2308_v44, %s1916_s9  ;;  %1809 = vmatpush.msra.mxu1 %v1309_v62 }
  0xfe   : > { %1127 = vrot.lane.b32.xlu1 %v2288_v22, %s1916_s9  ;;  %v875_v17 = vpop.permute.xlu0 %874  ;;  %v1308_v22 = vld [vmem:[%s3005_s3 + $0x8] sm:$0xff]  ;;  %1810 = vmatpush.msra.mxu2 %v1309_v62 }
  0xff   : > { %v968_v45 = vpop.permute.xlu2 %967  ;;  %v2605_v26 = vsel %vm1205_vm5, %v2438_v47, %v875_v17  ;;  %1379 = vmatpush.msra.mxu0 %v1308_v22  ;;  %v1307_v47 = vld [vmem:[%s3005_s3] sm:$0xff]  ;;  %1812 = vmatpush.msra.mxu1 %v1308_v22 }
 0x100   : > { %v877_v46 = vpop.permute.xlu1 %876  ;;  %1813 = vmatpush.msra.mxu2 %v1308_v22  ;;  %1808 = vmatpush.msra.mxu3 %v1310_v1 }
 0x101   : > { %v2614_v41 = vsel %vm1205_vm5, %v2500_v48, %v877_v46  ;;  %1380 = vmatpush.msra.mxu0 %v1307_v47  ;;  %1815 = vmatpush.msra.mxu1 %v1307_v47  ;;  %v962_v48 = vrot.slane %v2395_v9, 2 }
 0x102   : > { %1816 = vmatpush.msra.mxu2 %v1307_v47  ;;  %1811 = vmatpush.msra.mxu3 %v1309_v62 }
 0x103   : > { %v2643_v9 = vsel %vm770_vm2, %v962_v48, %v963_v13 }
 0x104   : > { %1088 = vrot.lane.b32.xlu0 %v2237_v43, %s1917_s11  ;;  %1814 = vmatpush.msra.mxu3 %v1308_v22 }
 0x105   : > { %1141 = vrot.lane.b32.xlu2 %v2324_v4, %s1916_s9 }
 0x106   : > { %1094 = vrot.lane.b32.xlu1 %v2622_v2, %s1917_s11  ;;  %v881_v3 = vpop.permute.xlu0 %880  ;;  %1817 = vmatpush.msra.mxu3 %v1307_v47 }
 0x107   : > { %v1124_v59 = vpop.permute.xlu2 %1123  ;;  %v2634_v55 = vsel %vm1205_vm5, %v2451_v14, %v881_v3  ;;  %v663_v3 = vsel %vm586_vm0, %v2386_v60, 0.0 }
 0x108   : > { %v883_v15 = vpop.permute.xlu1 %882 }
 0x109   : > { %v2638_v16 = vsel %vm1205_vm5, %v2519_v37, %v883_v15  ;;  %v965_v15 = vrot.slane %v663_v3, 2 }
 0x10c   : > { %1147 = vrot.lane.b32.xlu0 %v2643_v9, %s1916_s9 }
 0x10d   : > { %926 = vrot.lane.b32.xlu2 %v2169_v61, %s1913_s19 }
 0x10e   : > { %920 = vrot.lane.b32.xlu1 %v2124_v12, %s1913_s19  ;;  %v887_v14 = vpop.permute.xlu0 %886 }
 0x10f   : > { %v976_v32 = vpop.permute.xlu2 %975  ;;  %v2653_v37 = vsel %vm1205_vm5, %v2468_v19, %v887_v14 }
 0x110   : > { %v889_v24 = vpop.permute.xlu1 %888 }
 0x111   : > { %v2657_v50 = vsel %vm1205_vm5, %v2537_v42, %v889_v24 }
 0x114   : > { %973 = vrot.lane.b32.xlu0 %v2282_v20, %s1914_s22 }
 0x115   : > { %934 = vrot.lane.b32.xlu2 %v2228_v38, %s1913_s19 }
 0x116   : > { %979 = vrot.lane.b32.xlu1 %v2302_v36, %s1914_s22  ;;  %v915_v12 = vpop.permute.xlu0 %914 }
 0x117   : > { %v1025_v61 = vpop.permute.xlu2 %1024  ;;  %v1223_v19 = vsel %vm1222_vm6, %v2487_v33, %v915_v12 }
 0x118   : > { %v917_v1 = vpop.permute.xlu1 %916  ;;  %v1240_v20 = vsel %vm1239_vm7, %v1223_v19, %v968_v45  ;;  %v487_v19 = vld [vmem:[%s444_s15 + $0x8] sm:$0xff] }
 0x11c   : > { %940 = vrot.lane.b32.xlu0 %v2249_v56, %s1913_s19 }
 0x11d   : > { %1028 = vrot.lane.b32.xlu2 %v2186_v63, %s1915_s23 }
 0x11e   : > { %1022 = vrot.lane.b32.xlu1 %v2052_v40, %s1915_s23  ;;  %v1017_v38 = vpop.permute.xlu0 %1016  ;;  %v1210_v40 = vsel %vm1205_vm5, %v2424_v30, %v2573_v35 }
 0x11f   : > { %v1079_v36 = vpop.permute.xlu2 %1078  ;;  %v1257_v42 = vsel %vm1256_vm8, %v1240_v20, %v1017_v38  ;;  %v1868_v20 = vld [vmem:[%s3006_s4] ss:$0 sm:$0xff] }
 0x120   : > { %v1071_v33 = vpop.permute.xlu1 %1070 }
 0x121   : > { %v1274_v17 = vsel %vm1273_vm9, %v1257_v42, %v1071_v33  ;;  %v551_v33 = vmul.f32 %v1868_v20, %v487_v19 }
 0x122   : > { %v1291_v62 = vsel %vm1290_vm10, %v1274_v17, %v1124_v59 }
 0x123   : > { %1765 = vmatmul.msk.f32.vlgmr.msra.gmra.mxu0 %vm1316_vm11, %v1291_v62 }
 0x124   : > { %987 = vrot.lane.b32.xlu0 %v2327_v5, %s1914_s22 }
 0x125   : > { %1076 = vrot.lane.b32.xlu2 %v2176_v7, %s1917_s11 }
 0x126   : > { %993 = vrot.lane.b32.xlu1 %v2342_v10, %s1914_s22  ;;  %v923_v63 = vpop.permute.xlu0 %922 }
 0x127   : > { %v1132_v45 = vpop.permute.xlu2 %1131  ;;  %v1227_v53 = vsel %vm1222_vm6, %v1210_v40, %v923_v63  ;;  %v1869_v40 = vld [vmem:[%s3007_s5] ss:$0 sm:$0xff] }
 0x128   : > { %v1244_v46 = vsel %vm1239_vm7, %v1227_v53, %v976_v32  ;;  %v970_v22 = vpop.permute.xlu1 %969 }
 0x129   : > { %v1261_v5 = vsel %vm1256_vm8, %v1244_v46, %v1025_v61 }
 0x12a   : > { %v1278_v47 = vsel %vm1273_vm9, %v1261_v5, %v1079_v36 }
 0x12b   : > { %v1295_v7 = vsel %vm1290_vm10, %v1278_v47, %v1132_v45  ;;  %v553_v45 = vadd.f32 %v1869_v40, %v551_v33 }
 0x12c   : > { %1082 = vrot.lane.b32.xlu0 %v2206_v27, %s1917_s11  ;;  %1769 = vmatmul.msk.f32.vlgmr.msra.gmra.mxu1 %vm1316_vm11, %v1295_v7  ;;  %v912_v27 = vrot.slane %v663_v3, 1 }
 0x12d   : > { %1042 = vrot.lane.b32.xlu2 %v2392_v54, %s1915_s23  ;;  %v555_v46 = vmax.f32 %v553_v45, 0.0 }
 0x12e   : > { %1036 = vrot.lane.b32.xlu1 %v2212_v29, %s1915_s23  ;;  %v931_v30 = vpop.permute.xlu0 %930  ;;  %v3013_v29 = vld [vmem:[#allocation2_spill] sm:$0xff]  ;;  %v2723_v60 = vsel %vm681_vm1, %v910_v34, %v912_v27 }
 0x12f   : > { %v2706_v35 = vpop.permute.xlu2 %918 }
 0x130   : > { %v1019_v48 = vpop.permute.xlu1 %1018 }
 0x134   : > { %1129 = vrot.lane.b32.xlu0 %v2285_v21, %s1916_s9  ;;  %v1224_v21 = vsel %vm1222_vm6, %v2553_v18, %v917_v1  ;;  %v486_v1 = vld [vmem:[%s444_s15] sm:$0xff] }
 0x135   : > { %1090 = vrot.lane.b32.xlu2 %v2231_v39, %s1917_s11  ;;  %v2729_v39 = vsel %vm770_vm2, %v963_v13, %v965_v15  ;;  %v1241_v24 = vsel %vm1239_vm7, %v1224_v21, %v970_v22  ;;  %v550_v36 = vmul.f32 %v1868_v20, %v486_v1  ;;  %v563_v22 = vstv %s562_s21 }
 0x136   : > { %1135 = vrot.lane.b32.xlu1 %v3013_v29, %s1916_s9  ;;  %v984_v59 = vpop.permute.xlu0 %983  ;;  %v1258_v54 = vsel %vm1256_vm8, %v1241_v24, %v1019_v48 }
 0x137   : > { %v2718_v14 = vpop.permute.xlu2 %977  ;;  %v552_v63 = vadd.f32 %v1869_v40, %v550_v36 }
 0x138   : > { %v1073_v32 = vpop.permute.xlu1 %1072 }
 0x139   : > { %v1275_v18 = vsel %vm1273_vm9, %v1258_v54, %v1073_v32 }
 0x13c   : > { %1096 = vrot.lane.b32.xlu0 %v2723_v60, %s1917_s11 }
 0x13d   : > { %1149 = vrot.lane.b32.xlu2 %v2729_v39, %s1916_s9 }
 0x13e   : > { %1143 = vrot.lane.b32.xlu1 %v2339_v6, %s1916_s9  ;;  %v1033_v34 = vpop.permute.xlu0 %1032  ;;  %v1231_v6 = vsel %vm1222_vm6, %v2614_v41, %v931_v30  ;;  %v565_v30 = vmul.f32 %v563_v22, %v555_v46 }
 0x13f   : > { %v2741_v13 = vpop.permute.xlu2 %1020  ;;  %v1248_v38 = vsel %vm1239_vm7, %v1231_v6, %v984_v59  ;;  %v1225_v6 = vsel %vm1222_vm6, %v2559_v58, %v2706_v35 }
 0x140   : > { %v1126_v12 = vpop.permute.xlu1 %1125  ;;  %v1265_v42 = vsel %vm1256_vm8, %v1248_v38, %v1033_v34  ;;  %v615_v48 = vrot.slane %v565_v30, 7 }
 0x141   : > { %v1292_v61 = vsel %vm1290_vm10, %v1275_v18, %v1126_v12 }
 0x142   : > { %1766 = vmatmul.msk.f32.gmra.mxu0 %vm1316_vm11, %v1292_v61 }
 0x144   : > { %928 = vrot.lane.b32.xlu0 %v2121_v11, %s1913_s19 }
 0x145   : > { %936 = vrot.lane.b32.xlu2 %v2237_v43, %s1913_s19 }
 0x146   : > { %981 = vrot.lane.b32.xlu1 %v2308_v44, %s1914_s22  ;;  %v1087_v41 = vpop.permute.xlu0 %1086  ;;  %v554_v44 = vmax.f32 %v552_v63, 0.0 }
 0x147   : > { %v2763_v11 = vpop.permute.xlu2 %991  ;;  %v1282_v17 = vsel %vm1273_vm9, %v1265_v42, %v1087_v41 }
 0x148   : > { %v1140_v62 = vpop.permute.xlu1 %1139  ;;  %v564_v7 = vmul.f32 %v563_v22, %v554_v44 }
 0x149   : > { %v1299_v43 = vsel %vm1290_vm10, %v1282_v17, %v1140_v62 }
 0x14a   : > { %1773 = vmatmul.msk.f32.vlgmr.msra.gmra.mxu2 %vm1316_vm11, %v1299_v43 }
 0x14c   : > { %942 = vrot.lane.b32.xlu0 %v2622_v2, %s1913_s19  ;;  %v614_v2 = vrot.slane %v564_v7, 7 }
 0x14d   : > { %989 = vrot.lane.b32.xlu2 %v2324_v4, %s1914_s22 }
 0x14e   : > { %1030 = vrot.lane.b32.xlu1 %v2179_v8, %s1915_s23  ;;  %v925_v53 = vpop.permute.xlu0 %924  ;;  %v654_v27 = vsel %vm586_vm0, 0.0, %v614_v2  ;;  %v616_v29 = vsel %vm586_vm0, %v614_v2, %v615_v48 }
 0x14f   : > { %v1035_v5 = vpop.permute.xlu2 %1034  ;;  %v1066_v59 = vrot.slane %v616_v29, 1  ;;  %v1119_v21 = vrot.slane %v616_v29, 2  ;;  %v1228_v54 = vsel %vm1222_vm6, %v2586_v31, %v925_v53  ;;  %v664_v31 = vsel %vm586_vm0, %v615_v48, 0.0 }
 0x150   : > { %v972_v47 = vpop.permute.xlu1 %971  ;;  %v1121_v36 = vrot.slane %v664_v31, 2 }
 0x152   : > { %v1122_v17 = vsel %vm770_vm2, %v1119_v21, %v1121_v36 }
 0x154   : > { %995 = vrot.lane.b32.xlu0 %v2643_v9, %s1914_s22  ;;  %v1065_v9 = vrot.slane %v654_v27, 1 }
 0x155   : > { %1038 = vrot.lane.b32.xlu2 %v2209_v28, %s1915_s23  ;;  %v1118_v28 = vrot.slane %v654_v27, 2 }
 0x156   : > { %1084 = vrot.lane.b32.xlu1 %v2197_v23, %s1917_s11  ;;  %v933_v4 = vpop.permute.xlu0 %932  ;;  %v1067_v24 = vsel %vm681_vm1, %v1065_v9, %v1066_v59 }
 0x157   : > { %v1134_v8 = vpop.permute.xlu2 %1133  ;;  %v1120_v34 = vsel %vm770_vm2, %v1118_v28, %v1119_v21 }
 0x158   : > { %v939_v3 = vpop.permute.xlu1 %938 }
 0x15c   : > { %1044 = vrot.lane.b32.xlu0 %v654_v27, %s1915_s23 }
 0x15d   : > { %1092 = vrot.lane.b32.xlu2 %v2249_v56, %s1917_s11 }
 0x15e   : > { %1137 = vrot.lane.b32.xlu1 %v2321_v57, %s1916_s9  ;;  %v1027_v23 = vpop.permute.xlu0 %1026  ;;  %v1245_v57 = vsel %vm1239_vm7, %v1228_v54, %v2718_v14  ;;  %v1068_v14 = vrot.slane %v664_v31, 1 }
 0x15f   : > { %v1142_v15 = vpop.permute.xlu2 %1141  ;;  %v1262_v18 = vsel %vm1256_vm8, %v1245_v57, %v1027_v23 }
 0x160   : > { %v986_v32 = vpop.permute.xlu1 %985  ;;  %v1069_v41 = vsel %vm681_vm1, %v1066_v59, %v1068_v14 }
 0x164   : > { %1098 = vrot.lane.b32.xlu0 %v1067_v24, %s1917_s11 }
 0x165   : > { %1151 = vrot.lane.b32.xlu2 %v1120_v34, %s1916_s9 }
 0x166   : > { %1145 = vrot.lane.b32.xlu1 %v2342_v10, %s1916_s9  ;;  %v1075_v56 = vpop.permute.xlu0 %1074  ;;  %v1242_v10 = vsel %vm1239_vm7, %v1225_v6, %v972_v47 }
 0x167   : > { %v927_v61 = vpop.permute.xlu2 %926  ;;  %v1259_v20 = vsel %vm1256_vm8, %v1242_v10, %v2741_v13 }
 0x168   : > { %v1081_v12 = vpop.permute.xlu1 %1080  ;;  %v1276_v58 = vsel %vm1273_vm9, %v1259_v20, %v1075_v56  ;;  %v1229_v23 = vsel %vm1222_vm6, %v2524_v49, %v927_v61 }
 0x169   : > { %v1279_v1 = vsel %vm1273_vm9, %v1262_v18, %v1081_v12 }
 0x16a   : > { %v1296_v19 = vsel %vm1290_vm10, %v1279_v1, %v1134_v8 }
 0x16b   : > { %1770 = vmatmul.msk.f32.gmra.mxu1 %vm1316_vm11, %v1296_v19 }
 0x16c   : > { %944 = vrot.lane.b32.xlu0 %v2723_v60, %s1913_s19  ;;  %v1232_v60 = vsel %vm1222_vm6, %v2542_v51, %v933_v4  ;;  %v1235_v51 = vsel %vm1222_vm6, %v2556_v0, %v939_v3 }
 0x16d   : > { %1046 = vrot.lane.b32.xlu2 %v616_v29, %s1915_s23  ;;  %v1249_v33 = vsel %vm1239_vm7, %v1232_v60, %v986_v32  ;;  %v1252_v45 = vsel %vm1239_vm7, %v1235_v51, %v2763_v11  ;;  %s2845_s23 = scalar_lea.vmem %s3008_s6, %s1741_s16  ;;  %s465_s16 = sadd.s32 %s1763_s13, %s3033_s24 }
 0x16e   : > { %997 = vrot.lane.b32.xlu1 %v2729_v39, %s1914_s22  ;;  %v1041_v38 = vpop.permute.xlu0 %1040  ;;  %v1266_v62 = vsel %vm1256_vm8, %v1249_v33, %v1035_v5 }
 0x16f   : > { %v935_v39 = vpop.permute.xlu2 %934  ;;  %v1269_v44 = vsel %vm1256_vm8, %v1252_v45, %v1041_v38 }
 0x170   : > { %v1128_v35 = vpop.permute.xlu1 %1127  ;;  %v1233_v61 = vsel %vm1222_vm6, %v2634_v55, %v935_v39 }
 0x171   : > { %v1293_v42 = vsel %vm1290_vm10, %v1276_v58, %v1128_v35 }
 0x172   : > { %1767 = vmatmul.msk.f32.gmra.mxu0 %vm1316_vm11, %v1293_v42 }
 0x174   : > { %1100 = vrot.lane.b32.xlu0 %v1069_v41, %s1917_s11 }
 0x176   : > { %1153 = vrot.lane.b32.xlu1 %v1122_v17, %s1916_s9  ;;  %v1089_v13 = vpop.permute.xlu0 %1088  ;;  %s1764_s9 = sshll.u32 %s465_s16, 1 }
 0x177   : > { %v1283_v43 = vsel %vm1273_vm9, %v1266_v62, %v1089_v13  ;;  %v1029_v53 = vpop.permute.xlu2 %1028  ;;  %s467_s10 = scalar_lea.vmem %s3009_s7, %s1764_s9 }
 0x178   : > { %v1095_v40 = vpop.permute.xlu1 %1094  ;;  %v1300_v63 = vsel %vm1290_vm10, %v1283_v43, %v1142_v15 }
 0x179   : > { %1774 = vmatmul.msk.f32.gmra.mxu2 %vm1316_vm11, %v1300_v63  ;;  %v1286_v46 = vsel %vm1273_vm9, %v1269_v44, %v1095_v40 }
 0x17e   : > { %v1148_v22 = vpop.permute.xlu0 %1147 }
 0x17f   : > { %v1303_v5 = vsel %vm1290_vm10, %v1286_v46, %v1148_v22  ;;  %v1077_v30 = vpop.permute.xlu2 %1076 }
 0x180   : > { %v921_v47 = vpop.permute.xlu1 %920  ;;  %1777 = vmatmul.msk.f32.vlgmr.msra.gmra.mxu3 %vm1316_vm11, %v1303_v5 }
 0x181   : > { %v1226_v59 = vsel %vm1222_vm6, %v2506_v25, %v921_v47 }
 0x186   : > { %v974_v7 = vpop.permute.xlu0 %973 }
 0x187   : > { %v1043_v48 = vpop.permute.xlu2 %1042  ;;  %v1243_v28 = vsel %vm1239_vm7, %v1226_v59, %v974_v7 }
 0x188   : > { %v980_v0 = vpop.permute.xlu1 %979 }
 0x189   : > { %v1246_v32 = vsel %vm1239_vm7, %v1229_v23, %v980_v0 }
 0x18a   : > { %v1263_v54 = vsel %vm1256_vm8, %v1246_v32, %v1029_v53 }
 0x18e   : > { %v941_v2 = vpop.permute.xlu0 %940 }
 0x18f   : > { %v1091_v3 = vpop.permute.xlu2 %1090  ;;  %v1236_v12 = vsel %vm1222_vm6, %v2653_v37, %v941_v2 }
 0x190   : > { %v1023_v4 = vpop.permute.xlu1 %1022 }
 0x191   : > { %v1260_v15 = vsel %vm1256_vm8, %v1243_v28, %v1023_v4 }
 0x192   : > { %v1277_v34 = vsel %vm1273_vm9, %v1260_v15, %v1077_v30 }
 0x196   : > { %v988_v8 = vpop.permute.xlu0 %987 }
 0x197   : > { %v1150_v21 = vpop.permute.xlu2 %1149  ;;  %v1250_v19 = vsel %vm1239_vm7, %v1233_v61, %v988_v8 }
 0x198   : > { %v994_v11 = vpop.permute.xlu1 %993 }
 0x199   : > { %v1253_v1 = vsel %vm1239_vm7, %v1236_v12, %v994_v11 }
 0x19a   : > { %v1270_v10 = vsel %vm1256_vm8, %v1253_v1, %v1043_v48 }
 0x19e   : > { %v1083_v27 = vpop.permute.xlu0 %1082 }
 0x19f   : > { %v1280_v56 = vsel %vm1273_vm9, %v1263_v54, %v1083_v27  ;;  %v937_v14 = vpop.permute.xlu2 %936 }
 0x1a0   : > { %v1037_v29 = vpop.permute.xlu1 %1036  ;;  %v1382_v9 = vpop.f32.mrf.mxu0  ;;  %v1234_v48 = vsel %vm1222_vm6, %v2638_v16, %v937_v14 }
 0x1a1   : > { %1523 = vst.msk [vmem:[%s2845_s23] sm:$0xff] %vm1171_vm4, %v1382_v9  ;;  %v1267_v31 = vsel %vm1256_vm8, %v1250_v19, %v1037_v29  ;;  %v1467_v41 = vmul.f32 %v1382_v9, %v1382_v9  ;;  %v1430_v39 = vsel %vm1171_vm4, %v1382_v9, 0.0 }
 0x1a2   : > { %v1284_v20 = vsel %vm1273_vm9, %v1267_v31, %v1091_v3 }
 0x1a3   : > { %v1483_v40 = vsel %vm1171_vm4, %v1467_v41, 0.0 }
 0x1a6   : > { %v1130_v24 = vpop.permute.xlu0 %1129 }
 0x1a7   : > { %v1294_v25 = vsel %vm1290_vm10, %v1277_v34, %v1130_v24  ;;  %v990_v42 = vpop.permute.xlu2 %989 }
 0x1a8   : > { %v1136_v57 = vpop.permute.xlu1 %1135  ;;  %1768 = vmatmul.msk.f32.gmra.mxu0 %vm1316_vm11, %v1294_v25  ;;  %v1251_v3 = vsel %vm1239_vm7, %v1234_v48, %v990_v42 }
 0x1a9   : > { %v1297_v18 = vsel %vm1290_vm10, %v1280_v56, %v1136_v57  ;;  %v2862_v49 = vpop.f32.mrf.mxu1 }
 0x1aa   : > { %1771 = vmatmul.msk.f32.gmra.mxu1 %vm1316_vm11, %v1297_v18  ;;  %1527 = vst.msk [vmem:[%s2845_s23 + $0x20] sm:$0xff] %vm1171_vm4, %v2862_v49 }
 0x1ae   : > { %v1097_v6 = vpop.permute.xlu0 %1096 }
 0x1af   : > { %v1287_v37 = vsel %vm1273_vm9, %v1270_v10, %v1097_v6  ;;  %v1039_v51 = vpop.permute.xlu2 %1038 }
 0x1b0   : > { %v1144_v38 = vpop.permute.xlu1 %1143  ;;  %v1304_v36 = vsel %vm1290_vm10, %v1287_v37, %v1150_v21  ;;  %v1268_v9 = vsel %vm1256_vm8, %v1251_v3, %v1039_v51 }
 0x1b1   : > { %v1301_v55 = vsel %vm1290_vm10, %v1284_v20, %v1144_v38  ;;  %1778 = vmatmul.msk.f32.gmra.mxu3 %vm1316_vm11, %v1304_v36  ;;  %v1471_v38 = vmul.f32 %v2862_v49, %v2862_v49 }
 0x1b2   : > { %1775 = vmatmul.msk.f32.gmra.mxu2 %vm1316_vm11, %v1301_v55 }
 0x1b6   : > { %v929_v58 = vpop.permute.xlu0 %928 }
 0x1b7   : > { %v1230_v46 = vsel %vm1222_vm6, %v2605_v26, %v929_v58  ;;  %v1093_v22 = vpop.permute.xlu2 %1092 }
 0x1b8   : > { %v982_v35 = vpop.permute.xlu1 %981  ;;  %v1285_v28 = vsel %vm1273_vm9, %v1268_v9, %v1093_v22 }
 0x1b9   : > { %v1247_v47 = vsel %vm1239_vm7, %v1230_v46, %v982_v35  ;;  %v1437_v35 = vsel %vm1171_vm4, %v2862_v49, 0.0 }
 0x1be   : > { %v943_v60 = vpop.permute.xlu0 %942 }
 0x1bf   : > { %v1385_v33 = vpop.f32.mrf.mxu0  ;;  %v1237_v26 = vsel %vm1222_vm6, %v2657_v50, %v943_v60  ;;  %v1152_v11 = vpop.permute.xlu2 %1151 }
 0x1c0   : > { %v1431_v17 = vsel %vm1171_vm4, %v1385_v33, 0.0  ;;  %v1468_v13 = vmul.f32 %v1385_v33, %v1385_v33  ;;  %1524 = vst.msk [vmem:[%s2845_s23 + $0x8] sm:$0xff] %vm1171_vm4, %v1385_v33  ;;  %v1031_v62 = vpop.permute.xlu1 %1030 }
 0x1c1   : > { %v1432_v43 = vadd.f32 %v1431_v17, %v1430_v39  ;;  %v1264_v30 = vsel %vm1256_vm8, %v1247_v47, %v1031_v62  ;;  %v1490_v39 = vsel %vm1171_vm4, %v1471_v38, 0.0 }
 0x1c2   : > { %v1484_v63 = vsel %vm1171_vm4, %v1468_v13, 0.0 }
 0x1c3   : > { %v1485_v45 = vadd.f32 %v1484_v63, %v1483_v40 }
 0x1c6   : > { %v996_v44 = vpop.permute.xlu0 %995 }
 0x1c7   : > { %v1254_v8 = vsel %vm1239_vm7, %v1237_v26, %v996_v44  ;;  %v1047_v34 = vpop.permute.xlu2 %1046 }
 0x1c8   : > { %v1085_v53 = vpop.permute.xlu1 %1084 }
 0x1c9   : > { %v1281_v0 = vsel %vm1273_vm9, %v1264_v30, %v1085_v53 }
 0x1cd   : > { %v2890_v5 = vpop.f32.mrf.mxu2 }
 0x1ce   : > { %1531 = vst.msk [vmem:[%s2845_s23 + $0x40] sm:$0xff] %vm1171_vm4, %v2890_v5  ;;  %v1045_v7 = vpop.permute.xlu0 %1044  ;;  %v1475_v46 = vmul.f32 %v2890_v5, %v2890_v5 }
 0x1cf   : > { %v1271_v27 = vsel %vm1256_vm8, %v1254_v8, %v1045_v7 }
 0x1d0   : > { %v1138_v2 = vpop.permute.xlu1 %1137 }
 0x1d1   : > { %v1298_v4 = vsel %vm1290_vm10, %v1281_v0, %v1138_v2  ;;  %v1445_v2 = vsel %vm1171_vm4, %v2890_v5, 0.0 }
 0x1d2   : > { %1772 = vmatmul.msk.f32.gmra.mxu1 %vm1316_vm11, %v1298_v4 }
 0x1d6   : > { %v1099_v29 = vpop.permute.xlu0 %1098 }
 0x1d7   : > { %v1288_v59 = vsel %vm1273_vm9, %v1271_v27, %v1099_v29 }
 0x1d8   : > { %v1146_v23 = vpop.permute.xlu1 %1145  ;;  %v1305_v50 = vsel %vm1290_vm10, %v1288_v59, %v1152_v11  ;;  %v1498_v11 = vsel %vm1171_vm4, %v1475_v46, 0.0 }
 0x1d9   : > { %v1302_v16 = vsel %vm1290_vm10, %v1285_v28, %v1146_v23  ;;  %1779 = vmatmul.msk.f32.gmra.mxu3 %vm1316_vm11, %v1305_v50 }
 0x1da   : > { %1776 = vmatmul.msk.f32.gmra.mxu2 %vm1316_vm11, %v1302_v16 }
 0x1de   : > { %v945_v15 = vpop.permute.xlu0 %944 }
 0x1df   : > { %v1238_v32 = vsel %vm1222_vm6, %v2579_v52, %v945_v15 }
 0x1e0   : > { %v998_v21 = vpop.permute.xlu1 %997 }
 0x1e1   : > { %v1255_v24 = vsel %vm1239_vm7, %v1238_v32, %v998_v21 }
 0x1e2   : > { %v1272_v54 = vsel %vm1256_vm8, %v1255_v24, %v1047_v34 }
 0x1e6   : > { %v1101_v25 = vpop.permute.xlu0 %1100 }
 0x1e7   : > { %v1289_v56 = vsel %vm1273_vm9, %v1272_v54, %v1101_v25 }
 0x1e8   : > { %v1397_v57 = vpop.f32.mrf.mxu1  ;;  %v1154_v18 = vpop.permute.xlu1 %1153 }
 0x1e9   : > { %1528 = vst.msk [vmem:[%s2845_s23 + $0x28] sm:$0xff] %vm1171_vm4, %v1397_v57  ;;  %v1306_v12 = vsel %vm1290_vm10, %v1289_v56, %v1154_v18  ;;  %v1472_v42 = vmul.f32 %v1397_v57, %v1397_v57  ;;  %v1439_v17 = vsel %vm1171_vm4, %v1397_v57, 0.0 }
 0x1ea   : > { %1780 = vmatmul.msk.f32.gmra.mxu3 %vm1316_vm11, %v1306_v12 }
 0x1ef   : > { %v1388_v52 = vpop.f32.mrf.mxu0 }
 0x1f0   : > { %v1433_v61 = vsel %vm1171_vm4, %v1388_v52, 0.0  ;;  %v1469_v1 = vmul.f32 %v1388_v52, %v1388_v52  ;;  %1525 = vst.msk [vmem:[%s2845_s23 + $0x10] sm:$0xff] %vm1171_vm4, %v1388_v52 }
 0x1f1   : > { %v1434_v19 = vadd.f32 %v1433_v61, %v1432_v43  ;;  %v1492_v43 = vsel %vm1171_vm4, %v1472_v42, 0.0 }
 0x1f2   : > { %v1486_v31 = vsel %vm1171_vm4, %v1469_v1, 0.0 }
 0x1f3   : > { %v1487_v6 = vadd.f32 %v1486_v31, %v1485_v45 }
 0x1fc   : > { %v1409_v10 = vpop.f32.mrf.mxu2 }
 0x1fd   : > { %1532 = vst.msk [vmem:[%s2845_s23 + $0x48] sm:$0xff] %vm1171_vm4, %v1409_v10  ;;  %v1476_v4 = vmul.f32 %v1409_v10, %v1409_v10  ;;  %v1447_v3 = vsel %vm1171_vm4, %v1409_v10, 0.0 }
 0x1ff   : > { %v1500_v9 = vsel %vm1171_vm4, %v1476_v4, 0.0 }
 0x203   : > { %v1418_v14 = vpop.f32.mrf.mxu3 }
 0x204   : > { %1535 = vst.msk [vmem:[%s2845_s23 + $0x60] sm:$0xff] %vm1171_vm4, %v1418_v14  ;;  %v1479_v15 = vmul.f32 %v1418_v14, %v1418_v14  ;;  %v1453_v25 = vsel %vm1171_vm4, %v1418_v14, 0.0 }
 0x206   : > { %v1506_v12 = vsel %vm1171_vm4, %v1479_v15, 0.0 }
 0x225   : > { %v1391_v37 = vpop.f32.mrf.mxu0 }
 0x226   : > { %v1435_v20 = vsel %vm1171_vm4, %v1391_v37, 0.0  ;;  %v1470_v36 = vmul.f32 %v1391_v37, %v1391_v37  ;;  %1526 = vst.msk [vmem:[%s2845_s23 + $0x18] sm:$0xff] %vm1171_vm4, %v1391_v37 }
 0x227   : > { %v1436_v55 = vadd.f32 %v1435_v20, %v1434_v19  ;;  %v1400_v58 = vpop.f32.mrf.mxu1 }
 0x228   : > { %v1488_v41 = vsel %vm1171_vm4, %v1470_v36, 0.0  ;;  %1529 = vst.msk [vmem:[%s2845_s23 + $0x30] sm:$0xff] %vm1171_vm4, %v1400_v58  ;;  %v1473_v49 = vmul.f32 %v1400_v58, %v1400_v58  ;;  %v1441_v45 = vsel %vm1171_vm4, %v1400_v58, 0.0 }
 0x229   : > { %v1438_v60 = vadd.f32 %v1437_v35, %v1436_v55  ;;  %v1489_v33 = vadd.f32 %v1488_v41, %v1487_v6 }
 0x22a   : > { %v1494_v22 = vsel %vm1171_vm4, %v1473_v49, 0.0 }
 0x22b   : > { %v1491_v13 = vadd.f32 %v1490_v39, %v1489_v33  ;;  %v1440_v62 = vadd.f32 %v1439_v17, %v1438_v60 }
 0x22d   : > { %v1493_v40 = vadd.f32 %v1492_v43, %v1491_v13  ;;  %v1442_v44 = vadd.f32 %v1441_v45, %v1440_v62 }
 0x22f   : > { %v1495_v30 = vadd.f32 %v1494_v22, %v1493_v40 }
 0x234   : > { %v1421_v63 = vpop.f32.mrf.mxu3 }
 0x235   : > { %v1412_v51 = vpop.f32.mrf.mxu2  ;;  %1536 = vst.msk [vmem:[%s2845_s23 + $0x68] sm:$0xff] %vm1171_vm4, %v1421_v63  ;;  %v1480_v61 = vmul.f32 %v1421_v63, %v1421_v63  ;;  %v1455_v1 = vsel %vm1171_vm4, %v1421_v63, 0.0 }
 0x236   : > { %1533 = vst.msk [vmem:[%s2845_s23 + $0x50] sm:$0xff] %vm1171_vm4, %v1412_v51  ;;  %v1477_v28 = vmul.f32 %v1412_v51, %v1412_v51  ;;  %v1449_v23 = vsel %vm1171_vm4, %v1412_v51, 0.0 }
 0x237   : > { %v1508_v31 = vsel %vm1171_vm4, %v1480_v61, 0.0 }
 0x238   : > { %v1502_v32 = vsel %vm1171_vm4, %v1477_v28, 0.0 }
 0x24f   : > { %v1403_v53 = vpop.f32.mrf.mxu1 }
 0x250   : > { %v1443_v47 = vsel %vm1171_vm4, %v1403_v53, 0.0  ;;  %v1474_v7 = vmul.f32 %v1403_v53, %v1403_v53  ;;  %1530 = vst.msk [vmem:[%s2845_s23 + $0x38] sm:$0xff] %vm1171_vm4, %v1403_v53 }
 0x251   : > { %v1444_v0 = vadd.f32 %v1443_v47, %v1442_v44 }
 0x252   : > { %v1496_v26 = vsel %vm1171_vm4, %v1474_v7, 0.0 }
 0x253   : > { %v1446_v48 = vadd.f32 %v1445_v2, %v1444_v0  ;;  %v1497_v8 = vadd.f32 %v1496_v26, %v1495_v30 }
 0x255   : > { %v1499_v27 = vadd.f32 %v1498_v11, %v1497_v8  ;;  %v1448_v29 = vadd.f32 %v1447_v3, %v1446_v48 }
 0x257   : > { %v1501_v59 = vadd.f32 %v1500_v9, %v1499_v27  ;;  %v1450_v16 = vadd.f32 %v1449_v23, %v1448_v29 }
 0x259   : > { %v1503_v54 = vadd.f32 %v1502_v32, %v1501_v59 }
 0x25c   : > { %v1424_v5 = vpop.f32.mrf.mxu3 }
 0x25d   : > { %v1415_v50 = vpop.f32.mrf.mxu2  ;;  %1537 = vst.msk [vmem:[%s2845_s23 + $0x70] sm:$0xff] %vm1171_vm4, %v1424_v5  ;;  %v1481_v6 = vmul.f32 %v1424_v5, %v1424_v5  ;;  %v1457_v14 = vsel %vm1171_vm4, %v1424_v5, 0.0 }
 0x25e   : > { %v1451_v21 = vsel %vm1171_vm4, %v1415_v50, 0.0  ;;  %v1478_v24 = vmul.f32 %v1415_v50, %v1415_v50  ;;  %1534 = vst.msk [vmem:[%s2845_s23 + $0x58] sm:$0xff] %vm1171_vm4, %v1415_v50 }
 0x25f   : > { %v1452_v34 = vadd.f32 %v1451_v21, %v1450_v16  ;;  %v1510_v20 = vsel %vm1171_vm4, %v1481_v6, 0.0 }
 0x260   : > { %v1504_v56 = vsel %vm1171_vm4, %v1478_v24, 0.0 }
 0x261   : > { %v1454_v57 = vadd.f32 %v1453_v25, %v1452_v34  ;;  %v1505_v18 = vadd.f32 %v1504_v56, %v1503_v54 }
 0x263   : > { %v1507_v52 = vadd.f32 %v1506_v12, %v1505_v18  ;;  %v1456_v19 = vadd.f32 %v1455_v1, %v1454_v57 }
 0x265   : > { %v1509_v10 = vadd.f32 %v1508_v31, %v1507_v52  ;;  %v1458_v37 = vadd.f32 %v1457_v14, %v1456_v19 }
 0x267   : > { %v1511_v58 = vadd.f32 %v1510_v20, %v1509_v10 }
 0x26d   : > { %v1427_v38 = vpop.f32.mrf.mxu3 }
 0x26e   : > { %v1459_v36 = vsel %vm1171_vm4, %v1427_v38, 0.0  ;;  %v1482_v55 = vmul.f32 %v1427_v38, %v1427_v38  ;;  %1538 = vst.msk [vmem:[%s2845_s23 + $0x78] sm:$0xff] %vm1171_vm4, %v1427_v38 }
 0x26f   : > { %v1460_v35 = vadd.f32 %v1459_v36, %v1458_v37 }
 0x270   : > { %v1512_v42 = vsel %vm1171_vm4, %v1482_v55, 0.0 }
 0x271   : > { %v1461_v41 = vrot.slane %v1460_v35, 4  ;;  %v1513_v60 = vadd.f32 %v1512_v42, %v1511_v58 }
 0x273   : > { %v1462_v33 = vadd.f32 %v1461_v41, %v1460_v35  ;;  %v1514_v39 = vrot.slane %v1513_v60, 4 }
 0x275   : > { %v1463_v17 = vrot.slane %v1462_v33, 2  ;;  %v1515_v13 = vadd.f32 %v1514_v39, %v1513_v60 }
 0x277   : > { %v1464_v62 = vadd.f32 %v1463_v17, %v1462_v33  ;;  %v1516_v43 = vrot.slane %v1515_v13, 2 }
 0x279   : > { %v1465_v40 = vrot.slane %v1464_v62, 1  ;;  %v1517_v63 = vadd.f32 %v1516_v43, %v1515_v13 }
 0x27b   : > { %v1518_v51 = vrot.slane %v1517_v63, 1  ;;  %v1466_v49 = vadd.f32 %v1465_v40, %v1464_v62 }
 0x27d   : > { %v1519_v45 = vadd.f32 %v1518_v51, %v1517_v63 }
 0x27f   : > { %v1520_v44 = vsel %vm586_vm0, %v1466_v49, %v1519_v45 }
 0x280   : > { %1522 = vst.msk [vmem:[%s467_s10] sm:$0x3] %vm1521_vm12, %v1520_v44 }
 0x281 PF: > { %s18_s28 = sadd.s32 1, %s1908_s28   ;;  %s3014_s24 = smov %s1900_s26 }
 0x282   : > { %p15_p12 = scmp.ge.s32.totalorder %s18_s28, 6   ;;  %s3015_s25 = smov %s1904_s27 }
 0x283   : > { %s3016_s26 = smov %s3019_s29  ;;  %s3017_s27 = smov %s3023_s30 }
 0x284   :  { %17 = sbr.rel (!%p15_p12) target bundleno = 3 (0x3), region = 92 }

</bundles_post_ra>
